<compile_context>
chip_gen: v7x
topology: tpu7x:2x2x1
jax: 0.10.0
libtpu: 0.0.40
codegen_flags: <defaults>
</compile_context>

<pallas_src>
import functools
import math

import numpy as np

import jax
import jax.numpy as jnp
from jax import lax
from jax.experimental import pallas as pl
from jax.experimental.pallas import tpu as pltpu

NEG_SLOPE = 0.01     # PyTorch LeakyReLU default
NEG_INF = -1e30      # additive attention mask value


# ---------------------------------------------------------------------------
# Slab access helpers: a weight handle is (rows, col_off, cols) into w_slab,
# a bias handle is (off, n) into the (1, *) b_slab.  All offsets are static.
# ---------------------------------------------------------------------------

def _W(w_ref, h):
    r, c0, c = h
    return w_ref[0:r, c0:c0 + c]


def _Bv(b_ref, h):
    o, n = h
    return b_ref[0:1, o:o + n]


def _lrelu(y):
    return jnp.where(y >= 0, y, NEG_SLOPE * y)


def _dot(a, b):
    return jnp.dot(a, b, preferred_element_type=jnp.float32)


def _ffn(x, w_ref, b_ref, h, final_linear):
    """Two-layer FFN, hidden LeakyReLU, optional trailing LeakyReLU."""
    w1h, b1h, w2h, b2h = h
    y = _lrelu(_dot(x, _W(w_ref, w1h)) + _Bv(b_ref, b1h))
    y = _dot(y, _W(w_ref, w2h)) + _Bv(b_ref, b2h)
    return y if final_linear else _lrelu(y)


def _graph_stats(x, S, G, B, P):
    """Per-graph mean / mean-abs-deviation / max for fixed-size contiguous
    graphs.  mean & mad are block-diagonal pooling matmuls (MXU, otherwise
    idle); max keeps a tiny static-slice loop (B is 2)."""
    mean = _dot(S, x)                                  # (B, F)
    mad = _dot(S, jnp.abs(x - _dot(G, mean)))          # (B, F)
    mx = jnp.concatenate(
        [jnp.max(x[b * P:(b + 1) * P, :], axis=0, keepdims=True) for b in range(B)],
        axis=0)                                        # (B, F)
    return mean, mad, mx


def _cnu(x, S, G, w_ref, b_ref, h, B, P):
    """CentralNodeUpdate: emb FFN -> mad-pool -> glob FFN -> per-node broadcast
    -> out FFN.  The constant per-graph count is pre-folded into glob_b1; the
    per-node broadcast of the global vector is the gather matmul G @ (xg @ W)."""
    xe = _ffn(x, w_ref, b_ref, h['emb'], final_linear=False)          # (N, L)
    mean, mad, mx = _graph_stats(xe, S, G, B, P)
    hg = _lrelu(_dot(mean, _W(w_ref, h['glob_mean'])) +
                _dot(mad, _W(w_ref, h['glob_mad'])) +
                _dot(mx, _W(w_ref, h['glob_max'])) +
                _Bv(b_ref, h['glob_b1']))
    xg = _lrelu(_dot(hg, _W(w_ref, h['glob_w2'])) + _Bv(b_ref, h['glob_b2']))   # (B, G)
    xg_nodes = _dot(G, _dot(xg, _W(w_ref, h['out_xg'])))               # (N, hidden)
    h2 = _lrelu(_dot(xe, _W(w_ref, h['out_xe'])) + xg_nodes + _Bv(b_ref, h['out_b1']))
    return _dot(h2, _W(w_ref, h['out_w2'])) + _Bv(b_ref, h['out_b2'])  # final_linear=True


def _critic(x, cond, S, G, w_ref, b_ref, h, B, P):
    """TSumTDisc: residual CNU updates, mad-pool, red FFN with condition."""
    for cnu_h in h['cnus']:
        x = x + _cnu(x, S, G, w_ref, b_ref, cnu_h, B, P)
    mean, mad, mx = _graph_stats(x, S, G, B, P)
    hr = _lrelu(_dot(mean, _W(w_ref, h['red_mean'])) +
                _dot(mad, _W(w_ref, h['red_mad'])) +
                _dot(mx, _W(w_ref, h['red_max'])) +
                _dot(cond, _W(w_ref, h['red_cond'])) +
                _Bv(b_ref, h['red_b1']))
    return _dot(hr, _W(w_ref, h['red_w2'])) + _Bv(b_ref, h['red_b2'])  # (B, 1)


def _embedding(x, S, G, w_ref, b_ref, h, B, P):
    """Embedding: inemb FFN (final_linear) -> CNU -> residual."""
    x = _ffn(x, w_ref, b_ref, h['inemb'], final_linear=True)
    return x + _cnu(x, S, G, w_ref, b_ref, h['cnu'], B, P)


def _bipart(x, w_ref, b_ref, h, n_heads):
    """BipartPool (mode='attn'): multi-head attention of pre-projected,
    pre-tiled aggregator queries against all nodes, with a constant
    block-diagonal additive mask."""
    E = h['wk'][2]
    k = _dot(x, _W(w_ref, h['wk'])) + _Bv(b_ref, h['bk'])     # (N, E)
    v = _dot(x, _W(w_ref, h['wv'])) + _Bv(b_ref, h['bv'])     # (N, E)
    q = _W(w_ref, h['q'])                                     # (B*ratio, E) precomputed
    bias = _W(w_ref, h['bias'])                               # (B*ratio, N) 0 / -1e30
    hd = E // n_heads
    scale = 1.0 / math.sqrt(hd)
    heads = []
    for i in range(n_heads):                                  # static, tiny head count
        sl = slice(i * hd, (i + 1) * hd)
        s = lax.dot_general(q[:, sl], k[:, sl], (((1,), (1,)), ((), ())),
                            preferred_element_type=jnp.float32) * scale + bias
        s = s - jnp.max(s, axis=-1, keepdims=True)
        p = jnp.exp(s)
        p = p * pl.reciprocal(jnp.sum(p, axis=-1, keepdims=True), approx=True)
        heads.append(_dot(p, v[:, sl]))
    att = jnp.concatenate(heads, axis=-1)                     # (B*ratio, E)
    return _dot(att, _W(w_ref, h['wo'])) + _Bv(b_ref, h['bo'])


# ---------------------------------------------------------------------------
# The single fused kernel: whole ModelClass.forward
# ---------------------------------------------------------------------------

def _fused_forward_kernel(x_ref, cond_ref, w_ref, b_ref, *out_refs, cfg, H):
    B = cfg['batch_size']
    nodes = cfg['nodes']
    n_levels = len(nodes)
    n_heads = cfg['n_heads']
    P_levels = [cfg['points']] + list(nodes)

    scores_ref, stats_ref = out_refs[0], out_refs[1]
    lvl_refs = out_refs[2:]                     # alternating emb / pool outputs

    x = x_ref[...]
    cond = cond_ref[...]

    scores = []
    for lvl in range(n_levels + 1):
        P = P_levels[lvl]
        S = _W(w_ref, H['seg'][lvl]['S'])       # (B, N) constant segment matrix
        G = _W(w_ref, H['seg'][lvl]['G'])       # (N, B) constant gather matrix

        if lvl == 0:
            # latftx['input'] = hstack(global_mad_pool(x)[1:])
            m, d, mx = _graph_stats(x, S, G, B, P)
            stats_ref[...] = jnp.concatenate([m, d, mx], axis=-1).astype(stats_ref.dtype)

        scores.append(_critic(x, cond, S, G, w_ref, b_ref, H['critics'][lvl], B, P))
        if lvl == n_levels:
            break

        x = _embedding(x, S, G, w_ref, b_ref, H['embs'][lvl], B, P)
        lvl_refs[2 * lvl][...] = x.astype(lvl_refs[2 * lvl].dtype)
        x = _bipart(x, w_ref, b_ref, H['pools'][lvl], n_heads)
        lvl_refs[2 * lvl + 1][...] = x.astype(lvl_refs[2 * lvl + 1].dtype)

    scores_ref[...] = jnp.concatenate(scores, axis=-1).astype(scores_ref.dtype)


def model_forward(w_slab, b_slab, x, condition, *, handles, cfg):
    B = cfg['batch_size']
    nodes = cfg['nodes']
    n_levels = len(nodes)
    n_heads = cfg['n_heads']
    features = cfg['features']
    P_levels = [cfg['points']] + list(nodes)

    out_shapes = [
        jax.ShapeDtypeStruct((B, n_levels + 1), jnp.float32),       # all critic scores
        jax.ShapeDtypeStruct((B, 3 * features[0]), jnp.float32),    # latftx['input']
    ]
    for lvl in range(n_levels):
        E = features[lvl + 1] * n_heads
        out_shapes.append(jax.ShapeDtypeStruct((B * P_levels[lvl], E), jnp.float32))  # emb
        out_shapes.append(jax.ShapeDtypeStruct((B * nodes[lvl], E), jnp.float32))     # pool

    kernel = functools.partial(_fused_forward_kernel, cfg=cfg, H=handles)
    outs = pl.pallas_call(
        kernel,
        out_shape=tuple(out_shapes),
        compiler_params=pltpu.CompilerParams(vmem_limit_bytes=32 * 1024 * 1024),
    )(x, condition, w_slab, b_slab)

    scores = outs[0]
    lat = {'input': outs[1]}
    for lvl in range(n_levels):
        lat[f'lvl{lvl}_emb'] = outs[2 + 2 * lvl]
        lat[f'lvl{lvl}_pool'] = outs[2 + 2 * lvl + 1].reshape(B, nodes[lvl], -1)
    # torch.vstack(score_list): rows ordered level-major then graph-major.
    crit = scores.T.reshape(-1, 1)
    return {'crit': crit, 'latftx': lat}


# ---------------------------------------------------------------------------
# Parameter construction: deterministic synthetic weights, count-folding,
# per-matmul splits and packing into two lane-dense slabs.
# ---------------------------------------------------------------------------

class _SlabPacker:
    def __init__(self):
        self._w, self._b = [], []
        self._wc, self._bc = 0, 0
        self._max_rows = 8

    def w(self, mat):
        mat = np.asarray(mat, np.float32)
        r, c = mat.shape
        h = (int(r), int(self._wc), int(c))
        self._w.append(mat)
        self._wc += c
        self._max_rows = max(self._max_rows, r)
        return h

    def b(self, vec):
        vec = np.asarray(vec, np.float32).reshape(1, -1)
        n = vec.shape[1]
        h = (int(self._bc), int(n))
        self._b.append(vec)
        self._bc += n
        return h

    def finalize(self):
        def rup(v, m):
            return ((v + m - 1) // m) * m
        rows = rup(self._max_rows, 8)
        wcols = rup(max(self._wc, 1), 128)
        w_slab = np.zeros((rows, wcols), np.float32)
        c = 0
        for m in self._w:
            w_slab[:m.shape[0], c:c + m.shape[1]] = m
            c += m.shape[1]
        bcols = rup(max(self._bc, 1), 128)
        b_slab = np.zeros((1, bcols), np.float32)
        c = 0
        for v in self._b:
            b_slab[:, c:c + v.shape[1]] = v
            c += v.shape[1]
        return jnp.asarray(w_slab), jnp.asarray(b_slab)


def build_model(seed, cfg):
    B = cfg['batch_size']
    nodes = cfg['nodes']
    features = cfg['features']
    n_heads = cfg['n_heads']
    n_cond = cfg['n_cond']
    n_lat = cfg['n_ftx_latent']
    n_glob_crit = cfg['n_ftx_global']
    n_updates = cfg['n_updates']
    hidden = cfg['hidden']
    n_levels = len(nodes)
    P_levels = [cfg['points']] + list(nodes)

    rng = np.random.default_rng(seed)
    pk = _SlabPacker()

    def lin(n_in, n_out):
        w = (rng.standard_normal((n_in, n_out)) / np.sqrt(n_in)).astype(np.float32)
        b = (rng.standard_normal((1, n_out)) * 0.01).astype(np.float32)
        return w, b

    def pack_ffn(n_in, n_out):
        w1, b1 = lin(n_in, hidden)
        w2, b2 = lin(hidden, n_out)
        return (pk.w(w1), pk.b(b1), pk.w(w2), pk.b(b2))

    def pack_cnu(n_in, nl, ng, P):
        emb = pack_ffn(n_in, nl)
        # glob FFN on hstack([cnt, mean, mad, max]); constant cnt folded into bias.
        gw1, gb1 = lin(1 + 3 * nl, hidden)
        gb1_eff = gb1 + float(P) * gw1[0:1, :]
        gw2, gb2 = lin(hidden, ng)
        # out FFN on concat([xe, xg[batch]]); layer-1 weight split by row group.
        ow1, ob1 = lin(nl + ng, hidden)
        ow2, ob2 = lin(hidden, n_in)
        return {
            'emb': emb,
            'glob_mean': pk.w(gw1[1:1 + nl]),
            'glob_mad': pk.w(gw1[1 + nl:1 + 2 * nl]),
            'glob_max': pk.w(gw1[1 + 2 * nl:1 + 3 * nl]),
            'glob_b1': pk.b(gb1_eff),
            'glob_w2': pk.w(gw2), 'glob_b2': pk.b(gb2),
            'out_xe': pk.w(ow1[:nl]), 'out_xg': pk.w(ow1[nl:]),
            'out_b1': pk.b(ob1),
            'out_w2': pk.w(ow2), 'out_b2': pk.b(ob2),
        }

    def pack_critic(n_ftx, P):
        cnus = [pack_cnu(n_ftx, n_ftx, n_glob_crit, P) for _ in range(n_updates)]
        rw1, rb1 = lin(1 + 3 * n_ftx + n_cond, hidden)
        rb1_eff = rb1 + float(P) * rw1[0:1, :]
        rw2, rb2 = lin(hidden, 1)
        return {
            'cnus': cnus,
            'red_mean': pk.w(rw1[1:1 + n_ftx]),
            'red_mad': pk.w(rw1[1 + n_ftx:1 + 2 * n_ftx]),
            'red_max': pk.w(rw1[1 + 2 * n_ftx:1 + 3 * n_ftx]),
            'red_cond': pk.w(rw1[1 + 3 * n_ftx:]),
            'red_b1': pk.b(rb1_eff),
            'red_w2': pk.w(rw2), 'red_b2': pk.b(rb2),
        }

    def pack_embedding(n_in, n_out, P):
        return {'inemb': pack_ffn(n_in, n_out),
                'cnu': pack_cnu(n_out, n_lat, n_lat, P)}

    def pack_pool(in_channels, ratio, P_src):
        E = in_channels * n_heads
        N = B * P_src
        aggrs = rng.standard_normal((ratio, E)).astype(np.float32)
        wq, bq = lin(E, E)
        q_full = np.tile(aggrs @ wq + bq, (B, 1)).astype(np.float32)   # (B*ratio, E)
        wk, bk = lin(E, E)
        wv, bv = lin(E, E)
        wo, bo = lin(E, E)
        row_g = np.arange(B * ratio) // ratio
        col_g = np.arange(N) // P_src
        bias = np.where(row_g[:, None] == col_g[None, :], 0.0, NEG_INF).astype(np.float32)
        return {'q': pk.w(q_full),
                'wk': pk.w(wk), 'bk': pk.b(bk),
                'wv': pk.w(wv), 'bv': pk.b(bv),
                'wo': pk.w(wo), 'bo': pk.b(bo),
                'bias': pk.w(bias)}

    # constant per-level block-diagonal pooling matrices
    seg = []
    for lvl in range(n_levels + 1):
        P = P_levels[lvl]
        N = B * P
        own = (np.arange(N)[None, :] // P) == np.arange(B)[:, None]     # (B, N)
        S = np.where(own, 1.0 / P, 0.0).astype(np.float32)              # mean-pool
        G = own.T.astype(np.float32)                                    # (N, B) gather
        seg.append({'S': pk.w(S), 'G': pk.w(G)})

    handles = {'seg': seg, 'embs': [], 'pools': [], 'critics': []}
    for lvl in range(n_levels):
        n_in = features[lvl] * n_heads if lvl != 0 else features[lvl]
        handles['embs'].append(
            pack_embedding(n_in, features[lvl + 1] * n_heads, P_levels[lvl]))
        handles['pools'].append(
            pack_pool(features[lvl + 1], nodes[lvl], P_levels[lvl]))
    for lvl in range(n_levels + 1):
        n_ftx = features[lvl] * n_heads if lvl != 0 else features[lvl]
        handles['critics'].append(pack_critic(n_ftx, P_levels[lvl]))

    w_slab, b_slab = pk.finalize()
    return w_slab, b_slab, handles


# ---------------------------------------------------------------------------
if __name__ == "__main__":
    cfg = dict(
        batch_size=2,      # conf.loader.batch_size
        points=8,          # points per graph in the input point cloud
        nodes=[4, 2],      # BipartPool ratios per level
        features=[4, 8, 16],
        n_heads=2,
        n_cond=2,
        n_ftx_latent=8,    # emb_param['n_ftx_latent']
        n_ftx_global=4,    # critics_param['n_ftx_global']
        n_updates=1,       # critics_param['n_updates']
        hidden=16,         # FFN hidden width (ffn_param)
    )

    w_slab, b_slab, handles = build_model(0, cfg)

    key = jax.random.PRNGKey(0)
    kx, kc = jax.random.split(key)
    x = jax.random.normal(
        kx, (cfg['batch_size'] * cfg['points'], cfg['features'][0]), jnp.float32)
    condition = jax.random.normal(kc, (cfg['batch_size'], cfg['n_cond']), jnp.float32)

    fwd = jax.jit(functools.partial(model_forward, handles=handles, cfg=cfg))
    out = fwd(w_slab, b_slab, x, condition)
    jax.block_until_ready(out)

    n_levels = len(cfg['nodes'])
    assert out['crit'].shape == ((n_levels + 1) * cfg['batch_size'], 1)
    assert out['latftx']['input'].shape == (cfg['batch_size'], 3 * cfg['features'][0])
    assert out['latftx']['lvl0_emb'].shape == (
        cfg['batch_size'] * cfg['points'], cfg['features'][1] * cfg['n_heads'])
    assert out['latftx']['lvl0_pool'].shape == (
        cfg['batch_size'], cfg['nodes'][0], cfg['features'][1] * cfg['n_heads'])
    assert out['latftx']['lvl1_pool'].shape == (
        cfg['batch_size'], cfg['nodes'][1], cfg['features'][2] * cfg['n_heads'])
    assert not bool(jnp.any(jnp.isnan(out['crit'])))
    print("KERNEL_OK")
</pallas_src>

<mosaic_0001>
module attributes {stable_mosaic.version = 11 : i64} {
  func.func @_fused_forward_kernel(%arg0: memref<16x4xf32, #tpu.memory_space<vmem>>, %arg1: memref<2x2xf32, #tpu.memory_space<vmem>>, %arg2: memref<32x1280xf32, #tpu.memory_space<vmem>>, %arg3: memref<1x768xf32, #tpu.memory_space<vmem>>, %arg4: memref<2x3xf32, #tpu.memory_space<vmem>>, %arg5: memref<2x12xf32, #tpu.memory_space<vmem>>, %arg6: memref<16x16xf32, #tpu.memory_space<vmem>>, %arg7: memref<8x16xf32, #tpu.memory_space<vmem>>, %arg8: memref<8x32xf32, #tpu.memory_space<vmem>>, %arg9: memref<4x32xf32, #tpu.memory_space<vmem>>) attributes {dimension_semantics = [], scalar_prefetch = 0 : i64, scratch_operands = 0 : i64, tpu.core_type = #tpu.core_type<tc>} {
    %c0 = arith.constant 0 : index
    %c0_0 = arith.constant 0 : index
    %0 = vector.load %arg0[%c0, %c0_0] : memref<16x4xf32, #tpu.memory_space<vmem>>, vector<16x4xf32>
    %c0_1 = arith.constant 0 : index
    %c0_2 = arith.constant 0 : index
    %1 = vector.load %arg1[%c0_1, %c0_2] : memref<2x2xf32, #tpu.memory_space<vmem>>, vector<2x2xf32>
    %c0_3 = arith.constant 0 : index
    %c0_4 = arith.constant 0 : index
    %2 = vector.load %arg2[%c0_3, %c0_4] : memref<32x1280xf32, #tpu.memory_space<vmem>>, vector<2x16xf32>
    %c0_5 = arith.constant 0 : index
    %c16 = arith.constant 16 : index
    %3 = vector.load %arg2[%c0_5, %c16] : memref<32x1280xf32, #tpu.memory_space<vmem>>, vector<16x2xf32>
    %cst = arith.constant dense<0.000000e+00> : vector<2x4xf32>
    %4 = tpu.matmul %2, %0, %cst {dimension_numbers = #tpu.dot_dimension_numbers<[1], [0], [0], [1], [0, 0, 1, 1], [], []>} : vector<2x16xf32>, vector<16x4xf32>, vector<2x4xf32> -> vector<2x4xf32>
    %cst_6 = arith.constant dense<0.000000e+00> : vector<16x4xf32>
    %5 = tpu.matmul %3, %4, %cst_6 {dimension_numbers = #tpu.dot_dimension_numbers<[1], [0], [0], [1], [0, 0, 1, 1], [], []>} : vector<16x2xf32>, vector<2x4xf32>, vector<16x4xf32> -> vector<16x4xf32>
    %6 = arith.subf %0, %5 : vector<16x4xf32>
    %7 = math.absf %6 : vector<16x4xf32>
    %cst_7 = arith.constant dense<0.000000e+00> : vector<2x4xf32>
    %8 = tpu.matmul %2, %7, %cst_7 {dimension_numbers = #tpu.dot_dimension_numbers<[1], [0], [0], [1], [0, 0, 1, 1], [], []>} : vector<2x16xf32>, vector<16x4xf32>, vector<2x4xf32> -> vector<2x4xf32>
    %9 = vector.extract_strided_slice %0 {offsets = [0, 0], sizes = [8, 4], strides = [1, 1]} : vector<16x4xf32> to vector<8x4xf32>
    %cst_8 = arith.constant dense<0xFF800000> : vector<4xf32>
    %10 = vector.multi_reduction <maximumf>, %9, %cst_8 [0] : vector<8x4xf32> to vector<4xf32>
    %11 = vector.shape_cast %10 : vector<4xf32> to vector<1x4xf32>
    %12 = vector.extract_strided_slice %0 {offsets = [8, 0], sizes = [8, 4], strides = [1, 1]} : vector<16x4xf32> to vector<8x4xf32>
    %cst_9 = arith.constant dense<0xFF800000> : vector<4xf32>
    %13 = vector.multi_reduction <maximumf>, %12, %cst_9 [0] : vector<8x4xf32> to vector<4xf32>
    %14 = vector.shape_cast %13 : vector<4xf32> to vector<1x4xf32>
    %15 = tpu.concatenate %11, %14 in 0 : vector<1x4xf32>, vector<1x4xf32> -> vector<2x4xf32>
    %16 = tpu.concatenate %4, %8, %15 in 1 : vector<2x4xf32>, vector<2x4xf32>, vector<2x4xf32> -> vector<2x12xf32>
    %c0_10 = arith.constant 0 : index
    %c0_11 = arith.constant 0 : index
    %17 = vector.load %arg5[%c0_10, %c0_11] : memref<2x12xf32, #tpu.memory_space<vmem>>, vector<2x12xf32>
    tpu.vector_store %arg5[%c0_10, %c0_11], %16 {strides = array<i32>} : memref<2x12xf32, #tpu.memory_space<vmem>>, vector<2x12xf32>,
    %c0_12 = arith.constant 0 : index
    %c602 = arith.constant 602 : index
    %18 = vector.load %arg2[%c0_12, %c602] : memref<32x1280xf32, #tpu.memory_space<vmem>>, vector<4x16xf32>
    %cst_13 = arith.constant dense<0.000000e+00> : vector<16x16xf32>
    %19 = tpu.matmul %0, %18, %cst_13 {dimension_numbers = #tpu.dot_dimension_numbers<[1], [0], [0], [1], [0, 0, 1, 1], [], []>} : vector<16x4xf32>, vector<4x16xf32>, vector<16x16xf32> -> vector<16x16xf32>
    %c0_14 = arith.constant 0 : index
    %c400 = arith.constant 400 : index
    %20 = vector.load %arg3[%c0_14, %c400] : memref<1x768xf32, #tpu.memory_space<vmem>>, vector<1x16xf32>
    %21 = vector.broadcast %20 : vector<1x16xf32> to vector<16x16xf32>
    %22 = arith.addf %19, %21 : vector<16x16xf32>
    %cst_15 = arith.constant 0.000000e+00 : f32
    %23 = vector.broadcast %cst_15 : f32 to vector<16x16xf32>
    %24 = arith.cmpf oge, %22, %23 : vector<16x16xf32>
    %cst_16 = arith.constant 0.00999999977 : f32
    %25 = vector.broadcast %cst_16 : f32 to vector<16x16xf32>
    %26 = arith.mulf %25, %22 : vector<16x16xf32>
    %27 = arith.select %24, %22, %26 : vector<16x16xi1>, vector<16x16xf32>
    %c0_17 = arith.constant 0 : index
    %c618 = arith.constant 618 : index
    %28 = vector.load %arg2[%c0_17, %c618] : memref<32x1280xf32, #tpu.memory_space<vmem>>, vector<16x4xf32>
    %cst_18 = arith.constant dense<0.000000e+00> : vector<16x4xf32>
    %29 = tpu.matmul %27, %28, %cst_18 {dimension_numbers = #tpu.dot_dimension_numbers<[1], [0], [0], [1], [0, 0, 1, 1], [], []>} : vector<16x16xf32>, vector<16x4xf32>, vector<16x4xf32> -> vector<16x4xf32>
    %c0_19 = arith.constant 0 : index
    %c416 = arith.constant 416 : index
    %30 = vector.load %arg3[%c0_19, %c416] : memref<1x768xf32, #tpu.memory_space<vmem>>, vector<1x4xf32>
    %31 = vector.broadcast %30 : vector<1x4xf32> to vector<16x4xf32>
    %32 = arith.addf %29, %31 : vector<16x4xf32>
    %cst_20 = arith.constant 0.000000e+00 : f32
    %33 = vector.broadcast %cst_20 : f32 to vector<16x4xf32>
    %34 = arith.cmpf oge, %32, %33 : vector<16x4xf32>
    %cst_21 = arith.constant 0.00999999977 : f32
    %35 = vector.broadcast %cst_21 : f32 to vector<16x4xf32>
    %36 = arith.mulf %35, %32 : vector<16x4xf32>
    %37 = arith.select %34, %32, %36 : vector<16x4xi1>, vector<16x4xf32>
    %cst_22 = arith.constant dense<0.000000e+00> : vector<2x4xf32>
    %38 = tpu.matmul %2, %37, %cst_22 {dimension_numbers = #tpu.dot_dimension_numbers<[1], [0], [0], [1], [0, 0, 1, 1], [], []>} : vector<2x16xf32>, vector<16x4xf32>, vector<2x4xf32> -> vector<2x4xf32>
    %cst_23 = arith.constant dense<0.000000e+00> : vector<16x4xf32>
    %39 = tpu.matmul %3, %38, %cst_23 {dimension_numbers = #tpu.dot_dimension_numbers<[1], [0], [0], [1], [0, 0, 1, 1], [], []>} : vector<16x2xf32>, vector<2x4xf32>, vector<16x4xf32> -> vector<16x4xf32>
    %40 = arith.subf %37, %39 : vector<16x4xf32>
    %41 = math.absf %40 : vector<16x4xf32>
    %cst_24 = arith.constant dense<0.000000e+00> : vector<2x4xf32>
    %42 = tpu.matmul %2, %41, %cst_24 {dimension_numbers = #tpu.dot_dimension_numbers<[1], [0], [0], [1], [0, 0, 1, 1], [], []>} : vector<2x16xf32>, vector<16x4xf32>, vector<2x4xf32> -> vector<2x4xf32>
    %43 = vector.extract_strided_slice %37 {offsets = [0, 0], sizes = [8, 4], strides = [1, 1]} : vector<16x4xf32> to vector<8x4xf32>
    %cst_25 = arith.constant dense<0xFF800000> : vector<4xf32>
    %44 = vector.multi_reduction <maximumf>, %43, %cst_25 [0] : vector<8x4xf32> to vector<4xf32>
    %45 = vector.shape_cast %44 : vector<4xf32> to vector<1x4xf32>
    %46 = vector.extract_strided_slice %37 {offsets = [8, 0], sizes = [8, 4], strides = [1, 1]} : vector<16x4xf32> to vector<8x4xf32>
    %cst_26 = arith.constant dense<0xFF800000> : vector<4xf32>
    %47 = vector.multi_reduction <maximumf>, %46, %cst_26 [0] : vector<8x4xf32> to vector<4xf32>
    %48 = vector.shape_cast %47 : vector<4xf32> to vector<1x4xf32>
    %49 = tpu.concatenate %45, %48 in 0 : vector<1x4xf32>, vector<1x4xf32> -> vector<2x4xf32>
    %c0_27 = arith.constant 0 : index
    %c622 = arith.constant 622 : index
    %50 = vector.load %arg2[%c0_27, %c622] : memref<32x1280xf32, #tpu.memory_space<vmem>>, vector<4x16xf32>
    %cst_28 = arith.constant dense<0.000000e+00> : vector<2x16xf32>
    %51 = tpu.matmul %38, %50, %cst_28 {dimension_numbers = #tpu.dot_dimension_numbers<[1], [0], [0], [1], [0, 0, 1, 1], [], []>} : vector<2x4xf32>, vector<4x16xf32>, vector<2x16xf32> -> vector<2x16xf32>
    %c0_29 = arith.constant 0 : index
    %c638 = arith.constant 638 : index
    %52 = vector.load %arg2[%c0_29, %c638] : memref<32x1280xf32, #tpu.memory_space<vmem>>, vector<4x16xf32>
    %cst_30 = arith.constant dense<0.000000e+00> : vector<2x16xf32>
    %53 = tpu.matmul %42, %52, %cst_30 {dimension_numbers = #tpu.dot_dimension_numbers<[1], [0], [0], [1], [0, 0, 1, 1], [], []>} : vector<2x4xf32>, vector<4x16xf32>, vector<2x16xf32> -> vector<2x16xf32>
    %54 = arith.addf %51, %53 : vector<2x16xf32>
    %c0_31 = arith.constant 0 : index
    %c654 = arith.constant 654 : index
    %55 = vector.load %arg2[%c0_31, %c654] : memref<32x1280xf32, #tpu.memory_space<vmem>>, vector<4x16xf32>
    %cst_32 = arith.constant dense<0.000000e+00> : vector<2x16xf32>
    %56 = tpu.matmul %49, %55, %cst_32 {dimension_numbers = #tpu.dot_dimension_numbers<[1], [0], [0], [1], [0, 0, 1, 1], [], []>} : vector<2x4xf32>, vector<4x16xf32>, vector<2x16xf32> -> vector<2x16xf32>
    %57 = arith.addf %54, %56 : vector<2x16xf32>
    %c0_33 = arith.constant 0 : index
    %c420 = arith.constant 420 : index
    %58 = vector.load %arg3[%c0_33, %c420] : memref<1x768xf32, #tpu.memory_space<vmem>>, vector<1x16xf32>
    %59 = vector.broadcast %58 : vector<1x16xf32> to vector<2x16xf32>
    %60 = arith.addf %57, %59 : vector<2x16xf32>
    %cst_34 = arith.constant 0.000000e+00 : f32
    %61 = vector.broadcast %cst_34 : f32 to vector<2x16xf32>
    %62 = arith.cmpf oge, %60, %61 : vector<2x16xf32>
    %cst_35 = arith.constant 0.00999999977 : f32
    %63 = vector.broadcast %cst_35 : f32 to vector<2x16xf32>
    %64 = arith.mulf %63, %60 : vector<2x16xf32>
    %65 = arith.select %62, %60, %64 : vector<2x16xi1>, vector<2x16xf32>
    %c0_36 = arith.constant 0 : index
    %c670 = arith.constant 670 : index
    %66 = vector.load %arg2[%c0_36, %c670] : memref<32x1280xf32, #tpu.memory_space<vmem>>, vector<16x4xf32>
    %cst_37 = arith.constant dense<0.000000e+00> : vector<2x4xf32>
    %67 = tpu.matmul %65, %66, %cst_37 {dimension_numbers = #tpu.dot_dimension_numbers<[1], [0], [0], [1], [0, 0, 1, 1], [], []>} : vector<2x16xf32>, vector<16x4xf32>, vector<2x4xf32> -> vector<2x4xf32>
    %c0_38 = arith.constant 0 : index
    %c436 = arith.constant 436 : index
    %68 = vector.load %arg3[%c0_38, %c436] : memref<1x768xf32, #tpu.memory_space<vmem>>, vector<1x4xf32>
    %69 = vector.broadcast %68 : vector<1x4xf32> to vector<2x4xf32>
    %70 = arith.addf %67, %69 : vector<2x4xf32>
    %cst_39 = arith.constant 0.000000e+00 : f32
    %71 = vector.broadcast %cst_39 : f32 to vector<2x4xf32>
    %72 = arith.cmpf oge, %70, %71 : vector<2x4xf32>
    %cst_40 = arith.constant 0.00999999977 : f32
    %73 = vector.broadcast %cst_40 : f32 to vector<2x4xf32>
    %74 = arith.mulf %73, %70 : vector<2x4xf32>
    %75 = arith.select %72, %70, %74 : vector<2x4xi1>, vector<2x4xf32>
    %c0_41 = arith.constant 0 : index
    %c690 = arith.constant 690 : index
    %76 = vector.load %arg2[%c0_41, %c690] : memref<32x1280xf32, #tpu.memory_space<vmem>>, vector<4x16xf32>
    %cst_42 = arith.constant dense<0.000000e+00> : vector<2x16xf32>
    %77 = tpu.matmul %75, %76, %cst_42 {dimension_numbers = #tpu.dot_dimension_numbers<[1], [0], [0], [1], [0, 0, 1, 1], [], []>} : vector<2x4xf32>, vector<4x16xf32>, vector<2x16xf32> -> vector<2x16xf32>
    %cst_43 = arith.constant dense<0.000000e+00> : vector<16x16xf32>
    %78 = tpu.matmul %3, %77, %cst_43 {dimension_numbers = #tpu.dot_dimension_numbers<[1], [0], [0], [1], [0, 0, 1, 1], [], []>} : vector<16x2xf32>, vector<2x16xf32>, vector<16x16xf32> -> vector<16x16xf32>
    %c0_44 = arith.constant 0 : index
    %c674 = arith.constant 674 : index
    %79 = vector.load %arg2[%c0_44, %c674] : memref<32x1280xf32, #tpu.memory_space<vmem>>, vector<4x16xf32>
    %cst_45 = arith.constant dense<0.000000e+00> : vector<16x16xf32>
    %80 = tpu.matmul %37, %79, %cst_45 {dimension_numbers = #tpu.dot_dimension_numbers<[1], [0], [0], [1], [0, 0, 1, 1], [], []>} : vector<16x4xf32>, vector<4x16xf32>, vector<16x16xf32> -> vector<16x16xf32>
    %81 = arith.addf %80, %78 : vector<16x16xf32>
    %c0_46 = arith.constant 0 : index
    %c440 = arith.constant 440 : index
    %82 = vector.load %arg3[%c0_46, %c440] : memref<1x768xf32, #tpu.memory_space<vmem>>, vector<1x16xf32>
    %83 = vector.broadcast %82 : vector<1x16xf32> to vector<16x16xf32>
    %84 = arith.addf %81, %83 : vector<16x16xf32>
    %cst_47 = arith.constant 0.000000e+00 : f32
    %85 = vector.broadcast %cst_47 : f32 to vector<16x16xf32>
    %86 = arith.cmpf oge, %84, %85 : vector<16x16xf32>
    %cst_48 = arith.constant 0.00999999977 : f32
    %87 = vector.broadcast %cst_48 : f32 to vector<16x16xf32>
    %88 = arith.mulf %87, %84 : vector<16x16xf32>
    %89 = arith.select %86, %84, %88 : vector<16x16xi1>, vector<16x16xf32>
    %c0_49 = arith.constant 0 : index
    %c706 = arith.constant 706 : index
    %90 = vector.load %arg2[%c0_49, %c706] : memref<32x1280xf32, #tpu.memory_space<vmem>>, vector<16x4xf32>
    %cst_50 = arith.constant dense<0.000000e+00> : vector<16x4xf32>
    %91 = tpu.matmul %89, %90, %cst_50 {dimension_numbers = #tpu.dot_dimension_numbers<[1], [0], [0], [1], [0, 0, 1, 1], [], []>} : vector<16x16xf32>, vector<16x4xf32>, vector<16x4xf32> -> vector<16x4xf32>
    %c0_51 = arith.constant 0 : index
    %c456 = arith.constant 456 : index
    %92 = vector.load %arg3[%c0_51, %c456] : memref<1x768xf32, #tpu.memory_space<vmem>>, vector<1x4xf32>
    %93 = vector.broadcast %92 : vector<1x4xf32> to vector<16x4xf32>
    %94 = arith.addf %91, %93 : vector<16x4xf32>
    %95 = arith.addf %0, %94 : vector<16x4xf32>
    %cst_52 = arith.constant dense<0.000000e+00> : vector<2x4xf32>
    %96 = tpu.matmul %2, %95, %cst_52 {dimension_numbers = #tpu.dot_dimension_numbers<[1], [0], [0], [1], [0, 0, 1, 1], [], []>} : vector<2x16xf32>, vector<16x4xf32>, vector<2x4xf32> -> vector<2x4xf32>
    %cst_53 = arith.constant dense<0.000000e+00> : vector<16x4xf32>
    %97 = tpu.matmul %3, %96, %cst_53 {dimension_numbers = #tpu.dot_dimension_numbers<[1], [0], [0], [1], [0, 0, 1, 1], [], []>} : vector<16x2xf32>, vector<2x4xf32>, vector<16x4xf32> -> vector<16x4xf32>
    %98 = arith.subf %95, %97 : vector<16x4xf32>
    %99 = math.absf %98 : vector<16x4xf32>
    %cst_54 = arith.constant dense<0.000000e+00> : vector<2x4xf32>
    %100 = tpu.matmul %2, %99, %cst_54 {dimension_numbers = #tpu.dot_dimension_numbers<[1], [0], [0], [1], [0, 0, 1, 1], [], []>} : vector<2x16xf32>, vector<16x4xf32>, vector<2x4xf32> -> vector<2x4xf32>
    %101 = vector.extract_strided_slice %95 {offsets = [0, 0], sizes = [8, 4], strides = [1, 1]} : vector<16x4xf32> to vector<8x4xf32>
    %cst_55 = arith.constant dense<0xFF800000> : vector<4xf32>
    %102 = vector.multi_reduction <maximumf>, %101, %cst_55 [0] : vector<8x4xf32> to vector<4xf32>
    %103 = vector.shape_cast %102 : vector<4xf32> to vector<1x4xf32>
    %104 = vector.extract_strided_slice %95 {offsets = [8, 0], sizes = [8, 4], strides = [1, 1]} : vector<16x4xf32> to vector<8x4xf32>
    %cst_56 = arith.constant dense<0xFF800000> : vector<4xf32>
    %105 = vector.multi_reduction <maximumf>, %104, %cst_56 [0] : vector<8x4xf32> to vector<4xf32>
    %106 = vector.shape_cast %105 : vector<4xf32> to vector<1x4xf32>
    %107 = tpu.concatenate %103, %106 in 0 : vector<1x4xf32>, vector<1x4xf32> -> vector<2x4xf32>
    %c0_57 = arith.constant 0 : index
    %c710 = arith.constant 710 : index
    %108 = vector.load %arg2[%c0_57, %c710] : memref<32x1280xf32, #tpu.memory_space<vmem>>, vector<4x16xf32>
    %cst_58 = arith.constant dense<0.000000e+00> : vector<2x16xf32>
    %109 = tpu.matmul %96, %108, %cst_58 {dimension_numbers = #tpu.dot_dimension_numbers<[1], [0], [0], [1], [0, 0, 1, 1], [], []>} : vector<2x4xf32>, vector<4x16xf32>, vector<2x16xf32> -> vector<2x16xf32>
    %c0_59 = arith.constant 0 : index
    %c726 = arith.constant 726 : index
    %110 = vector.load %arg2[%c0_59, %c726] : memref<32x1280xf32, #tpu.memory_space<vmem>>, vector<4x16xf32>
    %cst_60 = arith.constant dense<0.000000e+00> : vector<2x16xf32>
    %111 = tpu.matmul %100, %110, %cst_60 {dimension_numbers = #tpu.dot_dimension_numbers<[1], [0], [0], [1], [0, 0, 1, 1], [], []>} : vector<2x4xf32>, vector<4x16xf32>, vector<2x16xf32> -> vector<2x16xf32>
    %112 = arith.addf %109, %111 : vector<2x16xf32>
    %c0_61 = arith.constant 0 : index
    %c742 = arith.constant 742 : index
    %113 = vector.load %arg2[%c0_61, %c742] : memref<32x1280xf32, #tpu.memory_space<vmem>>, vector<4x16xf32>
    %cst_62 = arith.constant dense<0.000000e+00> : vector<2x16xf32>
    %114 = tpu.matmul %107, %113, %cst_62 {dimension_numbers = #tpu.dot_dimension_numbers<[1], [0], [0], [1], [0, 0, 1, 1], [], []>} : vector<2x4xf32>, vector<4x16xf32>, vector<2x16xf32> -> vector<2x16xf32>
    %115 = arith.addf %112, %114 : vector<2x16xf32>
    %c0_63 = arith.constant 0 : index
    %c758 = arith.constant 758 : index
    %116 = vector.load %arg2[%c0_63, %c758] : memref<32x1280xf32, #tpu.memory_space<vmem>>, vector<2x16xf32>
    %cst_64 = arith.constant dense<0.000000e+00> : vector<2x16xf32>
    %117 = tpu.matmul %1, %116, %cst_64 {dimension_numbers = #tpu.dot_dimension_numbers<[1], [0], [0], [1], [0, 0, 1, 1], [], []>} : vector<2x2xf32>, vector<2x16xf32>, vector<2x16xf32> -> vector<2x16xf32>
    %118 = arith.addf %115, %117 : vector<2x16xf32>
    %c0_65 = arith.constant 0 : index
    %c460 = arith.constant 460 : index
    %119 = vector.load %arg3[%c0_65, %c460] : memref<1x768xf32, #tpu.memory_space<vmem>>, vector<1x16xf32>
    %120 = vector.broadcast %119 : vector<1x16xf32> to vector<2x16xf32>
    %121 = arith.addf %118, %120 : vector<2x16xf32>
    %cst_66 = arith.constant 0.000000e+00 : f32
    %122 = vector.broadcast %cst_66 : f32 to vector<2x16xf32>
    %123 = arith.cmpf oge, %121, %122 : vector<2x16xf32>
    %cst_67 = arith.constant 0.00999999977 : f32
    %124 = vector.broadcast %cst_67 : f32 to vector<2x16xf32>
    %125 = arith.mulf %124, %121 : vector<2x16xf32>
    %126 = arith.select %123, %121, %125 : vector<2x16xi1>, vector<2x16xf32>
    %c0_68 = arith.constant 0 : index
    %c774 = arith.constant 774 : index
    %127 = vector.load %arg2[%c0_68, %c774] : memref<32x1280xf32, #tpu.memory_space<vmem>>, vector<16x1xf32>
    %cst_69 = arith.constant dense<0.000000e+00> : vector<2x1xf32>
    %128 = tpu.matmul %126, %127, %cst_69 {dimension_numbers = #tpu.dot_dimension_numbers<[1], [0], [0], [1], [0, 0, 1, 1], [], []>} : vector<2x16xf32>, vector<16x1xf32>, vector<2x1xf32> -> vector<2x1xf32>
    %c0_70 = arith.constant 0 : index
    %c476 = arith.constant 476 : index
    %129 = vector.load %arg3[%c0_70, %c476] : memref<1x768xf32, #tpu.memory_space<vmem>>, vector<1x1xf32>
    %130 = vector.broadcast %129 : vector<1x1xf32> to vector<2x1xf32>
    %131 = arith.addf %128, %130 : vector<2x1xf32>
    %c0_71 = arith.constant 0 : index
    %c34 = arith.constant 34 : index
    %132 = vector.load %arg2[%c0_71, %c34] : memref<32x1280xf32, #tpu.memory_space<vmem>>, vector<4x16xf32>
    %cst_72 = arith.constant dense<0.000000e+00> : vector<16x16xf32>
    %133 = tpu.matmul %0, %132, %cst_72 {dimension_numbers = #tpu.dot_dimension_numbers<[1], [0], [0], [1], [0, 0, 1, 1], [], []>} : vector<16x4xf32>, vector<4x16xf32>, vector<16x16xf32> -> vector<16x16xf32>
    %c0_73 = arith.constant 0 : index
    %c0_74 = arith.constant 0 : index
    %134 = vector.load %arg3[%c0_73, %c0_74] : memref<1x768xf32, #tpu.memory_space<vmem>>, vector<1x16xf32>
    %135 = vector.broadcast %134 : vector<1x16xf32> to vector<16x16xf32>
    %136 = arith.addf %133, %135 : vector<16x16xf32>
    %cst_75 = arith.constant 0.000000e+00 : f32
    %137 = vector.broadcast %cst_75 : f32 to vector<16x16xf32>
    %138 = arith.cmpf oge, %136, %137 : vector<16x16xf32>
    %cst_76 = arith.constant 0.00999999977 : f32
    %139 = vector.broadcast %cst_76 : f32 to vector<16x16xf32>
    %140 = arith.mulf %139, %136 : vector<16x16xf32>
    %141 = arith.select %138, %136, %140 : vector<16x16xi1>, vector<16x16xf32>
    %c0_77 = arith.constant 0 : index
    %c50 = arith.constant 50 : index
    %142 = vector.load %arg2[%c0_77, %c50] : memref<32x1280xf32, #tpu.memory_space<vmem>>, vector<16x16xf32>
    %cst_78 = arith.constant dense<0.000000e+00> : vector<16x16xf32>
    %143 = tpu.matmul %141, %142, %cst_78 {dimension_numbers = #tpu.dot_dimension_numbers<[1], [0], [0], [1], [0, 0, 1, 1], [], []>} : vector<16x16xf32>, vector<16x16xf32>, vector<16x16xf32> -> vector<16x16xf32>
    %c0_79 = arith.constant 0 : index
    %c16_80 = arith.constant 16 : index
    %144 = vector.load %arg3[%c0_79, %c16_80] : memref<1x768xf32, #tpu.memory_space<vmem>>, vector<1x16xf32>
    %145 = vector.broadcast %144 : vector<1x16xf32> to vector<16x16xf32>
    %146 = arith.addf %143, %145 : vector<16x16xf32>
    %c0_81 = arith.constant 0 : index
    %c66 = arith.constant 66 : index
    %147 = vector.load %arg2[%c0_81, %c66] : memref<32x1280xf32, #tpu.memory_space<vmem>>, vector<16x16xf32>
    %cst_82 = arith.constant dense<0.000000e+00> : vector<16x16xf32>
    %148 = tpu.matmul %146, %147, %cst_82 {dimension_numbers = #tpu.dot_dimension_numbers<[1], [0], [0], [1], [0, 0, 1, 1], [], []>} : vector<16x16xf32>, vector<16x16xf32>, vector<16x16xf32> -> vector<16x16xf32>
    %c0_83 = arith.constant 0 : index
    %c32 = arith.constant 32 : index
    %149 = vector.load %arg3[%c0_83, %c32] : memref<1x768xf32, #tpu.memory_space<vmem>>, vector<1x16xf32>
    %150 = vector.broadcast %149 : vector<1x16xf32> to vector<16x16xf32>
    %151 = arith.addf %148, %150 : vector<16x16xf32>
    %cst_84 = arith.constant 0.000000e+00 : f32
    %152 = vector.broadcast %cst_84 : f32 to vector<16x16xf32>
    %153 = arith.cmpf oge, %151, %152 : vector<16x16xf32>
    %cst_85 = arith.constant 0.00999999977 : f32
    %154 = vector.broadcast %cst_85 : f32 to vector<16x16xf32>
    %155 = arith.mulf %154, %151 : vector<16x16xf32>
    %156 = arith.select %153, %151, %155 : vector<16x16xi1>, vector<16x16xf32>
    %c0_86 = arith.constant 0 : index
    %c82 = arith.constant 82 : index
    %157 = vector.load %arg2[%c0_86, %c82] : memref<32x1280xf32, #tpu.memory_space<vmem>>, vector<16x8xf32>
    %cst_87 = arith.constant dense<0.000000e+00> : vector<16x8xf32>
    %158 = tpu.matmul %156, %157, %cst_87 {dimension_numbers = #tpu.dot_dimension_numbers<[1], [0], [0], [1], [0, 0, 1, 1], [], []>} : vector<16x16xf32>, vector<16x8xf32>, vector<16x8xf32> -> vector<16x8xf32>
    %c0_88 = arith.constant 0 : index
    %c48 = arith.constant 48 : index
    %159 = vector.load %arg3[%c0_88, %c48] : memref<1x768xf32, #tpu.memory_space<vmem>>, vector<1x8xf32>
    %160 = vector.broadcast %159 : vector<1x8xf32> to vector<16x8xf32>
    %161 = arith.addf %158, %160 : vector<16x8xf32>
    %cst_89 = arith.constant 0.000000e+00 : f32
    %162 = vector.broadcast %cst_89 : f32 to vector<16x8xf32>
    %163 = arith.cmpf oge, %161, %162 : vector<16x8xf32>
    %cst_90 = arith.constant 0.00999999977 : f32
    %164 = vector.broadcast %cst_90 : f32 to vector<16x8xf32>
    %165 = arith.mulf %164, %161 : vector<16x8xf32>
    %166 = arith.select %163, %161, %165 : vector<16x8xi1>, vector<16x8xf32>
    %cst_91 = arith.constant dense<0.000000e+00> : vector<2x8xf32>
    %167 = tpu.matmul %2, %166, %cst_91 {dimension_numbers = #tpu.dot_dimension_numbers<[1], [0], [0], [1], [0, 0, 1, 1], [], []>} : vector<2x16xf32>, vector<16x8xf32>, vector<2x8xf32> -> vector<2x8xf32>
    %cst_92 = arith.constant dense<0.000000e+00> : vector<16x8xf32>
    %168 = tpu.matmul %3, %167, %cst_92 {dimension_numbers = #tpu.dot_dimension_numbers<[1], [0], [0], [1], [0, 0, 1, 1], [], []>} : vector<16x2xf32>, vector<2x8xf32>, vector<16x8xf32> -> vector<16x8xf32>
    %169 = arith.subf %166, %168 : vector<16x8xf32>
    %170 = math.absf %169 : vector<16x8xf32>
    %cst_93 = arith.constant dense<0.000000e+00> : vector<2x8xf32>
    %171 = tpu.matmul %2, %170, %cst_93 {dimension_numbers = #tpu.dot_dimension_numbers<[1], [0], [0], [1], [0, 0, 1, 1], [], []>} : vector<2x16xf32>, vector<16x8xf32>, vector<2x8xf32> -> vector<2x8xf32>
    %172 = vector.extract_strided_slice %166 {offsets = [0, 0], sizes = [8, 8], strides = [1, 1]} : vector<16x8xf32> to vector<8x8xf32>
    %cst_94 = arith.constant dense<0xFF800000> : vector<8xf32>
    %173 = vector.multi_reduction <maximumf>, %172, %cst_94 [0] : vector<8x8xf32> to vector<8xf32>
    %174 = vector.shape_cast %173 : vector<8xf32> to vector<1x8xf32>
    %175 = vector.extract_strided_slice %166 {offsets = [8, 0], sizes = [8, 8], strides = [1, 1]} : vector<16x8xf32> to vector<8x8xf32>
    %cst_95 = arith.constant dense<0xFF800000> : vector<8xf32>
    %176 = vector.multi_reduction <maximumf>, %175, %cst_95 [0] : vector<8x8xf32> to vector<8xf32>
    %177 = vector.shape_cast %176 : vector<8xf32> to vector<1x8xf32>
    %178 = tpu.concatenate %174, %177 in 0 : vector<1x8xf32>, vector<1x8xf32> -> vector<2x8xf32>
    %c0_96 = arith.constant 0 : index
    %c90 = arith.constant 90 : index
    %179 = vector.load %arg2[%c0_96, %c90] : memref<32x1280xf32, #tpu.memory_space<vmem>>, vector<8x16xf32>
    %cst_97 = arith.constant dense<0.000000e+00> : vector<2x16xf32>
    %180 = tpu.matmul %167, %179, %cst_97 {dimension_numbers = #tpu.dot_dimension_numbers<[1], [0], [0], [1], [0, 0, 1, 1], [], []>} : vector<2x8xf32>, vector<8x16xf32>, vector<2x16xf32> -> vector<2x16xf32>
    %c0_98 = arith.constant 0 : index
    %c106 = arith.constant 106 : index
    %181 = vector.load %arg2[%c0_98, %c106] : memref<32x1280xf32, #tpu.memory_space<vmem>>, vector<8x16xf32>
    %cst_99 = arith.constant dense<0.000000e+00> : vector<2x16xf32>
    %182 = tpu.matmul %171, %181, %cst_99 {dimension_numbers = #tpu.dot_dimension_numbers<[1], [0], [0], [1], [0, 0, 1, 1], [], []>} : vector<2x8xf32>, vector<8x16xf32>, vector<2x16xf32> -> vector<2x16xf32>
    %183 = arith.addf %180, %182 : vector<2x16xf32>
    %c0_100 = arith.constant 0 : index
    %c122 = arith.constant 122 : index
    %184 = vector.load %arg2[%c0_100, %c122] : memref<32x1280xf32, #tpu.memory_space<vmem>>, vector<8x16xf32>
    %cst_101 = arith.constant dense<0.000000e+00> : vector<2x16xf32>
    %185 = tpu.matmul %178, %184, %cst_101 {dimension_numbers = #tpu.dot_dimension_numbers<[1], [0], [0], [1], [0, 0, 1, 1], [], []>} : vector<2x8xf32>, vector<8x16xf32>, vector<2x16xf32> -> vector<2x16xf32>
    %186 = arith.addf %183, %185 : vector<2x16xf32>
    %c0_102 = arith.constant 0 : index
    %c56 = arith.constant 56 : index
    %187 = vector.load %arg3[%c0_102, %c56] : memref<1x768xf32, #tpu.memory_space<vmem>>, vector<1x16xf32>
    %188 = vector.broadcast %187 : vector<1x16xf32> to vector<2x16xf32>
    %189 = arith.addf %186, %188 : vector<2x16xf32>
    %cst_103 = arith.constant 0.000000e+00 : f32
    %190 = vector.broadcast %cst_103 : f32 to vector<2x16xf32>
    %191 = arith.cmpf oge, %189, %190 : vector<2x16xf32>
    %cst_104 = arith.constant 0.00999999977 : f32
    %192 = vector.broadcast %cst_104 : f32 to vector<2x16xf32>
    %193 = arith.mulf %192, %189 : vector<2x16xf32>
    %194 = arith.select %191, %189, %193 : vector<2x16xi1>, vector<2x16xf32>
    %c0_105 = arith.constant 0 : index
    %c138 = arith.constant 138 : index
    %195 = vector.load %arg2[%c0_105, %c138] : memref<32x1280xf32, #tpu.memory_space<vmem>>, vector<16x8xf32>
    %cst_106 = arith.constant dense<0.000000e+00> : vector<2x8xf32>
    %196 = tpu.matmul %194, %195, %cst_106 {dimension_numbers = #tpu.dot_dimension_numbers<[1], [0], [0], [1], [0, 0, 1, 1], [], []>} : vector<2x16xf32>, vector<16x8xf32>, vector<2x8xf32> -> vector<2x8xf32>
    %c0_107 = arith.constant 0 : index
    %c72 = arith.constant 72 : index
    %197 = vector.load %arg3[%c0_107, %c72] : memref<1x768xf32, #tpu.memory_space<vmem>>, vector<1x8xf32>
    %198 = vector.broadcast %197 : vector<1x8xf32> to vector<2x8xf32>
    %199 = arith.addf %196, %198 : vector<2x8xf32>
    %cst_108 = arith.constant 0.000000e+00 : f32
    %200 = vector.broadcast %cst_108 : f32 to vector<2x8xf32>
    %201 = arith.cmpf oge, %199, %200 : vector<2x8xf32>
    %cst_109 = arith.constant 0.00999999977 : f32
    %202 = vector.broadcast %cst_109 : f32 to vector<2x8xf32>
    %203 = arith.mulf %202, %199 : vector<2x8xf32>
    %204 = arith.select %201, %199, %203 : vector<2x8xi1>, vector<2x8xf32>
    %c0_110 = arith.constant 0 : index
    %c162 = arith.constant 162 : index
    %205 = vector.load %arg2[%c0_110, %c162] : memref<32x1280xf32, #tpu.memory_space<vmem>>, vector<8x16xf32>
    %cst_111 = arith.constant dense<0.000000e+00> : vector<2x16xf32>
    %206 = tpu.matmul %204, %205, %cst_111 {dimension_numbers = #tpu.dot_dimension_numbers<[1], [0], [0], [1], [0, 0, 1, 1], [], []>} : vector<2x8xf32>, vector<8x16xf32>, vector<2x16xf32> -> vector<2x16xf32>
    %cst_112 = arith.constant dense<0.000000e+00> : vector<16x16xf32>
    %207 = tpu.matmul %3, %206, %cst_112 {dimension_numbers = #tpu.dot_dimension_numbers<[1], [0], [0], [1], [0, 0, 1, 1], [], []>} : vector<16x2xf32>, vector<2x16xf32>, vector<16x16xf32> -> vector<16x16xf32>
    %c0_113 = arith.constant 0 : index
    %c146 = arith.constant 146 : index
    %208 = vector.load %arg2[%c0_113, %c146] : memref<32x1280xf32, #tpu.memory_space<vmem>>, vector<8x16xf32>
    %cst_114 = arith.constant dense<0.000000e+00> : vector<16x16xf32>
    %209 = tpu.matmul %166, %208, %cst_114 {dimension_numbers = #tpu.dot_dimension_numbers<[1], [0], [0], [1], [0, 0, 1, 1], [], []>} : vector<16x8xf32>, vector<8x16xf32>, vector<16x16xf32> -> vector<16x16xf32>
    %210 = arith.addf %209, %207 : vector<16x16xf32>
    %c0_115 = arith.constant 0 : index
    %c80 = arith.constant 80 : index
    %211 = vector.load %arg3[%c0_115, %c80] : memref<1x768xf32, #tpu.memory_space<vmem>>, vector<1x16xf32>
    %212 = vector.broadcast %211 : vector<1x16xf32> to vector<16x16xf32>
    %213 = arith.addf %210, %212 : vector<16x16xf32>
    %cst_116 = arith.constant 0.000000e+00 : f32
    %214 = vector.broadcast %cst_116 : f32 to vector<16x16xf32>
    %215 = arith.cmpf oge, %213, %214 : vector<16x16xf32>
    %cst_117 = arith.constant 0.00999999977 : f32
    %216 = vector.broadcast %cst_117 : f32 to vector<16x16xf32>
    %217 = arith.mulf %216, %213 : vector<16x16xf32>
    %218 = arith.select %215, %213, %217 : vector<16x16xi1>, vector<16x16xf32>
    %c0_118 = arith.constant 0 : index
    %c178 = arith.constant 178 : index
    %219 = vector.load %arg2[%c0_118, %c178] : memref<32x1280xf32, #tpu.memory_space<vmem>>, vector<16x16xf32>
    %cst_119 = arith.constant dense<0.000000e+00> : vector<16x16xf32>
    %220 = tpu.matmul %218, %219, %cst_119 {dimension_numbers = #tpu.dot_dimension_numbers<[1], [0], [0], [1], [0, 0, 1, 1], [], []>} : vector<16x16xf32>, vector<16x16xf32>, vector<16x16xf32> -> vector<16x16xf32>
    %c0_120 = arith.constant 0 : index
    %c96 = arith.constant 96 : index
    %221 = vector.load %arg3[%c0_120, %c96] : memref<1x768xf32, #tpu.memory_space<vmem>>, vector<1x16xf32>
    %222 = vector.broadcast %221 : vector<1x16xf32> to vector<16x16xf32>
    %223 = arith.addf %220, %222 : vector<16x16xf32>
    %224 = arith.addf %146, %223 : vector<16x16xf32>
    %c0_121 = arith.constant 0 : index
    %c0_122 = arith.constant 0 : index
    %225 = vector.load %arg6[%c0_121, %c0_122] : memref<16x16xf32, #tpu.memory_space<vmem>>, vector<16x16xf32>
    tpu.vector_store %arg6[%c0_121, %c0_122], %224 {strides = array<i32>} : memref<16x16xf32, #tpu.memory_space<vmem>>, vector<16x16xf32>,
    %c0_123 = arith.constant 0 : index
    %c210 = arith.constant 210 : index
    %226 = vector.load %arg2[%c0_123, %c210] : memref<32x1280xf32, #tpu.memory_space<vmem>>, vector<16x16xf32>
    %cst_124 = arith.constant dense<0.000000e+00> : vector<16x16xf32>
    %227 = tpu.matmul %224, %226, %cst_124 {dimension_numbers = #tpu.dot_dimension_numbers<[1], [0], [0], [1], [0, 0, 1, 1], [], []>} : vector<16x16xf32>, vector<16x16xf32>, vector<16x16xf32> -> vector<16x16xf32>
    %c0_125 = arith.constant 0 : index
    %c112 = arith.constant 112 : index
    %228 = vector.load %arg3[%c0_125, %c112] : memref<1x768xf32, #tpu.memory_space<vmem>>, vector<1x16xf32>
    %229 = vector.broadcast %228 : vector<1x16xf32> to vector<16x16xf32>
    %230 = arith.addf %227, %229 : vector<16x16xf32>
    %c0_126 = arith.constant 0 : index
    %c226 = arith.constant 226 : index
    %231 = vector.load %arg2[%c0_126, %c226] : memref<32x1280xf32, #tpu.memory_space<vmem>>, vector<16x16xf32>
    %cst_127 = arith.constant dense<0.000000e+00> : vector<16x16xf32>
    %232 = tpu.matmul %224, %231, %cst_127 {dimension_numbers = #tpu.dot_dimension_numbers<[1], [0], [0], [1], [0, 0, 1, 1], [], []>} : vector<16x16xf32>, vector<16x16xf32>, vector<16x16xf32> -> vector<16x16xf32>
    %c0_128 = arith.constant 0 : index
    %c128 = arith.constant 128 : index
    %233 = vector.load %arg3[%c0_128, %c128] : memref<1x768xf32, #tpu.memory_space<vmem>>, vector<1x16xf32>
    %234 = vector.broadcast %233 : vector<1x16xf32> to vector<16x16xf32>
    %235 = arith.addf %232, %234 : vector<16x16xf32>
    %c0_129 = arith.constant 0 : index
    %c194 = arith.constant 194 : index
    %236 = vector.load %arg2[%c0_129, %c194] : memref<32x1280xf32, #tpu.memory_space<vmem>>, vector<8x16xf32>
    %c0_130 = arith.constant 0 : index
    %c258 = arith.constant 258 : index
    %237 = vector.load %arg2[%c0_130, %c258] : memref<32x1280xf32, #tpu.memory_space<vmem>>, vector<8x16xf32>
    %238 = vector.extract_strided_slice %236 {offsets = [0, 0], sizes = [8, 8], strides = [1, 1]} : vector<8x16xf32> to vector<8x8xf32>
    %239 = vector.extract_strided_slice %230 {offsets = [0, 0], sizes = [16, 8], strides = [1, 1]} : vector<16x16xf32> to vector<16x8xf32>
    %cst_131 = arith.constant dense<0.000000e+00> : vector<8x16xf32>
    %240 = tpu.matmul %238, %239, %cst_131 {dimension_numbers = #tpu.dot_dimension_numbers<[1], [1], [0], [0], [0, 0, 1, 0], [], []>} : vector<8x8xf32>, vector<16x8xf32>, vector<8x16xf32> -> vector<8x16xf32>
    %cst_132 = arith.constant 0.353553385 : f32
    %241 = vector.broadcast %cst_132 : f32 to vector<8x16xf32>
    %242 = arith.mulf %240, %241 : vector<8x16xf32>
    %243 = arith.addf %242, %237 : vector<8x16xf32>
    %cst_133 = arith.constant dense<0xFF800000> : vector<8xf32>
    %244 = vector.multi_reduction <maximumf>, %243, %cst_133 [1] : vector<8x16xf32> to vector<8xf32>
    %245 = vector.shape_cast %244 : vector<8xf32> to vector<8x1xf32>
    %246 = vector.broadcast %245 : vector<8x1xf32> to vector<8x16xf32>
    %247 = arith.subf %243, %246 : vector<8x16xf32>
    %248 = math.exp %247 : vector<8x16xf32>
    %cst_134 = arith.constant dense<0.000000e+00> : vector<8xf32>
    %249 = vector.multi_reduction <add>, %248, %cst_134 [1] : vector<8x16xf32> to vector<8xf32>
    %250 = vector.shape_cast %249 : vector<8xf32> to vector<8x1xf32>
    %251 = tpu.reciprocal %250 {approx = true} : vector<8x1xf32> -> vector<8x1xf32>
    %252 = vector.broadcast %251 : vector<8x1xf32> to vector<8x16xf32>
    %253 = arith.mulf %248, %252 : vector<8x16xf32>
    %254 = vector.extract_strided_slice %235 {offsets = [0, 0], sizes = [16, 8], strides = [1, 1]} : vector<16x16xf32> to vector<16x8xf32>
    %cst_135 = arith.constant dense<0.000000e+00> : vector<8x8xf32>
    %255 = tpu.matmul %253, %254, %cst_135 {dimension_numbers = #tpu.dot_dimension_numbers<[1], [0], [0], [1], [0, 0, 1, 1], [], []>} : vector<8x16xf32>, vector<16x8xf32>, vector<8x8xf32> -> vector<8x8xf32>
    %256 = vector.extract_strided_slice %236 {offsets = [0, 8], sizes = [8, 8], strides = [1, 1]} : vector<8x16xf32> to vector<8x8xf32>
    %257 = vector.extract_strided_slice %230 {offsets = [0, 8], sizes = [16, 8], strides = [1, 1]} : vector<16x16xf32> to vector<16x8xf32>
    %cst_136 = arith.constant dense<0.000000e+00> : vector<8x16xf32>
    %258 = tpu.matmul %256, %257, %cst_136 {dimension_numbers = #tpu.dot_dimension_numbers<[1], [1], [0], [0], [0, 0, 1, 0], [], []>} : vector<8x8xf32>, vector<16x8xf32>, vector<8x16xf32> -> vector<8x16xf32>
    %cst_137 = arith.constant 0.353553385 : f32
    %259 = vector.broadcast %cst_137 : f32 to vector<8x16xf32>
    %260 = arith.mulf %258, %259 : vector<8x16xf32>
    %261 = arith.addf %260, %237 : vector<8x16xf32>
    %cst_138 = arith.constant dense<0xFF800000> : vector<8xf32>
    %262 = vector.multi_reduction <maximumf>, %261, %cst_138 [1] : vector<8x16xf32> to vector<8xf32>
    %263 = vector.shape_cast %262 : vector<8xf32> to vector<8x1xf32>
    %264 = vector.broadcast %263 : vector<8x1xf32> to vector<8x16xf32>
    %265 = arith.subf %261, %264 : vector<8x16xf32>
    %266 = math.exp %265 : vector<8x16xf32>
    %cst_139 = arith.constant dense<0.000000e+00> : vector<8xf32>
    %267 = vector.multi_reduction <add>, %266, %cst_139 [1] : vector<8x16xf32> to vector<8xf32>
    %268 = vector.shape_cast %267 : vector<8xf32> to vector<8x1xf32>
    %269 = tpu.reciprocal %268 {approx = true} : vector<8x1xf32> -> vector<8x1xf32>
    %270 = vector.broadcast %269 : vector<8x1xf32> to vector<8x16xf32>
    %271 = arith.mulf %266, %270 : vector<8x16xf32>
    %272 = vector.extract_strided_slice %235 {offsets = [0, 8], sizes = [16, 8], strides = [1, 1]} : vector<16x16xf32> to vector<16x8xf32>
    %cst_140 = arith.constant dense<0.000000e+00> : vector<8x8xf32>
    %273 = tpu.matmul %271, %272, %cst_140 {dimension_numbers = #tpu.dot_dimension_numbers<[1], [0], [0], [1], [0, 0, 1, 1], [], []>} : vector<8x16xf32>, vector<16x8xf32>, vector<8x8xf32> -> vector<8x8xf32>
    %274 = tpu.concatenate %255, %273 in 1 : vector<8x8xf32>, vector<8x8xf32> -> vector<8x16xf32>
    %c0_141 = arith.constant 0 : index
    %c242 = arith.constant 242 : index
    %275 = vector.load %arg2[%c0_141, %c242] : memref<32x1280xf32, #tpu.memory_space<vmem>>, vector<16x16xf32>
    %cst_142 = arith.constant dense<0.000000e+00> : vector<8x16xf32>
    %276 = tpu.matmul %274, %275, %cst_142 {dimension_numbers = #tpu.dot_dimension_numbers<[1], [0], [0], [1], [0, 0, 1, 1], [], []>} : vector<8x16xf32>, vector<16x16xf32>, vector<8x16xf32> -> vector<8x16xf32>
    %c0_143 = arith.constant 0 : index
    %c144 = arith.constant 144 : index
    %277 = vector.load %arg3[%c0_143, %c144] : memref<1x768xf32, #tpu.memory_space<vmem>>, vector<1x16xf32>
    %278 = vector.broadcast %277 : vector<1x16xf32> to vector<8x16xf32>
    %279 = arith.addf %276, %278 : vector<8x16xf32>
    %c0_144 = arith.constant 0 : index
    %c0_145 = arith.constant 0 : index
    %280 = vector.load %arg7[%c0_144, %c0_145] : memref<8x16xf32, #tpu.memory_space<vmem>>, vector<8x16xf32>
    tpu.vector_store %arg7[%c0_144, %c0_145], %279 {strides = array<i32>} : memref<8x16xf32, #tpu.memory_space<vmem>>, vector<8x16xf32>,
    %c0_146 = arith.constant 0 : index
    %c18 = arith.constant 18 : index
    %281 = vector.load %arg2[%c0_146, %c18] : memref<32x1280xf32, #tpu.memory_space<vmem>>, vector<2x8xf32>
    %c0_147 = arith.constant 0 : index
    %c26 = arith.constant 26 : index
    %282 = vector.load %arg2[%c0_147, %c26] : memref<32x1280xf32, #tpu.memory_space<vmem>>, vector<8x2xf32>
    %c0_148 = arith.constant 0 : index
    %c775 = arith.constant 775 : index
    %283 = vector.load %arg2[%c0_148, %c775] : memref<32x1280xf32, #tpu.memory_space<vmem>>, vector<16x16xf32>
    %cst_149 = arith.constant dense<0.000000e+00> : vector<8x16xf32>
    %284 = tpu.matmul %279, %283, %cst_149 {dimension_numbers = #tpu.dot_dimension_numbers<[1], [0], [0], [1], [0, 0, 1, 1], [], []>} : vector<8x16xf32>, vector<16x16xf32>, vector<8x16xf32> -> vector<8x16xf32>
    %c0_150 = arith.constant 0 : index
    %c477 = arith.constant 477 : index
    %285 = vector.load %arg3[%c0_150, %c477] : memref<1x768xf32, #tpu.memory_space<vmem>>, vector<1x16xf32>
    %286 = vector.broadcast %285 : vector<1x16xf32> to vector<8x16xf32>
    %287 = arith.addf %284, %286 : vector<8x16xf32>
    %cst_151 = arith.constant 0.000000e+00 : f32
    %288 = vector.broadcast %cst_151 : f32 to vector<8x16xf32>
    %289 = arith.cmpf oge, %287, %288 : vector<8x16xf32>
    %cst_152 = arith.constant 0.00999999977 : f32
    %290 = vector.broadcast %cst_152 : f32 to vector<8x16xf32>
    %291 = arith.mulf %290, %287 : vector<8x16xf32>
    %292 = arith.select %289, %287, %291 : vector<8x16xi1>, vector<8x16xf32>
    %c0_153 = arith.constant 0 : index
    %c791 = arith.constant 791 : index
    %293 = vector.load %arg2[%c0_153, %c791] : memref<32x1280xf32, #tpu.memory_space<vmem>>, vector<16x16xf32>
    %cst_154 = arith.constant dense<0.000000e+00> : vector<8x16xf32>
    %294 = tpu.matmul %292, %293, %cst_154 {dimension_numbers = #tpu.dot_dimension_numbers<[1], [0], [0], [1], [0, 0, 1, 1], [], []>} : vector<8x16xf32>, vector<16x16xf32>, vector<8x16xf32> -> vector<8x16xf32>
    %c0_155 = arith.constant 0 : index
    %c493 = arith.constant 493 : index
    %295 = vector.load %arg3[%c0_155, %c493] : memref<1x768xf32, #tpu.memory_space<vmem>>, vector<1x16xf32>
    %296 = vector.broadcast %295 : vector<1x16xf32> to vector<8x16xf32>
    %297 = arith.addf %294, %296 : vector<8x16xf32>
    %cst_156 = arith.constant 0.000000e+00 : f32
    %298 = vector.broadcast %cst_156 : f32 to vector<8x16xf32>
    %299 = arith.cmpf oge, %297, %298 : vector<8x16xf32>
    %cst_157 = arith.constant 0.00999999977 : f32
    %300 = vector.broadcast %cst_157 : f32 to vector<8x16xf32>
    %301 = arith.mulf %300, %297 : vector<8x16xf32>
    %302 = arith.select %299, %297, %301 : vector<8x16xi1>, vector<8x16xf32>
    %cst_158 = arith.constant dense<0.000000e+00> : vector<2x16xf32>
    %303 = tpu.matmul %281, %302, %cst_158 {dimension_numbers = #tpu.dot_dimension_numbers<[1], [0], [0], [1], [0, 0, 1, 1], [], []>} : vector<2x8xf32>, vector<8x16xf32>, vector<2x16xf32> -> vector<2x16xf32>
    %cst_159 = arith.constant dense<0.000000e+00> : vector<8x16xf32>
    %304 = tpu.matmul %282, %303, %cst_159 {dimension_numbers = #tpu.dot_dimension_numbers<[1], [0], [0], [1], [0, 0, 1, 1], [], []>} : vector<8x2xf32>, vector<2x16xf32>, vector<8x16xf32> -> vector<8x16xf32>
    %305 = arith.subf %302, %304 : vector<8x16xf32>
    %306 = math.absf %305 : vector<8x16xf32>
    %cst_160 = arith.constant dense<0.000000e+00> : vector<2x16xf32>
    %307 = tpu.matmul %281, %306, %cst_160 {dimension_numbers = #tpu.dot_dimension_numbers<[1], [0], [0], [1], [0, 0, 1, 1], [], []>} : vector<2x8xf32>, vector<8x16xf32>, vector<2x16xf32> -> vector<2x16xf32>
    %308 = vector.extract_strided_slice %302 {offsets = [0, 0], sizes = [4, 16], strides = [1, 1]} : vector<8x16xf32> to vector<4x16xf32>
    %cst_161 = arith.constant dense<0xFF800000> : vector<16xf32>
    %309 = vector.multi_reduction <maximumf>, %308, %cst_161 [0] : vector<4x16xf32> to vector<16xf32>
    %310 = vector.shape_cast %309 : vector<16xf32> to vector<1x16xf32>
    %311 = vector.extract_strided_slice %302 {offsets = [4, 0], sizes = [4, 16], strides = [1, 1]} : vector<8x16xf32> to vector<4x16xf32>
    %cst_162 = arith.constant dense<0xFF800000> : vector<16xf32>
    %312 = vector.multi_reduction <maximumf>, %311, %cst_162 [0] : vector<4x16xf32> to vector<16xf32>
    %313 = vector.shape_cast %312 : vector<16xf32> to vector<1x16xf32>
    %314 = tpu.concatenate %310, %313 in 0 : vector<1x16xf32>, vector<1x16xf32> -> vector<2x16xf32>
    %c0_163 = arith.constant 0 : index
    %c807 = arith.constant 807 : index
    %315 = vector.load %arg2[%c0_163, %c807] : memref<32x1280xf32, #tpu.memory_space<vmem>>, vector<16x16xf32>
    %cst_164 = arith.constant dense<0.000000e+00> : vector<2x16xf32>
    %316 = tpu.matmul %303, %315, %cst_164 {dimension_numbers = #tpu.dot_dimension_numbers<[1], [0], [0], [1], [0, 0, 1, 1], [], []>} : vector<2x16xf32>, vector<16x16xf32>, vector<2x16xf32> -> vector<2x16xf32>
    %c0_165 = arith.constant 0 : index
    %c823 = arith.constant 823 : index
    %317 = vector.load %arg2[%c0_165, %c823] : memref<32x1280xf32, #tpu.memory_space<vmem>>, vector<16x16xf32>
    %cst_166 = arith.constant dense<0.000000e+00> : vector<2x16xf32>
    %318 = tpu.matmul %307, %317, %cst_166 {dimension_numbers = #tpu.dot_dimension_numbers<[1], [0], [0], [1], [0, 0, 1, 1], [], []>} : vector<2x16xf32>, vector<16x16xf32>, vector<2x16xf32> -> vector<2x16xf32>
    %319 = arith.addf %316, %318 : vector<2x16xf32>
    %c0_167 = arith.constant 0 : index
    %c839 = arith.constant 839 : index
    %320 = vector.load %arg2[%c0_167, %c839] : memref<32x1280xf32, #tpu.memory_space<vmem>>, vector<16x16xf32>
    %cst_168 = arith.constant dense<0.000000e+00> : vector<2x16xf32>
    %321 = tpu.matmul %314, %320, %cst_168 {dimension_numbers = #tpu.dot_dimension_numbers<[1], [0], [0], [1], [0, 0, 1, 1], [], []>} : vector<2x16xf32>, vector<16x16xf32>, vector<2x16xf32> -> vector<2x16xf32>
    %322 = arith.addf %319, %321 : vector<2x16xf32>
    %c0_169 = arith.constant 0 : index
    %c509 = arith.constant 509 : index
    %323 = vector.load %arg3[%c0_169, %c509] : memref<1x768xf32, #tpu.memory_space<vmem>>, vector<1x16xf32>
    %324 = vector.broadcast %323 : vector<1x16xf32> to vector<2x16xf32>
    %325 = arith.addf %322, %324 : vector<2x16xf32>
    %cst_170 = arith.constant 0.000000e+00 : f32
    %326 = vector.broadcast %cst_170 : f32 to vector<2x16xf32>
    %327 = arith.cmpf oge, %325, %326 : vector<2x16xf32>
    %cst_171 = arith.constant 0.00999999977 : f32
    %328 = vector.broadcast %cst_171 : f32 to vector<2x16xf32>
    %329 = arith.mulf %328, %325 : vector<2x16xf32>
    %330 = arith.select %327, %325, %329 : vector<2x16xi1>, vector<2x16xf32>
    %c0_172 = arith.constant 0 : index
    %c855 = arith.constant 855 : index
    %331 = vector.load %arg2[%c0_172, %c855] : memref<32x1280xf32, #tpu.memory_space<vmem>>, vector<16x4xf32>
    %cst_173 = arith.constant dense<0.000000e+00> : vector<2x4xf32>
    %332 = tpu.matmul %330, %331, %cst_173 {dimension_numbers = #tpu.dot_dimension_numbers<[1], [0], [0], [1], [0, 0, 1, 1], [], []>} : vector<2x16xf32>, vector<16x4xf32>, vector<2x4xf32> -> vector<2x4xf32>
    %c0_174 = arith.constant 0 : index
    %c525 = arith.constant 525 : index
    %333 = vector.load %arg3[%c0_174, %c525] : memref<1x768xf32, #tpu.memory_space<vmem>>, vector<1x4xf32>
    %334 = vector.broadcast %333 : vector<1x4xf32> to vector<2x4xf32>
    %335 = arith.addf %332, %334 : vector<2x4xf32>
    %cst_175 = arith.constant 0.000000e+00 : f32
    %336 = vector.broadcast %cst_175 : f32 to vector<2x4xf32>
    %337 = arith.cmpf oge, %335, %336 : vector<2x4xf32>
    %cst_176 = arith.constant 0.00999999977 : f32
    %338 = vector.broadcast %cst_176 : f32 to vector<2x4xf32>
    %339 = arith.mulf %338, %335 : vector<2x4xf32>
    %340 = arith.select %337, %335, %339 : vector<2x4xi1>, vector<2x4xf32>
    %c0_177 = arith.constant 0 : index
    %c875 = arith.constant 875 : index
    %341 = vector.load %arg2[%c0_177, %c875] : memref<32x1280xf32, #tpu.memory_space<vmem>>, vector<4x16xf32>
    %cst_178 = arith.constant dense<0.000000e+00> : vector<2x16xf32>
    %342 = tpu.matmul %340, %341, %cst_178 {dimension_numbers = #tpu.dot_dimension_numbers<[1], [0], [0], [1], [0, 0, 1, 1], [], []>} : vector<2x4xf32>, vector<4x16xf32>, vector<2x16xf32> -> vector<2x16xf32>
    %cst_179 = arith.constant dense<0.000000e+00> : vector<8x16xf32>
    %343 = tpu.matmul %282, %342, %cst_179 {dimension_numbers = #tpu.dot_dimension_numbers<[1], [0], [0], [1], [0, 0, 1, 1], [], []>} : vector<8x2xf32>, vector<2x16xf32>, vector<8x16xf32> -> vector<8x16xf32>
    %c0_180 = arith.constant 0 : index
    %c859 = arith.constant 859 : index
    %344 = vector.load %arg2[%c0_180, %c859] : memref<32x1280xf32, #tpu.memory_space<vmem>>, vector<16x16xf32>
    %cst_181 = arith.constant dense<0.000000e+00> : vector<8x16xf32>
    %345 = tpu.matmul %302, %344, %cst_181 {dimension_numbers = #tpu.dot_dimension_numbers<[1], [0], [0], [1], [0, 0, 1, 1], [], []>} : vector<8x16xf32>, vector<16x16xf32>, vector<8x16xf32> -> vector<8x16xf32>
    %346 = arith.addf %345, %343 : vector<8x16xf32>
    %c0_182 = arith.constant 0 : index
    %c529 = arith.constant 529 : index
    %347 = vector.load %arg3[%c0_182, %c529] : memref<1x768xf32, #tpu.memory_space<vmem>>, vector<1x16xf32>
    %348 = vector.broadcast %347 : vector<1x16xf32> to vector<8x16xf32>
    %349 = arith.addf %346, %348 : vector<8x16xf32>
    %cst_183 = arith.constant 0.000000e+00 : f32
    %350 = vector.broadcast %cst_183 : f32 to vector<8x16xf32>
    %351 = arith.cmpf oge, %349, %350 : vector<8x16xf32>
    %cst_184 = arith.constant 0.00999999977 : f32
    %352 = vector.broadcast %cst_184 : f32 to vector<8x16xf32>
    %353 = arith.mulf %352, %349 : vector<8x16xf32>
    %354 = arith.select %351, %349, %353 : vector<8x16xi1>, vector<8x16xf32>
    %c0_185 = arith.constant 0 : index
    %c891 = arith.constant 891 : index
    %355 = vector.load %arg2[%c0_185, %c891] : memref<32x1280xf32, #tpu.memory_space<vmem>>, vector<16x16xf32>
    %cst_186 = arith.constant dense<0.000000e+00> : vector<8x16xf32>
    %356 = tpu.matmul %354, %355, %cst_186 {dimension_numbers = #tpu.dot_dimension_numbers<[1], [0], [0], [1], [0, 0, 1, 1], [], []>} : vector<8x16xf32>, vector<16x16xf32>, vector<8x16xf32> -> vector<8x16xf32>
    %c0_187 = arith.constant 0 : index
    %c545 = arith.constant 545 : index
    %357 = vector.load %arg3[%c0_187, %c545] : memref<1x768xf32, #tpu.memory_space<vmem>>, vector<1x16xf32>
    %358 = vector.broadcast %357 : vector<1x16xf32> to vector<8x16xf32>
    %359 = arith.addf %356, %358 : vector<8x16xf32>
    %360 = arith.addf %279, %359 : vector<8x16xf32>
    %cst_188 = arith.constant dense<0.000000e+00> : vector<2x16xf32>
    %361 = tpu.matmul %281, %360, %cst_188 {dimension_numbers = #tpu.dot_dimension_numbers<[1], [0], [0], [1], [0, 0, 1, 1], [], []>} : vector<2x8xf32>, vector<8x16xf32>, vector<2x16xf32> -> vector<2x16xf32>
    %cst_189 = arith.constant dense<0.000000e+00> : vector<8x16xf32>
    %362 = tpu.matmul %282, %361, %cst_189 {dimension_numbers = #tpu.dot_dimension_numbers<[1], [0], [0], [1], [0, 0, 1, 1], [], []>} : vector<8x2xf32>, vector<2x16xf32>, vector<8x16xf32> -> vector<8x16xf32>
    %363 = arith.subf %360, %362 : vector<8x16xf32>
    %364 = math.absf %363 : vector<8x16xf32>
    %cst_190 = arith.constant dense<0.000000e+00> : vector<2x16xf32>
    %365 = tpu.matmul %281, %364, %cst_190 {dimension_numbers = #tpu.dot_dimension_numbers<[1], [0], [0], [1], [0, 0, 1, 1], [], []>} : vector<2x8xf32>, vector<8x16xf32>, vector<2x16xf32> -> vector<2x16xf32>
    %366 = vector.extract_strided_slice %360 {offsets = [0, 0], sizes = [4, 16], strides = [1, 1]} : vector<8x16xf32> to vector<4x16xf32>
    %cst_191 = arith.constant dense<0xFF800000> : vector<16xf32>
    %367 = vector.multi_reduction <maximumf>, %366, %cst_191 [0] : vector<4x16xf32> to vector<16xf32>
    %368 = vector.shape_cast %367 : vector<16xf32> to vector<1x16xf32>
    %369 = vector.extract_strided_slice %360 {offsets = [4, 0], sizes = [4, 16], strides = [1, 1]} : vector<8x16xf32> to vector<4x16xf32>
    %cst_192 = arith.constant dense<0xFF800000> : vector<16xf32>
    %370 = vector.multi_reduction <maximumf>, %369, %cst_192 [0] : vector<4x16xf32> to vector<16xf32>
    %371 = vector.shape_cast %370 : vector<16xf32> to vector<1x16xf32>
    %372 = tpu.concatenate %368, %371 in 0 : vector<1x16xf32>, vector<1x16xf32> -> vector<2x16xf32>
    %c0_193 = arith.constant 0 : index
    %c907 = arith.constant 907 : index
    %373 = vector.load %arg2[%c0_193, %c907] : memref<32x1280xf32, #tpu.memory_space<vmem>>, vector<16x16xf32>
    %cst_194 = arith.constant dense<0.000000e+00> : vector<2x16xf32>
    %374 = tpu.matmul %361, %373, %cst_194 {dimension_numbers = #tpu.dot_dimension_numbers<[1], [0], [0], [1], [0, 0, 1, 1], [], []>} : vector<2x16xf32>, vector<16x16xf32>, vector<2x16xf32> -> vector<2x16xf32>
    %c0_195 = arith.constant 0 : index
    %c923 = arith.constant 923 : index
    %375 = vector.load %arg2[%c0_195, %c923] : memref<32x1280xf32, #tpu.memory_space<vmem>>, vector<16x16xf32>
    %cst_196 = arith.constant dense<0.000000e+00> : vector<2x16xf32>
    %376 = tpu.matmul %365, %375, %cst_196 {dimension_numbers = #tpu.dot_dimension_numbers<[1], [0], [0], [1], [0, 0, 1, 1], [], []>} : vector<2x16xf32>, vector<16x16xf32>, vector<2x16xf32> -> vector<2x16xf32>
    %377 = arith.addf %374, %376 : vector<2x16xf32>
    %c0_197 = arith.constant 0 : index
    %c939 = arith.constant 939 : index
    %378 = vector.load %arg2[%c0_197, %c939] : memref<32x1280xf32, #tpu.memory_space<vmem>>, vector<16x16xf32>
    %cst_198 = arith.constant dense<0.000000e+00> : vector<2x16xf32>
    %379 = tpu.matmul %372, %378, %cst_198 {dimension_numbers = #tpu.dot_dimension_numbers<[1], [0], [0], [1], [0, 0, 1, 1], [], []>} : vector<2x16xf32>, vector<16x16xf32>, vector<2x16xf32> -> vector<2x16xf32>
    %380 = arith.addf %377, %379 : vector<2x16xf32>
    %c0_199 = arith.constant 0 : index
    %c955 = arith.constant 955 : index
    %381 = vector.load %arg2[%c0_199, %c955] : memref<32x1280xf32, #tpu.memory_space<vmem>>, vector<2x16xf32>
    %cst_200 = arith.constant dense<0.000000e+00> : vector<2x16xf32>
    %382 = tpu.matmul %1, %381, %cst_200 {dimension_numbers = #tpu.dot_dimension_numbers<[1], [0], [0], [1], [0, 0, 1, 1], [], []>} : vector<2x2xf32>, vector<2x16xf32>, vector<2x16xf32> -> vector<2x16xf32>
    %383 = arith.addf %380, %382 : vector<2x16xf32>
    %c0_201 = arith.constant 0 : index
    %c561 = arith.constant 561 : index
    %384 = vector.load %arg3[%c0_201, %c561] : memref<1x768xf32, #tpu.memory_space<vmem>>, vector<1x16xf32>
    %385 = vector.broadcast %384 : vector<1x16xf32> to vector<2x16xf32>
    %386 = arith.addf %383, %385 : vector<2x16xf32>
    %cst_202 = arith.constant 0.000000e+00 : f32
    %387 = vector.broadcast %cst_202 : f32 to vector<2x16xf32>
    %388 = arith.cmpf oge, %386, %387 : vector<2x16xf32>
    %cst_203 = arith.constant 0.00999999977 : f32
    %389 = vector.broadcast %cst_203 : f32 to vector<2x16xf32>
    %390 = arith.mulf %389, %386 : vector<2x16xf32>
    %391 = arith.select %388, %386, %390 : vector<2x16xi1>, vector<2x16xf32>
    %c0_204 = arith.constant 0 : index
    %c971 = arith.constant 971 : index
    %392 = vector.load %arg2[%c0_204, %c971] : memref<32x1280xf32, #tpu.memory_space<vmem>>, vector<16x1xf32>
    %cst_205 = arith.constant dense<0.000000e+00> : vector<2x1xf32>
    %393 = tpu.matmul %391, %392, %cst_205 {dimension_numbers = #tpu.dot_dimension_numbers<[1], [0], [0], [1], [0, 0, 1, 1], [], []>} : vector<2x16xf32>, vector<16x1xf32>, vector<2x1xf32> -> vector<2x1xf32>
    %c0_206 = arith.constant 0 : index
    %c577 = arith.constant 577 : index
    %394 = vector.load %arg3[%c0_206, %c577] : memref<1x768xf32, #tpu.memory_space<vmem>>, vector<1x1xf32>
    %395 = vector.broadcast %394 : vector<1x1xf32> to vector<2x1xf32>
    %396 = arith.addf %393, %395 : vector<2x1xf32>
    %c0_207 = arith.constant 0 : index
    %c274 = arith.constant 274 : index
    %397 = vector.load %arg2[%c0_207, %c274] : memref<32x1280xf32, #tpu.memory_space<vmem>>, vector<16x16xf32>
    %cst_208 = arith.constant dense<0.000000e+00> : vector<8x16xf32>
    %398 = tpu.matmul %279, %397, %cst_208 {dimension_numbers = #tpu.dot_dimension_numbers<[1], [0], [0], [1], [0, 0, 1, 1], [], []>} : vector<8x16xf32>, vector<16x16xf32>, vector<8x16xf32> -> vector<8x16xf32>
    %c0_209 = arith.constant 0 : index
    %c160 = arith.constant 160 : index
    %399 = vector.load %arg3[%c0_209, %c160] : memref<1x768xf32, #tpu.memory_space<vmem>>, vector<1x16xf32>
    %400 = vector.broadcast %399 : vector<1x16xf32> to vector<8x16xf32>
    %401 = arith.addf %398, %400 : vector<8x16xf32>
    %cst_210 = arith.constant 0.000000e+00 : f32
    %402 = vector.broadcast %cst_210 : f32 to vector<8x16xf32>
    %403 = arith.cmpf oge, %401, %402 : vector<8x16xf32>
    %cst_211 = arith.constant 0.00999999977 : f32
    %404 = vector.broadcast %cst_211 : f32 to vector<8x16xf32>
    %405 = arith.mulf %404, %401 : vector<8x16xf32>
    %406 = arith.select %403, %401, %405 : vector<8x16xi1>, vector<8x16xf32>
    %c0_212 = arith.constant 0 : index
    %c290 = arith.constant 290 : index
    %407 = vector.load %arg2[%c0_212, %c290] : memref<32x1280xf32, #tpu.memory_space<vmem>>, vector<16x32xf32>
    %cst_213 = arith.constant dense<0.000000e+00> : vector<8x32xf32>
    %408 = tpu.matmul %406, %407, %cst_213 {dimension_numbers = #tpu.dot_dimension_numbers<[1], [0], [0], [1], [0, 0, 1, 1], [], []>} : vector<8x16xf32>, vector<16x32xf32>, vector<8x32xf32> -> vector<8x32xf32>
    %c0_214 = arith.constant 0 : index
    %c176 = arith.constant 176 : index
    %409 = vector.load %arg3[%c0_214, %c176] : memref<1x768xf32, #tpu.memory_space<vmem>>, vector<1x32xf32>
    %410 = vector.broadcast %409 : vector<1x32xf32> to vector<8x32xf32>
    %411 = arith.addf %408, %410 : vector<8x32xf32>
    %c0_215 = arith.constant 0 : index
    %c322 = arith.constant 322 : index
    %412 = vector.load %arg2[%c0_215, %c322] : memref<32x1280xf32, #tpu.memory_space<vmem>>, vector<32x16xf32>
    %cst_216 = arith.constant dense<0.000000e+00> : vector<8x16xf32>
    %413 = tpu.matmul %411, %412, %cst_216 {dimension_numbers = #tpu.dot_dimension_numbers<[1], [0], [0], [1], [0, 0, 1, 1], [], []>} : vector<8x32xf32>, vector<32x16xf32>, vector<8x16xf32> -> vector<8x16xf32>
    %c0_217 = arith.constant 0 : index
    %c208 = arith.constant 208 : index
    %414 = vector.load %arg3[%c0_217, %c208] : memref<1x768xf32, #tpu.memory_space<vmem>>, vector<1x16xf32>
    %415 = vector.broadcast %414 : vector<1x16xf32> to vector<8x16xf32>
    %416 = arith.addf %413, %415 : vector<8x16xf32>
    %cst_218 = arith.constant 0.000000e+00 : f32
    %417 = vector.broadcast %cst_218 : f32 to vector<8x16xf32>
    %418 = arith.cmpf oge, %416, %417 : vector<8x16xf32>
    %cst_219 = arith.constant 0.00999999977 : f32
    %419 = vector.broadcast %cst_219 : f32 to vector<8x16xf32>
    %420 = arith.mulf %419, %416 : vector<8x16xf32>
    %421 = arith.select %418, %416, %420 : vector<8x16xi1>, vector<8x16xf32>
    %c0_220 = arith.constant 0 : index
    %c338 = arith.constant 338 : index
    %422 = vector.load %arg2[%c0_220, %c338] : memref<32x1280xf32, #tpu.memory_space<vmem>>, vector<16x8xf32>
    %cst_221 = arith.constant dense<0.000000e+00> : vector<8x8xf32>
    %423 = tpu.matmul %421, %422, %cst_221 {dimension_numbers = #tpu.dot_dimension_numbers<[1], [0], [0], [1], [0, 0, 1, 1], [], []>} : vector<8x16xf32>, vector<16x8xf32>, vector<8x8xf32> -> vector<8x8xf32>
    %c0_222 = arith.constant 0 : index
    %c224 = arith.constant 224 : index
    %424 = vector.load %arg3[%c0_222, %c224] : memref<1x768xf32, #tpu.memory_space<vmem>>, vector<1x8xf32>
    %425 = vector.broadcast %424 : vector<1x8xf32> to vector<8x8xf32>
    %426 = arith.addf %423, %425 : vector<8x8xf32>
    %cst_223 = arith.constant 0.000000e+00 : f32
    %427 = vector.broadcast %cst_223 : f32 to vector<8x8xf32>
    %428 = arith.cmpf oge, %426, %427 : vector<8x8xf32>
    %cst_224 = arith.constant 0.00999999977 : f32
    %429 = vector.broadcast %cst_224 : f32 to vector<8x8xf32>
    %430 = arith.mulf %429, %426 : vector<8x8xf32>
    %431 = arith.select %428, %426, %430 : vector<8x8xi1>, vector<8x8xf32>
    %cst_225 = arith.constant dense<0.000000e+00> : vector<2x8xf32>
    %432 = tpu.matmul %281, %431, %cst_225 {dimension_numbers = #tpu.dot_dimension_numbers<[1], [0], [0], [1], [0, 0, 1, 1], [], []>} : vector<2x8xf32>, vector<8x8xf32>, vector<2x8xf32> -> vector<2x8xf32>
    %cst_226 = arith.constant dense<0.000000e+00> : vector<8x8xf32>
    %433 = tpu.matmul %282, %432, %cst_226 {dimension_numbers = #tpu.dot_dimension_numbers<[1], [0], [0], [1], [0, 0, 1, 1], [], []>} : vector<8x2xf32>, vector<2x8xf32>, vector<8x8xf32> -> vector<8x8xf32>
    %434 = arith.subf %431, %433 : vector<8x8xf32>
    %435 = math.absf %434 : vector<8x8xf32>
    %cst_227 = arith.constant dense<0.000000e+00> : vector<2x8xf32>
    %436 = tpu.matmul %281, %435, %cst_227 {dimension_numbers = #tpu.dot_dimension_numbers<[1], [0], [0], [1], [0, 0, 1, 1], [], []>} : vector<2x8xf32>, vector<8x8xf32>, vector<2x8xf32> -> vector<2x8xf32>
    %437 = vector.extract_strided_slice %431 {offsets = [0, 0], sizes = [4, 8], strides = [1, 1]} : vector<8x8xf32> to vector<4x8xf32>
    %cst_228 = arith.constant dense<0xFF800000> : vector<8xf32>
    %438 = vector.multi_reduction <maximumf>, %437, %cst_228 [0] : vector<4x8xf32> to vector<8xf32>
    %439 = vector.shape_cast %438 : vector<8xf32> to vector<1x8xf32>
    %440 = vector.extract_strided_slice %431 {offsets = [4, 0], sizes = [4, 8], strides = [1, 1]} : vector<8x8xf32> to vector<4x8xf32>
    %cst_229 = arith.constant dense<0xFF800000> : vector<8xf32>
    %441 = vector.multi_reduction <maximumf>, %440, %cst_229 [0] : vector<4x8xf32> to vector<8xf32>
    %442 = vector.shape_cast %441 : vector<8xf32> to vector<1x8xf32>
    %443 = tpu.concatenate %439, %442 in 0 : vector<1x8xf32>, vector<1x8xf32> -> vector<2x8xf32>
    %c0_230 = arith.constant 0 : index
    %c346 = arith.constant 346 : index
    %444 = vector.load %arg2[%c0_230, %c346] : memref<32x1280xf32, #tpu.memory_space<vmem>>, vector<8x16xf32>
    %cst_231 = arith.constant dense<0.000000e+00> : vector<2x16xf32>
    %445 = tpu.matmul %432, %444, %cst_231 {dimension_numbers = #tpu.dot_dimension_numbers<[1], [0], [0], [1], [0, 0, 1, 1], [], []>} : vector<2x8xf32>, vector<8x16xf32>, vector<2x16xf32> -> vector<2x16xf32>
    %c0_232 = arith.constant 0 : index
    %c362 = arith.constant 362 : index
    %446 = vector.load %arg2[%c0_232, %c362] : memref<32x1280xf32, #tpu.memory_space<vmem>>, vector<8x16xf32>
    %cst_233 = arith.constant dense<0.000000e+00> : vector<2x16xf32>
    %447 = tpu.matmul %436, %446, %cst_233 {dimension_numbers = #tpu.dot_dimension_numbers<[1], [0], [0], [1], [0, 0, 1, 1], [], []>} : vector<2x8xf32>, vector<8x16xf32>, vector<2x16xf32> -> vector<2x16xf32>
    %448 = arith.addf %445, %447 : vector<2x16xf32>
    %c0_234 = arith.constant 0 : index
    %c378 = arith.constant 378 : index
    %449 = vector.load %arg2[%c0_234, %c378] : memref<32x1280xf32, #tpu.memory_space<vmem>>, vector<8x16xf32>
    %cst_235 = arith.constant dense<0.000000e+00> : vector<2x16xf32>
    %450 = tpu.matmul %443, %449, %cst_235 {dimension_numbers = #tpu.dot_dimension_numbers<[1], [0], [0], [1], [0, 0, 1, 1], [], []>} : vector<2x8xf32>, vector<8x16xf32>, vector<2x16xf32> -> vector<2x16xf32>
    %451 = arith.addf %448, %450 : vector<2x16xf32>
    %c0_236 = arith.constant 0 : index
    %c232 = arith.constant 232 : index
    %452 = vector.load %arg3[%c0_236, %c232] : memref<1x768xf32, #tpu.memory_space<vmem>>, vector<1x16xf32>
    %453 = vector.broadcast %452 : vector<1x16xf32> to vector<2x16xf32>
    %454 = arith.addf %451, %453 : vector<2x16xf32>
    %cst_237 = arith.constant 0.000000e+00 : f32
    %455 = vector.broadcast %cst_237 : f32 to vector<2x16xf32>
    %456 = arith.cmpf oge, %454, %455 : vector<2x16xf32>
    %cst_238 = arith.constant 0.00999999977 : f32
    %457 = vector.broadcast %cst_238 : f32 to vector<2x16xf32>
    %458 = arith.mulf %457, %454 : vector<2x16xf32>
    %459 = arith.select %456, %454, %458 : vector<2x16xi1>, vector<2x16xf32>
    %c0_239 = arith.constant 0 : index
    %c394 = arith.constant 394 : index
    %460 = vector.load %arg2[%c0_239, %c394] : memref<32x1280xf32, #tpu.memory_space<vmem>>, vector<16x8xf32>
    %cst_240 = arith.constant dense<0.000000e+00> : vector<2x8xf32>
    %461 = tpu.matmul %459, %460, %cst_240 {dimension_numbers = #tpu.dot_dimension_numbers<[1], [0], [0], [1], [0, 0, 1, 1], [], []>} : vector<2x16xf32>, vector<16x8xf32>, vector<2x8xf32> -> vector<2x8xf32>
    %c0_241 = arith.constant 0 : index
    %c248 = arith.constant 248 : index
    %462 = vector.load %arg3[%c0_241, %c248] : memref<1x768xf32, #tpu.memory_space<vmem>>, vector<1x8xf32>
    %463 = vector.broadcast %462 : vector<1x8xf32> to vector<2x8xf32>
    %464 = arith.addf %461, %463 : vector<2x8xf32>
    %cst_242 = arith.constant 0.000000e+00 : f32
    %465 = vector.broadcast %cst_242 : f32 to vector<2x8xf32>
    %466 = arith.cmpf oge, %464, %465 : vector<2x8xf32>
    %cst_243 = arith.constant 0.00999999977 : f32
    %467 = vector.broadcast %cst_243 : f32 to vector<2x8xf32>
    %468 = arith.mulf %467, %464 : vector<2x8xf32>
    %469 = arith.select %466, %464, %468 : vector<2x8xi1>, vector<2x8xf32>
    %c0_244 = arith.constant 0 : index
    %c418 = arith.constant 418 : index
    %470 = vector.load %arg2[%c0_244, %c418] : memref<32x1280xf32, #tpu.memory_space<vmem>>, vector<8x16xf32>
    %cst_245 = arith.constant dense<0.000000e+00> : vector<2x16xf32>
    %471 = tpu.matmul %469, %470, %cst_245 {dimension_numbers = #tpu.dot_dimension_numbers<[1], [0], [0], [1], [0, 0, 1, 1], [], []>} : vector<2x8xf32>, vector<8x16xf32>, vector<2x16xf32> -> vector<2x16xf32>
    %cst_246 = arith.constant dense<0.000000e+00> : vector<8x16xf32>
    %472 = tpu.matmul %282, %471, %cst_246 {dimension_numbers = #tpu.dot_dimension_numbers<[1], [0], [0], [1], [0, 0, 1, 1], [], []>} : vector<8x2xf32>, vector<2x16xf32>, vector<8x16xf32> -> vector<8x16xf32>
    %c0_247 = arith.constant 0 : index
    %c402 = arith.constant 402 : index
    %473 = vector.load %arg2[%c0_247, %c402] : memref<32x1280xf32, #tpu.memory_space<vmem>>, vector<8x16xf32>
    %cst_248 = arith.constant dense<0.000000e+00> : vector<8x16xf32>
    %474 = tpu.matmul %431, %473, %cst_248 {dimension_numbers = #tpu.dot_dimension_numbers<[1], [0], [0], [1], [0, 0, 1, 1], [], []>} : vector<8x8xf32>, vector<8x16xf32>, vector<8x16xf32> -> vector<8x16xf32>
    %475 = arith.addf %474, %472 : vector<8x16xf32>
    %c0_249 = arith.constant 0 : index
    %c256 = arith.constant 256 : index
    %476 = vector.load %arg3[%c0_249, %c256] : memref<1x768xf32, #tpu.memory_space<vmem>>, vector<1x16xf32>
    %477 = vector.broadcast %476 : vector<1x16xf32> to vector<8x16xf32>
    %478 = arith.addf %475, %477 : vector<8x16xf32>
    %cst_250 = arith.constant 0.000000e+00 : f32
    %479 = vector.broadcast %cst_250 : f32 to vector<8x16xf32>
    %480 = arith.cmpf oge, %478, %479 : vector<8x16xf32>
    %cst_251 = arith.constant 0.00999999977 : f32
    %481 = vector.broadcast %cst_251 : f32 to vector<8x16xf32>
    %482 = arith.mulf %481, %478 : vector<8x16xf32>
    %483 = arith.select %480, %478, %482 : vector<8x16xi1>, vector<8x16xf32>
    %c0_252 = arith.constant 0 : index
    %c434 = arith.constant 434 : index
    %484 = vector.load %arg2[%c0_252, %c434] : memref<32x1280xf32, #tpu.memory_space<vmem>>, vector<16x32xf32>
    %cst_253 = arith.constant dense<0.000000e+00> : vector<8x32xf32>
    %485 = tpu.matmul %483, %484, %cst_253 {dimension_numbers = #tpu.dot_dimension_numbers<[1], [0], [0], [1], [0, 0, 1, 1], [], []>} : vector<8x16xf32>, vector<16x32xf32>, vector<8x32xf32> -> vector<8x32xf32>
    %c0_254 = arith.constant 0 : index
    %c272 = arith.constant 272 : index
    %486 = vector.load %arg3[%c0_254, %c272] : memref<1x768xf32, #tpu.memory_space<vmem>>, vector<1x32xf32>
    %487 = vector.broadcast %486 : vector<1x32xf32> to vector<8x32xf32>
    %488 = arith.addf %485, %487 : vector<8x32xf32>
    %489 = arith.addf %411, %488 : vector<8x32xf32>
    %c0_255 = arith.constant 0 : index
    %c0_256 = arith.constant 0 : index
    %490 = vector.load %arg8[%c0_255, %c0_256] : memref<8x32xf32, #tpu.memory_space<vmem>>, vector<8x32xf32>
    tpu.vector_store %arg8[%c0_255, %c0_256], %489 {strides = array<i32>} : memref<8x32xf32, #tpu.memory_space<vmem>>, vector<8x32xf32>,
    %c0_257 = arith.constant 0 : index
    %c498 = arith.constant 498 : index
    %491 = vector.load %arg2[%c0_257, %c498] : memref<32x1280xf32, #tpu.memory_space<vmem>>, vector<32x32xf32>
    %cst_258 = arith.constant dense<0.000000e+00> : vector<8x32xf32>
    %492 = tpu.matmul %489, %491, %cst_258 {dimension_numbers = #tpu.dot_dimension_numbers<[1], [0], [0], [1], [0, 0, 1, 1], [], []>} : vector<8x32xf32>, vector<32x32xf32>, vector<8x32xf32> -> vector<8x32xf32>
    %c0_259 = arith.constant 0 : index
    %c304 = arith.constant 304 : index
    %493 = vector.load %arg3[%c0_259, %c304] : memref<1x768xf32, #tpu.memory_space<vmem>>, vector<1x32xf32>
    %494 = vector.broadcast %493 : vector<1x32xf32> to vector<8x32xf32>
    %495 = arith.addf %492, %494 : vector<8x32xf32>
    %c0_260 = arith.constant 0 : index
    %c530 = arith.constant 530 : index
    %496 = vector.load %arg2[%c0_260, %c530] : memref<32x1280xf32, #tpu.memory_space<vmem>>, vector<32x32xf32>
    %cst_261 = arith.constant dense<0.000000e+00> : vector<8x32xf32>
    %497 = tpu.matmul %489, %496, %cst_261 {dimension_numbers = #tpu.dot_dimension_numbers<[1], [0], [0], [1], [0, 0, 1, 1], [], []>} : vector<8x32xf32>, vector<32x32xf32>, vector<8x32xf32> -> vector<8x32xf32>
    %c0_262 = arith.constant 0 : index
    %c336 = arith.constant 336 : index
    %498 = vector.load %arg3[%c0_262, %c336] : memref<1x768xf32, #tpu.memory_space<vmem>>, vector<1x32xf32>
    %499 = vector.broadcast %498 : vector<1x32xf32> to vector<8x32xf32>
    %500 = arith.addf %497, %499 : vector<8x32xf32>
    %c0_263 = arith.constant 0 : index
    %c466 = arith.constant 466 : index
    %501 = vector.load %arg2[%c0_263, %c466] : memref<32x1280xf32, #tpu.memory_space<vmem>>, vector<4x32xf32>
    %c0_264 = arith.constant 0 : index
    %c594 = arith.constant 594 : index
    %502 = vector.load %arg2[%c0_264, %c594] : memref<32x1280xf32, #tpu.memory_space<vmem>>, vector<4x8xf32>
    %503 = vector.extract_strided_slice %501 {offsets = [0, 0], sizes = [4, 16], strides = [1, 1]} : vector<4x32xf32> to vector<4x16xf32>
    %504 = vector.extract_strided_slice %495 {offsets = [0, 0], sizes = [8, 16], strides = [1, 1]} : vector<8x32xf32> to vector<8x16xf32>
    %cst_265 = arith.constant dense<0.000000e+00> : vector<4x8xf32>
    %505 = tpu.matmul %503, %504, %cst_265 {dimension_numbers = #tpu.dot_dimension_numbers<[1], [1], [0], [0], [0, 0, 1, 0], [], []>} : vector<4x16xf32>, vector<8x16xf32>, vector<4x8xf32> -> vector<4x8xf32>
    %cst_266 = arith.constant 2.500000e-01 : f32
    %506 = vector.broadcast %cst_266 : f32 to vector<4x8xf32>
    %507 = arith.mulf %505, %506 : vector<4x8xf32>
    %508 = arith.addf %507, %502 : vector<4x8xf32>
    %cst_267 = arith.constant dense<0xFF800000> : vector<4xf32>
    %509 = vector.multi_reduction <maximumf>, %508, %cst_267 [1] : vector<4x8xf32> to vector<4xf32>
    %510 = vector.shape_cast %509 : vector<4xf32> to vector<4x1xf32>
    %511 = vector.broadcast %510 : vector<4x1xf32> to vector<4x8xf32>
    %512 = arith.subf %508, %511 : vector<4x8xf32>
    %513 = math.exp %512 : vector<4x8xf32>
    %cst_268 = arith.constant dense<0.000000e+00> : vector<4xf32>
    %514 = vector.multi_reduction <add>, %513, %cst_268 [1] : vector<4x8xf32> to vector<4xf32>
    %515 = vector.shape_cast %514 : vector<4xf32> to vector<4x1xf32>
    %516 = tpu.reciprocal %515 {approx = true} : vector<4x1xf32> -> vector<4x1xf32>
    %517 = vector.broadcast %516 : vector<4x1xf32> to vector<4x8xf32>
    %518 = arith.mulf %513, %517 : vector<4x8xf32>
    %519 = vector.extract_strided_slice %500 {offsets = [0, 0], sizes = [8, 16], strides = [1, 1]} : vector<8x32xf32> to vector<8x16xf32>
    %cst_269 = arith.constant dense<0.000000e+00> : vector<4x16xf32>
    %520 = tpu.matmul %518, %519, %cst_269 {dimension_numbers = #tpu.dot_dimension_numbers<[1], [0], [0], [1], [0, 0, 1, 1], [], []>} : vector<4x8xf32>, vector<8x16xf32>, vector<4x16xf32> -> vector<4x16xf32>
    %521 = vector.extract_strided_slice %501 {offsets = [0, 16], sizes = [4, 16], strides = [1, 1]} : vector<4x32xf32> to vector<4x16xf32>
    %522 = vector.extract_strided_slice %495 {offsets = [0, 16], sizes = [8, 16], strides = [1, 1]} : vector<8x32xf32> to vector<8x16xf32>
    %cst_270 = arith.constant dense<0.000000e+00> : vector<4x8xf32>
    %523 = tpu.matmul %521, %522, %cst_270 {dimension_numbers = #tpu.dot_dimension_numbers<[1], [1], [0], [0], [0, 0, 1, 0], [], []>} : vector<4x16xf32>, vector<8x16xf32>, vector<4x8xf32> -> vector<4x8xf32>
    %cst_271 = arith.constant 2.500000e-01 : f32
    %524 = vector.broadcast %cst_271 : f32 to vector<4x8xf32>
    %525 = arith.mulf %523, %524 : vector<4x8xf32>
    %526 = arith.addf %525, %502 : vector<4x8xf32>
    %cst_272 = arith.constant dense<0xFF800000> : vector<4xf32>
    %527 = vector.multi_reduction <maximumf>, %526, %cst_272 [1] : vector<4x8xf32> to vector<4xf32>
    %528 = vector.shape_cast %527 : vector<4xf32> to vector<4x1xf32>
    %529 = vector.broadcast %528 : vector<4x1xf32> to vector<4x8xf32>
    %530 = arith.subf %526, %529 : vector<4x8xf32>
    %531 = math.exp %530 : vector<4x8xf32>
    %cst_273 = arith.constant dense<0.000000e+00> : vector<4xf32>
    %532 = vector.multi_reduction <add>, %531, %cst_273 [1] : vector<4x8xf32> to vector<4xf32>
    %533 = vector.shape_cast %532 : vector<4xf32> to vector<4x1xf32>
    %534 = tpu.reciprocal %533 {approx = true} : vector<4x1xf32> -> vector<4x1xf32>
    %535 = vector.broadcast %534 : vector<4x1xf32> to vector<4x8xf32>
    %536 = arith.mulf %531, %535 : vector<4x8xf32>
    %537 = vector.extract_strided_slice %500 {offsets = [0, 16], sizes = [8, 16], strides = [1, 1]} : vector<8x32xf32> to vector<8x16xf32>
    %cst_274 = arith.constant dense<0.000000e+00> : vector<4x16xf32>
    %538 = tpu.matmul %536, %537, %cst_274 {dimension_numbers = #tpu.dot_dimension_numbers<[1], [0], [0], [1], [0, 0, 1, 1], [], []>} : vector<4x8xf32>, vector<8x16xf32>, vector<4x16xf32> -> vector<4x16xf32>
    %539 = tpu.concatenate %520, %538 in 1 : vector<4x16xf32>, vector<4x16xf32> -> vector<4x32xf32>
    %c0_275 = arith.constant 0 : index
    %c562 = arith.constant 562 : index
    %540 = vector.load %arg2[%c0_275, %c562] : memref<32x1280xf32, #tpu.memory_space<vmem>>, vector<32x32xf32>
    %cst_276 = arith.constant dense<0.000000e+00> : vector<4x32xf32>
    %541 = tpu.matmul %539, %540, %cst_276 {dimension_numbers = #tpu.dot_dimension_numbers<[1], [0], [0], [1], [0, 0, 1, 1], [], []>} : vector<4x32xf32>, vector<32x32xf32>, vector<4x32xf32> -> vector<4x32xf32>
    %c0_277 = arith.constant 0 : index
    %c368 = arith.constant 368 : index
    %542 = vector.load %arg3[%c0_277, %c368] : memref<1x768xf32, #tpu.memory_space<vmem>>, vector<1x32xf32>
    %543 = vector.broadcast %542 : vector<1x32xf32> to vector<4x32xf32>
    %544 = arith.addf %541, %543 : vector<4x32xf32>
    %c0_278 = arith.constant 0 : index
    %c0_279 = arith.constant 0 : index
    %545 = vector.load %arg9[%c0_278, %c0_279] : memref<4x32xf32, #tpu.memory_space<vmem>>, vector<4x32xf32>
    tpu.vector_store %arg9[%c0_278, %c0_279], %544 {strides = array<i32>} : memref<4x32xf32, #tpu.memory_space<vmem>>, vector<4x32xf32>,
    %c0_280 = arith.constant 0 : index
    %c28 = arith.constant 28 : index
    %546 = vector.load %arg2[%c0_280, %c28] : memref<32x1280xf32, #tpu.memory_space<vmem>>, vector<2x4xf32>
    %c0_281 = arith.constant 0 : index
    %c32_282 = arith.constant 32 : index
    %547 = vector.load %arg2[%c0_281, %c32_282] : memref<32x1280xf32, #tpu.memory_space<vmem>>, vector<4x2xf32>
    %c0_283 = arith.constant 0 : index
    %c972 = arith.constant 972 : index
    %548 = vector.load %arg2[%c0_283, %c972] : memref<32x1280xf32, #tpu.memory_space<vmem>>, vector<32x16xf32>
    %cst_284 = arith.constant dense<0.000000e+00> : vector<4x16xf32>
    %549 = tpu.matmul %544, %548, %cst_284 {dimension_numbers = #tpu.dot_dimension_numbers<[1], [0], [0], [1], [0, 0, 1, 1], [], []>} : vector<4x32xf32>, vector<32x16xf32>, vector<4x16xf32> -> vector<4x16xf32>
    %c0_285 = arith.constant 0 : index
    %c578 = arith.constant 578 : index
    %550 = vector.load %arg3[%c0_285, %c578] : memref<1x768xf32, #tpu.memory_space<vmem>>, vector<1x16xf32>
    %551 = vector.broadcast %550 : vector<1x16xf32> to vector<4x16xf32>
    %552 = arith.addf %549, %551 : vector<4x16xf32>
    %cst_286 = arith.constant 0.000000e+00 : f32
    %553 = vector.broadcast %cst_286 : f32 to vector<4x16xf32>
    %554 = arith.cmpf oge, %552, %553 : vector<4x16xf32>
    %cst_287 = arith.constant 0.00999999977 : f32
    %555 = vector.broadcast %cst_287 : f32 to vector<4x16xf32>
    %556 = arith.mulf %555, %552 : vector<4x16xf32>
    %557 = arith.select %554, %552, %556 : vector<4x16xi1>, vector<4x16xf32>
    %c0_288 = arith.constant 0 : index
    %c988 = arith.constant 988 : index
    %558 = vector.load %arg2[%c0_288, %c988] : memref<32x1280xf32, #tpu.memory_space<vmem>>, vector<16x32xf32>
    %cst_289 = arith.constant dense<0.000000e+00> : vector<4x32xf32>
    %559 = tpu.matmul %557, %558, %cst_289 {dimension_numbers = #tpu.dot_dimension_numbers<[1], [0], [0], [1], [0, 0, 1, 1], [], []>} : vector<4x16xf32>, vector<16x32xf32>, vector<4x32xf32> -> vector<4x32xf32>
    %c0_290 = arith.constant 0 : index
    %c594_291 = arith.constant 594 : index
    %560 = vector.load %arg3[%c0_290, %c594_291] : memref<1x768xf32, #tpu.memory_space<vmem>>, vector<1x32xf32>
    %561 = vector.broadcast %560 : vector<1x32xf32> to vector<4x32xf32>
    %562 = arith.addf %559, %561 : vector<4x32xf32>
    %cst_292 = arith.constant 0.000000e+00 : f32
    %563 = vector.broadcast %cst_292 : f32 to vector<4x32xf32>
    %564 = arith.cmpf oge, %562, %563 : vector<4x32xf32>
    %cst_293 = arith.constant 0.00999999977 : f32
    %565 = vector.broadcast %cst_293 : f32 to vector<4x32xf32>
    %566 = arith.mulf %565, %562 : vector<4x32xf32>
    %567 = arith.select %564, %562, %566 : vector<4x32xi1>, vector<4x32xf32>
    %cst_294 = arith.constant dense<0.000000e+00> : vector<2x32xf32>
    %568 = tpu.matmul %546, %567, %cst_294 {dimension_numbers = #tpu.dot_dimension_numbers<[1], [0], [0], [1], [0, 0, 1, 1], [], []>} : vector<2x4xf32>, vector<4x32xf32>, vector<2x32xf32> -> vector<2x32xf32>
    %cst_295 = arith.constant dense<0.000000e+00> : vector<4x32xf32>
    %569 = tpu.matmul %547, %568, %cst_295 {dimension_numbers = #tpu.dot_dimension_numbers<[1], [0], [0], [1], [0, 0, 1, 1], [], []>} : vector<4x2xf32>, vector<2x32xf32>, vector<4x32xf32> -> vector<4x32xf32>
    %570 = arith.subf %567, %569 : vector<4x32xf32>
    %571 = math.absf %570 : vector<4x32xf32>
    %cst_296 = arith.constant dense<0.000000e+00> : vector<2x32xf32>
    %572 = tpu.matmul %546, %571, %cst_296 {dimension_numbers = #tpu.dot_dimension_numbers<[1], [0], [0], [1], [0, 0, 1, 1], [], []>} : vector<2x4xf32>, vector<4x32xf32>, vector<2x32xf32> -> vector<2x32xf32>
    %573 = vector.extract_strided_slice %567 {offsets = [0, 0], sizes = [2, 32], strides = [1, 1]} : vector<4x32xf32> to vector<2x32xf32>
    %cst_297 = arith.constant dense<0xFF800000> : vector<32xf32>
    %574 = vector.multi_reduction <maximumf>, %573, %cst_297 [0] : vector<2x32xf32> to vector<32xf32>
    %575 = vector.shape_cast %574 : vector<32xf32> to vector<1x32xf32>
    %576 = vector.extract_strided_slice %567 {offsets = [2, 0], sizes = [2, 32], strides = [1, 1]} : vector<4x32xf32> to vector<2x32xf32>
    %cst_298 = arith.constant dense<0xFF800000> : vector<32xf32>
    %577 = vector.multi_reduction <maximumf>, %576, %cst_298 [0] : vector<2x32xf32> to vector<32xf32>
    %578 = vector.shape_cast %577 : vector<32xf32> to vector<1x32xf32>
    %579 = tpu.concatenate %575, %578 in 0 : vector<1x32xf32>, vector<1x32xf32> -> vector<2x32xf32>
    %c0_299 = arith.constant 0 : index
    %c1020 = arith.constant 1020 : index
    %580 = vector.load %arg2[%c0_299, %c1020] : memref<32x1280xf32, #tpu.memory_space<vmem>>, vector<32x16xf32>
    %cst_300 = arith.constant dense<0.000000e+00> : vector<2x16xf32>
    %581 = tpu.matmul %568, %580, %cst_300 {dimension_numbers = #tpu.dot_dimension_numbers<[1], [0], [0], [1], [0, 0, 1, 1], [], []>} : vector<2x32xf32>, vector<32x16xf32>, vector<2x16xf32> -> vector<2x16xf32>
    %c0_301 = arith.constant 0 : index
    %c1036 = arith.constant 1036 : index
    %582 = vector.load %arg2[%c0_301, %c1036] : memref<32x1280xf32, #tpu.memory_space<vmem>>, vector<32x16xf32>
    %cst_302 = arith.constant dense<0.000000e+00> : vector<2x16xf32>
    %583 = tpu.matmul %572, %582, %cst_302 {dimension_numbers = #tpu.dot_dimension_numbers<[1], [0], [0], [1], [0, 0, 1, 1], [], []>} : vector<2x32xf32>, vector<32x16xf32>, vector<2x16xf32> -> vector<2x16xf32>
    %584 = arith.addf %581, %583 : vector<2x16xf32>
    %c0_303 = arith.constant 0 : index
    %c1052 = arith.constant 1052 : index
    %585 = vector.load %arg2[%c0_303, %c1052] : memref<32x1280xf32, #tpu.memory_space<vmem>>, vector<32x16xf32>
    %cst_304 = arith.constant dense<0.000000e+00> : vector<2x16xf32>
    %586 = tpu.matmul %579, %585, %cst_304 {dimension_numbers = #tpu.dot_dimension_numbers<[1], [0], [0], [1], [0, 0, 1, 1], [], []>} : vector<2x32xf32>, vector<32x16xf32>, vector<2x16xf32> -> vector<2x16xf32>
    %587 = arith.addf %584, %586 : vector<2x16xf32>
    %c0_305 = arith.constant 0 : index
    %c626 = arith.constant 626 : index
    %588 = vector.load %arg3[%c0_305, %c626] : memref<1x768xf32, #tpu.memory_space<vmem>>, vector<1x16xf32>
    %589 = vector.broadcast %588 : vector<1x16xf32> to vector<2x16xf32>
    %590 = arith.addf %587, %589 : vector<2x16xf32>
    %cst_306 = arith.constant 0.000000e+00 : f32
    %591 = vector.broadcast %cst_306 : f32 to vector<2x16xf32>
    %592 = arith.cmpf oge, %590, %591 : vector<2x16xf32>
    %cst_307 = arith.constant 0.00999999977 : f32
    %593 = vector.broadcast %cst_307 : f32 to vector<2x16xf32>
    %594 = arith.mulf %593, %590 : vector<2x16xf32>
    %595 = arith.select %592, %590, %594 : vector<2x16xi1>, vector<2x16xf32>
    %c0_308 = arith.constant 0 : index
    %c1068 = arith.constant 1068 : index
    %596 = vector.load %arg2[%c0_308, %c1068] : memref<32x1280xf32, #tpu.memory_space<vmem>>, vector<16x4xf32>
    %cst_309 = arith.constant dense<0.000000e+00> : vector<2x4xf32>
    %597 = tpu.matmul %595, %596, %cst_309 {dimension_numbers = #tpu.dot_dimension_numbers<[1], [0], [0], [1], [0, 0, 1, 1], [], []>} : vector<2x16xf32>, vector<16x4xf32>, vector<2x4xf32> -> vector<2x4xf32>
    %c0_310 = arith.constant 0 : index
    %c642 = arith.constant 642 : index
    %598 = vector.load %arg3[%c0_310, %c642] : memref<1x768xf32, #tpu.memory_space<vmem>>, vector<1x4xf32>
    %599 = vector.broadcast %598 : vector<1x4xf32> to vector<2x4xf32>
    %600 = arith.addf %597, %599 : vector<2x4xf32>
    %cst_311 = arith.constant 0.000000e+00 : f32
    %601 = vector.broadcast %cst_311 : f32 to vector<2x4xf32>
    %602 = arith.cmpf oge, %600, %601 : vector<2x4xf32>
    %cst_312 = arith.constant 0.00999999977 : f32
    %603 = vector.broadcast %cst_312 : f32 to vector<2x4xf32>
    %604 = arith.mulf %603, %600 : vector<2x4xf32>
    %605 = arith.select %602, %600, %604 : vector<2x4xi1>, vector<2x4xf32>
    %c0_313 = arith.constant 0 : index
    %c1088 = arith.constant 1088 : index
    %606 = vector.load %arg2[%c0_313, %c1088] : memref<32x1280xf32, #tpu.memory_space<vmem>>, vector<4x16xf32>
    %cst_314 = arith.constant dense<0.000000e+00> : vector<2x16xf32>
    %607 = tpu.matmul %605, %606, %cst_314 {dimension_numbers = #tpu.dot_dimension_numbers<[1], [0], [0], [1], [0, 0, 1, 1], [], []>} : vector<2x4xf32>, vector<4x16xf32>, vector<2x16xf32> -> vector<2x16xf32>
    %cst_315 = arith.constant dense<0.000000e+00> : vector<4x16xf32>
    %608 = tpu.matmul %547, %607, %cst_315 {dimension_numbers = #tpu.dot_dimension_numbers<[1], [0], [0], [1], [0, 0, 1, 1], [], []>} : vector<4x2xf32>, vector<2x16xf32>, vector<4x16xf32> -> vector<4x16xf32>
    %c0_316 = arith.constant 0 : index
    %c1072 = arith.constant 1072 : index
    %609 = vector.load %arg2[%c0_316, %c1072] : memref<32x1280xf32, #tpu.memory_space<vmem>>, vector<32x16xf32>
    %cst_317 = arith.constant dense<0.000000e+00> : vector<4x16xf32>
    %610 = tpu.matmul %567, %609, %cst_317 {dimension_numbers = #tpu.dot_dimension_numbers<[1], [0], [0], [1], [0, 0, 1, 1], [], []>} : vector<4x32xf32>, vector<32x16xf32>, vector<4x16xf32> -> vector<4x16xf32>
    %611 = arith.addf %610, %608 : vector<4x16xf32>
    %c0_318 = arith.constant 0 : index
    %c646 = arith.constant 646 : index
    %612 = vector.load %arg3[%c0_318, %c646] : memref<1x768xf32, #tpu.memory_space<vmem>>, vector<1x16xf32>
    %613 = vector.broadcast %612 : vector<1x16xf32> to vector<4x16xf32>
    %614 = arith.addf %611, %613 : vector<4x16xf32>
    %cst_319 = arith.constant 0.000000e+00 : f32
    %615 = vector.broadcast %cst_319 : f32 to vector<4x16xf32>
    %616 = arith.cmpf oge, %614, %615 : vector<4x16xf32>
    %cst_320 = arith.constant 0.00999999977 : f32
    %617 = vector.broadcast %cst_320 : f32 to vector<4x16xf32>
    %618 = arith.mulf %617, %614 : vector<4x16xf32>
    %619 = arith.select %616, %614, %618 : vector<4x16xi1>, vector<4x16xf32>
    %c0_321 = arith.constant 0 : index
    %c1104 = arith.constant 1104 : index
    %620 = vector.load %arg2[%c0_321, %c1104] : memref<32x1280xf32, #tpu.memory_space<vmem>>, vector<16x32xf32>
    %cst_322 = arith.constant dense<0.000000e+00> : vector<4x32xf32>
    %621 = tpu.matmul %619, %620, %cst_322 {dimension_numbers = #tpu.dot_dimension_numbers<[1], [0], [0], [1], [0, 0, 1, 1], [], []>} : vector<4x16xf32>, vector<16x32xf32>, vector<4x32xf32> -> vector<4x32xf32>
    %c0_323 = arith.constant 0 : index
    %c662 = arith.constant 662 : index
    %622 = vector.load %arg3[%c0_323, %c662] : memref<1x768xf32, #tpu.memory_space<vmem>>, vector<1x32xf32>
    %623 = vector.broadcast %622 : vector<1x32xf32> to vector<4x32xf32>
    %624 = arith.addf %621, %623 : vector<4x32xf32>
    %625 = arith.addf %544, %624 : vector<4x32xf32>
    %cst_324 = arith.constant dense<0.000000e+00> : vector<2x32xf32>
    %626 = tpu.matmul %546, %625, %cst_324 {dimension_numbers = #tpu.dot_dimension_numbers<[1], [0], [0], [1], [0, 0, 1, 1], [], []>} : vector<2x4xf32>, vector<4x32xf32>, vector<2x32xf32> -> vector<2x32xf32>
    %cst_325 = arith.constant dense<0.000000e+00> : vector<4x32xf32>
    %627 = tpu.matmul %547, %626, %cst_325 {dimension_numbers = #tpu.dot_dimension_numbers<[1], [0], [0], [1], [0, 0, 1, 1], [], []>} : vector<4x2xf32>, vector<2x32xf32>, vector<4x32xf32> -> vector<4x32xf32>
    %628 = arith.subf %625, %627 : vector<4x32xf32>
    %629 = math.absf %628 : vector<4x32xf32>
    %cst_326 = arith.constant dense<0.000000e+00> : vector<2x32xf32>
    %630 = tpu.matmul %546, %629, %cst_326 {dimension_numbers = #tpu.dot_dimension_numbers<[1], [0], [0], [1], [0, 0, 1, 1], [], []>} : vector<2x4xf32>, vector<4x32xf32>, vector<2x32xf32> -> vector<2x32xf32>
    %631 = vector.extract_strided_slice %625 {offsets = [0, 0], sizes = [2, 32], strides = [1, 1]} : vector<4x32xf32> to vector<2x32xf32>
    %cst_327 = arith.constant dense<0xFF800000> : vector<32xf32>
    %632 = vector.multi_reduction <maximumf>, %631, %cst_327 [0] : vector<2x32xf32> to vector<32xf32>
    %633 = vector.shape_cast %632 : vector<32xf32> to vector<1x32xf32>
    %634 = vector.extract_strided_slice %625 {offsets = [2, 0], sizes = [2, 32], strides = [1, 1]} : vector<4x32xf32> to vector<2x32xf32>
    %cst_328 = arith.constant dense<0xFF800000> : vector<32xf32>
    %635 = vector.multi_reduction <maximumf>, %634, %cst_328 [0] : vector<2x32xf32> to vector<32xf32>
    %636 = vector.shape_cast %635 : vector<32xf32> to vector<1x32xf32>
    %637 = tpu.concatenate %633, %636 in 0 : vector<1x32xf32>, vector<1x32xf32> -> vector<2x32xf32>
    %c0_329 = arith.constant 0 : index
    %c1136 = arith.constant 1136 : index
    %638 = vector.load %arg2[%c0_329, %c1136] : memref<32x1280xf32, #tpu.memory_space<vmem>>, vector<32x16xf32>
    %cst_330 = arith.constant dense<0.000000e+00> : vector<2x16xf32>
    %639 = tpu.matmul %626, %638, %cst_330 {dimension_numbers = #tpu.dot_dimension_numbers<[1], [0], [0], [1], [0, 0, 1, 1], [], []>} : vector<2x32xf32>, vector<32x16xf32>, vector<2x16xf32> -> vector<2x16xf32>
    %c0_331 = arith.constant 0 : index
    %c1152 = arith.constant 1152 : index
    %640 = vector.load %arg2[%c0_331, %c1152] : memref<32x1280xf32, #tpu.memory_space<vmem>>, vector<32x16xf32>
    %cst_332 = arith.constant dense<0.000000e+00> : vector<2x16xf32>
    %641 = tpu.matmul %630, %640, %cst_332 {dimension_numbers = #tpu.dot_dimension_numbers<[1], [0], [0], [1], [0, 0, 1, 1], [], []>} : vector<2x32xf32>, vector<32x16xf32>, vector<2x16xf32> -> vector<2x16xf32>
    %642 = arith.addf %639, %641 : vector<2x16xf32>
    %c0_333 = arith.constant 0 : index
    %c1168 = arith.constant 1168 : index
    %643 = vector.load %arg2[%c0_333, %c1168] : memref<32x1280xf32, #tpu.memory_space<vmem>>, vector<32x16xf32>
    %cst_334 = arith.constant dense<0.000000e+00> : vector<2x16xf32>
    %644 = tpu.matmul %637, %643, %cst_334 {dimension_numbers = #tpu.dot_dimension_numbers<[1], [0], [0], [1], [0, 0, 1, 1], [], []>} : vector<2x32xf32>, vector<32x16xf32>, vector<2x16xf32> -> vector<2x16xf32>
    %645 = arith.addf %642, %644 : vector<2x16xf32>
    %c0_335 = arith.constant 0 : index
    %c1184 = arith.constant 1184 : index
    %646 = vector.load %arg2[%c0_335, %c1184] : memref<32x1280xf32, #tpu.memory_space<vmem>>, vector<2x16xf32>
    %cst_336 = arith.constant dense<0.000000e+00> : vector<2x16xf32>
    %647 = tpu.matmul %1, %646, %cst_336 {dimension_numbers = #tpu.dot_dimension_numbers<[1], [0], [0], [1], [0, 0, 1, 1], [], []>} : vector<2x2xf32>, vector<2x16xf32>, vector<2x16xf32> -> vector<2x16xf32>
    %648 = arith.addf %645, %647 : vector<2x16xf32>
    %c0_337 = arith.constant 0 : index
    %c694 = arith.constant 694 : index
    %649 = vector.load %arg3[%c0_337, %c694] : memref<1x768xf32, #tpu.memory_space<vmem>>, vector<1x16xf32>
    %650 = vector.broadcast %649 : vector<1x16xf32> to vector<2x16xf32>
    %651 = arith.addf %648, %650 : vector<2x16xf32>
    %cst_338 = arith.constant 0.000000e+00 : f32
    %652 = vector.broadcast %cst_338 : f32 to vector<2x16xf32>
    %653 = arith.cmpf oge, %651, %652 : vector<2x16xf32>
    %cst_339 = arith.constant 0.00999999977 : f32
    %654 = vector.broadcast %cst_339 : f32 to vector<2x16xf32>
    %655 = arith.mulf %654, %651 : vector<2x16xf32>
    %656 = arith.select %653, %651, %655 : vector<2x16xi1>, vector<2x16xf32>
    %c0_340 = arith.constant 0 : index
    %c1200 = arith.constant 1200 : index
    %657 = vector.load %arg2[%c0_340, %c1200] : memref<32x1280xf32, #tpu.memory_space<vmem>>, vector<16x1xf32>
    %cst_341 = arith.constant dense<0.000000e+00> : vector<2x1xf32>
    %658 = tpu.matmul %656, %657, %cst_341 {dimension_numbers = #tpu.dot_dimension_numbers<[1], [0], [0], [1], [0, 0, 1, 1], [], []>} : vector<2x16xf32>, vector<16x1xf32>, vector<2x1xf32> -> vector<2x1xf32>
    %c0_342 = arith.constant 0 : index
    %c710_343 = arith.constant 710 : index
    %659 = vector.load %arg3[%c0_342, %c710_343] : memref<1x768xf32, #tpu.memory_space<vmem>>, vector<1x1xf32>
    %660 = vector.broadcast %659 : vector<1x1xf32> to vector<2x1xf32>
    %661 = arith.addf %658, %660 : vector<2x1xf32>
    %662 = tpu.concatenate %131, %396, %661 in 1 : vector<2x1xf32>, vector<2x1xf32>, vector<2x1xf32> -> vector<2x3xf32>
    %c0_344 = arith.constant 0 : index
    %c0_345 = arith.constant 0 : index
    %663 = vector.load %arg4[%c0_344, %c0_345] : memref<2x3xf32, #tpu.memory_space<vmem>>, vector<2x3xf32>
    tpu.vector_store %arg4[%c0_344, %c0_345], %662 {strides = array<i32>} : memref<2x3xf32, #tpu.memory_space<vmem>>, vector<2x3xf32>,
    return
  }
}

</mosaic_0001>

<bundles_post_ra>
// kernel: model_forward.1
= control target key start
LH: loop header
LB: loop body
LE: loop exit
PB: predicated region body
PF: predicated region fallthrough
CT: control target
= control target key end

     0   :  { %15 = vsyncpa [#allocation3], 0  ;;  %s12980_s0 = inlined_call_operand.vmem [shape: f32[16,4], index: 0, kind: input, shape index: {}]   ;;  %s12981_s1 = inlined_call_operand.vmem [shape: f32[2,2], index: 1, kind: input, shape index: {}]   ;;  %s12982_s2 = inlined_call_operand.hbm [shape: f32[32,1280], index: 2, kind: input, shape index: {}]   ;;  %s12983_s3 = inlined_call_operand.vmem [shape: f32[1,768], index: 3, kind: input, shape index: {}]   ;;  %s12984_s4 = inlined_call_operand.vmem [shape: f32[2,3], index: 4, kind: output, shape index: {0}]   ;;  %s12985_s5 = inlined_call_operand.hbm [shape: f32[2,12], index: 5, kind: output, shape index: {1}]   ;;  %s12986_s6 = inlined_call_operand.hbm [shape: f32[16,16], index: 6, kind: output, shape index: {2}]   ;;  %s12987_s7 = inlined_call_operand.hbm [shape: f32[8,16], index: 7, kind: output, shape index: {3}]   ;;  %s12988_s8 = inlined_call_operand.hbm [shape: f32[8,32], index: 8, kind: output, shape index: {4}]   ;;  %s12989_s9 = inlined_call_operand.hbm [shape: f32[4,32], index: 9, kind: output, shape index: {5}]  }
   0x1   :  { %16 = vsyncpa [#allocation4], 0 }
   0x2   :  { %17 = vsyncpa [#allocation7], 0 }
   0x3   :  { %18 = vsyncpa [#allocation10], 0  ;;  %s11553_s30 = smov [#allocation2]   ;;  %s11413_s13 = scalar_lea.hbm %s12982_s2, 5120 }
   0x4   :  { %s28_s10 = sshll.u32 %s11553_s30, 4  ;;  %p11414_p0 = scmp.ne.s32.totalorder %s12982_s2, %s11413_s13  ;;  %s29_s10 = int_to_ptr.vmem [resolvable:$true] %s28_s10 }
   0x5   :  { %p11417_p1 = scmp.lt.u32.totalorder %s11413_s13, %s12982_s2 }
   0x7   :  { %p11419_p2 = pnand %p11417_p1, %p11414_p0 }
   0x9   :  { %11422 = shalt.err (!%p11419_p2)
}
   0xa   :  { %s11423_s18 = scalar_lea.vmem %s29_s10, 5120  ;;  %p11428_p4 = scmp.lt.s32.totalorder %s29_s10, %s29_s10 }
   0xb   :  { %p11424_p3 = scmp.ne.s32.totalorder %s29_s10, %s11423_s18  ;;  %p11429_p5 = scmp.lt.s32.totalorder %s11423_s18, %s11423_s18 }
   0xd   :  { %p11430_p6 = por %p11429_p5, %p11428_p4 }
   0xf   :  { %p11431_p7 = pnand %p11430_p6, %p11424_p3 }
  0x11   :  { %11434 = shalt.err (!%p11431_p7)
}
  0x12   :  { %s11554_s19 = smov 1280   ;;  %s11555_s20 = smov 80  }
  0x13   :  { %34 = dma.hbm_to_vmem [thread:$0]  %s12982_s2, 5120, %s29_s10, [#allocation3], %s11554_s19, %s11554_s19, %s11555_s20  }
  0x14   :  { %11545 = dma.done.wait [#allocation3], 5120  }
  0x15   :  { %11546 = vsyncadd [#allocation3], 4294962176  ;;  %v11556_v0 = vmov 0.0|0.0   ;;  %vm11557_vm0 = vmmov 0   ;;  %v11558_v1 = vmov 0.0   ;;  %v11701_v2 = vld [vmem:[%s12980_s0] sm:$0xff] }
  0x16   :  { %10773 = vmatprep.subr.bf16.mxu0 %v11556_v0  ;;  %10065 = vmatprep.mubr.msk.f32.mxu0 %vm11557_vm0, %v11558_v1  ;;  %v11706_v3 = vld [vmem:[%s12980_s0 + $0x8] sm:$0xff]  ;;  %v11710_v5 = vld [vmem:[#allocation2] sm:$0xff]  ;;  %s11559_s2 = smov 112   ;;  %s11560_s27 = smov 38   ;;  %vm46_vm1 = vcmask 130048   ;;  %v11720_v8 = vld [vmem:[#allocation2 + $0x50] sm:$0xff] }
  0x17   :  { %v10774_v4 = vpack.c.bf16 %v11706_v3, %v11701_v2  ;;  %v11712_v6 = vld [vmem:[#allocation2 + $0x20] sm:$0xf]  ;;  %122 = vrot.lane.b32.xlu0 %v11710_v5, %s11559_s2  ;;  %vm284_vm2 = vcmask 31744   ;;  %v418_v11 = vld [vmem:[#allocation2 + $0x70] sm:$0xff]  ;;  %s11561_s30 = smov 22   ;;  %vm126_vm3 = vcmask 15360  }
  0x18   :  { %322 = vrot.lane.b32.xlu1 %v11712_v6, %s11560_s27  ;;  %v11718_v7 = vld [vmem:[#allocation2] sm:$0x3]  ;;  %v11729_v9 = vld [vmem:[%s12983_s3 + $0x3] ss:$0 sm:$0xff]  ;;  %vm333_vm4 = vcmask 1043456   ;;  %vm131_vm5 = vcmask 1041408  }
  0x19   :  { %10775 = vmatpush3.bf16.msra.mxu0 %v10774_v4  ;;  %v417_v10 = vld [vmem:[#allocation2 + $0x20] sm:$0xff]  ;;  %s11562_s10 = smov 96   ;;  %s12990_s11 = smov 2   ;;  %v11792_v53 = vld [vmem:[#allocation2 + $0x28] sm:$0xf]  ;;  %vm299_vm10 = vcmask 1040384  }
  0x1a   :  { %v11073_v12 = vpack.i.bf16 %v418_v11, %v417_v10  ;;  %v754_v50 = vld [vmem:[#allocation2 + $0x20] sm:$0xf]  ;;  %s11564_s12 = smov 18   ;;  %s11565_s13 = smov 114   ;;  %v1000_v10 = vld [vmem:[#allocation2 + $0x78] sm:$0xff]  ;;  %vm1907_vm15 = vcmask 80896  }
  0x1b   :  { %124 = vrot.lane.b32.xlu0 %v11720_v8, %s11559_s2  ;;  %s11566_s14 = smov 92   ;;  %s11567_s15 = smov 98  }
  0x1c   :  { %10066 = vmatmul.mubr.msk.f32.vlgmr.msra.gmra.mrb[0].mxu0 %vm46_vm1, %v11718_v7  ;;  %324 = vrot.lane.b32.xlu1 %v11729_v9, %s11559_s2  ;;  %s11568_s16 = smov 76   ;;  %s11569_s17 = smov 78  }
  0x1d   :  { %10082 = vmatprep.mubr.msk.f32.mxu0 %vm284_vm2, %v11701_v2  ;;  %s11570_s18 = smov 94   ;;  %s11571_s19 = smov 72  }
  0x1e   :  { %s11572_s21 = smov 62   ;;  %s11573_s22 = smov 56  }
  0x1f   :  { %11074 = vrot.lane.b32.xlu0 %v11073_v12, %s11561_s30  ;;  %s12991_s23 = smov 58   ;;  %s11575_s24 = smov 42  }
  0x20   :  { %427 = vrot.lane.b32.xlu1 %v11729_v9, %s11562_s10  ;;  %s11576_s25 = smov 10   ;;  %s11577_s26 = smov 26  }
  0x21   :  { %s11586_s28 = smov 32   ;;  %s11587_s29 = smov 30  }
  0x23   :  { %758 = vrot.lane.b32.xlu0 %v754_v50, %s12990_s11 }
  0x24   :  { %760 = vrot.lane.b32.xlu1 %v11792_v53, %s12990_s11  ;;  %s11589_s11 = smov 54  }
  0x27   :  { %838 = vrot.lane.b32.xlu0 %v11712_v6, %s11564_s12  ;;  %v999_v6 = vld [vmem:[#allocation2 + $0x28] sm:$0xff]  ;;  %s12996_s12 = smov 52  }
  0x28   :  { %914 = vrot.lane.b32.xlu1 %v11792_v53, %s11565_s13  ;;  %v11812_v11 = vpack.i.bf16 %v1000_v10, %v999_v6  ;;  %s12992_s13 = smov 122  }
  0x2b   :  { %992 = vrot.lane.b32.xlu0 %v11729_v9, %s11566_s14  ;;  %s12993_s14 = smov 126  }
  0x2c   :  { %11079 = vrot.lane.b32.xlu1 %v11812_v11, %s11567_s15  ;;  %s11590_s15 = smov 120  }
  0x2f   :  { %1009 = vrot.lane.b32.xlu0 %v11729_v9, %s11568_s16  ;;  %s11580_s16 = smov 46  }
  0x30   :  { %1088 = vrot.lane.b32.xlu1 %v11792_v53, %s11569_s17 }
  0x33   :  { %1243 = vrot.lane.b32.xlu0 %v11792_v53, %s11570_s18 }
  0x34   :  { %1328 = vrot.lane.b32.xlu1 %v11729_v9, %s11571_s19 }
  0x37   :  { %11084 = vrot.lane.b32.xlu0 %v11812_v11, %s11572_s21 }
  0x38   :  { %1345 = vrot.lane.b32.xlu1 %v11729_v9, %s11573_s22 }
  0x3b   :  { %1668 = vrot.lane.b32.xlu0 %v11792_v53, %s11575_s24  ;;  %s11581_s24 = smov 6  }
  0x3c   :  { %1745 = vrot.lane.b32.xlu1 %v11792_v53, %s12991_s23  ;;  %s11593_s23 = smov 8  }
  0x3f   :  { %1821 = vrot.lane.b32.xlu0 %v11792_v53, %s11577_s26  ;;  %s12994_s26 = smov 16  }
  0x89   :  { %v11736_v13 = vpop.permute.xlu0 %122 }
  0x8a   :  { %v323_v14 = vpop.permute.xlu1 %322  ;;  %10070 = vmatprep.mubr.msk.f32.mxu1 %vm126_vm3, %v11736_v13 }
  0x8b   :  { %10080 = vmatprep.subr.msk.mxu0 %vm333_vm4, %v323_v14 }
  0x8c   :  { %10081 = vmatpush3.msk.msra.mxu0 %vm333_vm4, %v323_v14 }
  0x8d   :  { %10083 = vmatmul.mubr.msk.f32.vlgmr.msra.gmra.mrb[2].mxu0 %vm284_vm2, %v11706_v3  ;;  %10783 = vmatprep.subr.bf16.mxu0 %v11556_v0  ;;  %v11749_v16 = vpop.permute.xlu0 %124 }
  0x8e   :  { %10096 = vmatprep.mubr.msk.f32.mxu0 %vm11557_vm0, %v11558_v1  ;;  %v325_v20 = vpop.permute.xlu1 %324 }
  0x91   :  { %v11075_v21 = vpop.permute.xlu0 %11074 }
  0x92   :  { %v11077_v26 = vunpack.i.h.bf16 %v11075_v21  ;;  %v11076_v27 = vunpack.i.l.bf16 %v11075_v21  ;;  %v428_v40 = vpop.permute.xlu1 %427 }
  0x94   :  { %v10779_v32 = vpack.c.bf16 %v11077_v26, %v11076_v27 }
  0x95   :  { %v759_v58 = vpop.permute.xlu0 %758 }
  0x96   :  { %v761_v59 = vpop.permute.xlu1 %760 }
  0x97   :  { %v762_v61 = vsel %vm126_vm3, %v759_v58, %v761_v59 }
  0x99   :  { %v839_v4 = vpop.permute.xlu0 %838 }
  0x9a   :  { %v915_v27 = vpop.permute.xlu1 %914 }
  0xef   :  { %v11747_v15 = vpop.f32.mrb[0].mxu0 }
  0xf0   :  { %v10067_v17 = vpop.f32.mrb[1].mxu0  ;;  %10068 = vmatprep.subr.msk.mxu1 %vm131_vm5, %v11747_v15 }
  0xf1   :  { %10069 = vmatpush3.msk.msra.mxu1 %vm131_vm5, %v11747_v15 }
  0xf2   :  { %10071 = vmatmul.mubr.msk.f32.vlgmr.msra.gmra.mrb[0].mxu1 %vm126_vm3, %v11749_v16  ;;  %10776 = vmatprep.subr.bf16.mxu1 %v11556_v0 }
  0xf3   :  { %10077 = vmatprep.mubr.msk.f32.mxu1 %vm11557_vm0, %v11558_v1 }
 0x160   :  { %v10084_v18 = vpop.f32.mrb[2].mxu0 }
 0x161   :  { %v402_v19 = vpop.f32.mrb[3].mxu0  ;;  %v408_v34 = vadd.f32 %v10084_v18, %v325_v20 }
 0x162   :  { %v403_v25 = vadd.f32 %v402_v19, %v325_v20 }
 0x163   :  { %v414_v36 = vmul.f32 0.01, %v408_v34  ;;  %vm412_vm7 = vcmp.ge.f32.partialorder %v408_v34, 0.0 }
 0x164   :  { %v413_v31 = vmul.f32 0.01, %v403_v25  ;;  %vm411_vm6 = vcmp.ge.f32.partialorder %v403_v25, 0.0 }
 0x165   :  { %v416_v37 = vsel %vm412_vm7, %v408_v34, %v414_v36 }
 0x166   :  { %v415_v35 = vsel %vm411_vm6, %v403_v25, %v413_v31 }
 0x1c5   :  { %v10072_v22 = vpop.f32.mrb[0].mxu1 }
 0x1c6   :  { %v211_v23 = vsub.f32 %v11706_v3, %v10072_v22  ;;  %v201_v24 = vpop.f32.mrb[1].mxu1 }
 0x1c7   :  { %v210_v28 = vsub.f32 %v11701_v2, %v201_v24 }
 0x1c8   :  { %v213_v29 = vand.u32 2147483647, %v211_v23 }
 0x1c9   :  { %v212_v30 = vand.u32 2147483647, %v210_v28 }
 0x1cb   :  { %v10777_v33 = vpack.c.bf16 %v213_v29, %v212_v30 }
 0x1cd   :  { %10778 = vmatpush3.bf16.msra.mxu1 %v10777_v33 }
 0x1ce   :  { %10780 = vmatprep.subr.bf16.mxu1 %v10779_v32 }
 0x1d0   :  { %10078 = vmatmul.mubr.msk.f32.vlgmr.msra.gmra.mrb[2].mxu1 %vm46_vm1, %v11718_v7 }
 0x1d1   :  { %10782 = vmatpush3.bf16.msra.mxu1 %v10779_v32  ;;  %10089 = vmatprep.mubr.msk.f32.mxu1 %vm46_vm1, %v415_v35  ;;  %v11080_v35 = vpop.permute.xlu1 %11079 }
 0x1d2   :  { %v11082_v36 = vunpack.i.h.bf16 %v11080_v35 }
 0x1d4   :  { %10090 = vmatmul.mubr.msk.f32.vlgmr.msra.gmra.mrb[4].mxu1 %vm46_vm1, %v416_v37  ;;  %v11081_v37 = vunpack.i.l.bf16 %v11080_v35 }
 0x1d5   :  { %10101 = vmatprep.mubr.msk.f32.mxu1 %vm126_vm3, %v11736_v13 }
 0x2a3   :  { %v11770_v38 = vpop.f32.mrb[2].mxu1 }
 0x2a4   :  { %v10079_v39 = vpop.f32.mrb[3].mxu1 }
 0x2a5   :  { %v10790_v39 = vpack.c.bf16 %v11082_v36, %v11081_v37 }
 0x2a7   :  { %v10091_v41 = vpop.f32.mrb[4].mxu1 }
 0x2a8   :  { %v508_v42 = vadd.f32 %v10091_v41, %v428_v40  ;;  %v502_v43 = vpop.f32.mrb[5].mxu1 }
 0x2a9   :  { %v503_v44 = vadd.f32 %v502_v43, %v428_v40 }
 0x2aa   :  { %vm512_vm8 = vcmp.ge.f32.partialorder %v508_v42, 0.0  ;;  %v514_v45 = vmul.f32 0.01, %v508_v42 }
 0x2ab   :  { %vm511_vm9 = vcmp.ge.f32.partialorder %v503_v44, 0.0  ;;  %v513_v46 = vmul.f32 0.01, %v503_v44 }
 0x2ac   :  { %v11772_v47 = vsel %vm512_vm8, %v508_v42, %v514_v45 }
 0x2ad   :  { %v11774_v48 = vsel %vm511_vm9, %v503_v44, %v513_v46  ;;  %v746_v12 = vsel %vm284_vm2, %v11772_v47, -inf  ;;  %v993_v44 = vpop.permute.xlu0 %992 }
 0x2ae   :  { %v10784_v49 = vpack.c.bf16 %v11772_v47, %v11774_v48  ;;  %v739_v14 = vsel %vm284_vm2, %v11774_v48, -inf  ;;  %v747_v17 = vrot.slane %v746_v12, 4 }
 0x2af   :  { %v740_v18 = vrot.slane %v739_v14, 4 }
 0x2b0   :  { %10785 = vmatpush3.bf16.msra.mxu0 %v10784_v49  ;;  %v748_v19 = vmax.f32 %v746_v12, %v747_v17 }
 0x2b1   :  { %10786 = vmatprep.subr.bf16.mxu0 %v11556_v0  ;;  %v741_v20 = vmax.f32 %v739_v14, %v740_v18 }
 0x2b2   :  { %v749_v21 = vrot.slane %v748_v19, 2 }
 0x2b3   :  { %10097 = vmatmul.mubr.msk.f32.vlgmr.msra.gmra.mrb[4].mxu0 %vm46_vm1, %v11718_v7  ;;  %v742_v22 = vrot.slane %v741_v20, 2 }
 0x2b4   :  { %10108 = vmatprep.mubr.msk.f32.mxu0 %vm11557_vm0, %v11558_v1  ;;  %v750_v23 = vmax.f32 %v748_v19, %v749_v21 }
 0x2b5   :  { %v743_v24 = vmax.f32 %v741_v20, %v742_v22 }
 0x2b6   :  { %v751_v26 = vrot.slane %v750_v23, 1 }
 0x2b7   :  { %v744_v25 = vrot.slane %v743_v24, 1 }
 0x2b8   :  { %v752_v30 = vmax.f32 %v750_v23, %v751_v26 }
 0x2b9   :  { %v745_v29 = vmax.f32 %v743_v24, %v744_v25 }
 0x2bb   :  { %v753_v33 = vsel %vm299_vm10, %v745_v29, %v752_v30 }
 0x386   :  { %v583_v51 = vpop.f32.mrb[4].mxu0 }
 0x387   :  { %v10098_v52 = vpop.f32.mrb[5].mxu0  ;;  %10099 = vmatprep.subr.msk.mxu1 %vm131_vm5, %v583_v51 }
 0x388   :  { %10100 = vmatpush3.msk.msra.mxu1 %vm131_vm5, %v583_v51  ;;  %v1089_v52 = vpop.permute.xlu1 %1088 }
 0x389   :  { %10102 = vmatmul.mubr.msk.f32.vlgmr.msra.gmra.mrb[6].mxu1 %vm126_vm3, %v11749_v16  ;;  %10111 = vmatprep.subr.mxu1 %v11558_v1 }
 0x38a   :  { %10113 = vmatprep.mubr.msk.f32.mxu1 %vm11557_vm0, %v11558_v1  ;;  %10112 = vmatpush3.msk.msra.mxu1 %vm333_vm4, %v762_v61 }
 0x38b   :  { %10121 = vmatprep.subr.mxu1 %v11558_v1 }
 0x45c   :  { %v10103_v54 = vpop.f32.mrb[6].mxu1 }
 0x45d   :  { %v666_v55 = vsub.f32 %v11772_v47, %v10103_v54  ;;  %v656_v56 = vpop.f32.mrb[7].mxu1  ;;  %v1010_v54 = vpop.permute.xlu0 %1009 }
 0x45e   :  { %v665_v57 = vsub.f32 %v11774_v48, %v656_v56 }
 0x45f   :  { %v668_v60 = vand.u32 2147483647, %v666_v55 }
 0x460   :  { %v667_v62 = vand.u32 2147483647, %v665_v57 }
 0x461   :  { %v1244_v61 = vpop.permute.xlu0 %1243 }
 0x462   :  { %v10787_v63 = vpack.c.bf16 %v668_v60, %v667_v62 }
 0x464   :  { %10788 = vmatpush3.bf16.msra.mxu0 %v10787_v63 }
 0x465   :  { %10116 = vmatprep.subr.mxu0 %v11558_v1  ;;  %v11085_v63 = vpop.permute.xlu0 %11084 }
 0x466   :  { %v11086_v6 = vunpack.i.l.bf16 %v11085_v63 }
 0x467   :  { %10109 = vmatmul.mubr.msk.f32.vlgmr.msra.gmra.mrb[6].mxu0 %vm46_vm1, %v11718_v7 }
 0x468   :  { %10117 = vmatpush3.msk.msra.mxu0 %vm333_vm4, %v839_v4  ;;  %10118 = vmatprep.mubr.msk.f32.mxu0 %vm11557_vm0, %v11558_v1  ;;  %v11087_v4 = vunpack.i.h.bf16 %v11085_v63 }
 0x469   :  { %10789 = vmatprep.subr.bf16.mxu0 %v11556_v0 }
 0x46a   :  { %v10792_v10 = vpack.c.bf16 %v11087_v4, %v11086_v6 }
 0x46b   :  { %10119 = vmatmul.mubr.msk.f32.vlgmr.msra.gmra.mrb[8].mxu0 %vm284_vm2, %v583_v51 }
 0x46c   :  { %10130 = vmatprep.mubr.msk.f32.mxu0 %vm11557_vm0, %v11558_v1  ;;  %10791 = vmatpush3.bf16.msra.mxu0 %v10790_v39  ;;  %v1669_v39 = vpop.permute.xlu0 %1668 }
 0x53a   :  { %v735_v28 = vpop.f32.mrb[6].mxu0 }
 0x53b   :  { %v10110_v31 = vpop.f32.mrb[7].mxu0  ;;  %10114 = vmatmul.mubr.msk.f32.vlgmr.msra.gmra.mrb[8].mxu1 %vm284_vm2, %v735_v28 }
 0x53c   :  { %10122 = vmatpush3.msk.msra.mxu1 %vm333_vm4, %v915_v27  ;;  %10123 = vmatprep.mubr.msk.f32.mxu1 %vm11557_vm0, %v11558_v1  ;;  %v1899_v31 = vld [vmem:[#allocation2 + $0x28] sm:$0x3] }
 0x53d   :  { %10133 = vmatprep.subr.mxu1 %v11558_v1  ;;  %1903 = vrot.lane.b32.xlu1 %v1899_v31, %s11576_s25 }
 0x53e   :  { %v910_v32 = vpop.f32.mrb[8].mxu0 }
 0x53f   :  { %v10120_v34 = vpop.f32.mrb[9].mxu0  ;;  %10124 = vmatmul.mubr.msk.f32.vlgmr.msra.gmra.mrb[10].mxu1 %vm284_vm2, %v753_v33  ;;  %v1900_v33 = vld [vmem:[#allocation2 + $0x30] sm:$0x3] }
 0x540   :  { %10135 = vmatprep.mubr.msk.f32.mxu1 %vm11557_vm0, %v11558_v1  ;;  %10134 = vmatpush3.msk.msra.mxu1 %vm333_vm4, %v1089_v52  ;;  %v1993_v52 = vld [vmem:[#allocation2 + $0x80] sm:$0xff] }
 0x541   :  { %10793 = vmatprep.subr.bf16.mxu1 %v10792_v10  ;;  %1905 = vrot.lane.b32.xlu0 %v1900_v33, %s11576_s25  ;;  %s11584_s25 = smov 48  }
 0x545   :  { %1985 = vrot.lane.b32.xlu0 %v11729_v9, %s12996_s12  ;;  %s11605_s12 = smov 37  }
 0x60e   :  { %v834_v40 = vpop.f32.mrb[8].mxu1 }
 0x60f   :  { %v911_v41 = vadd.f32 %v910_v32, %v834_v40  ;;  %v10115_v42 = vpop.f32.mrb[9].mxu1  ;;  %v2078_v32 = vld [vmem:[#allocation2] sm:$0xf] }
 0x610   :  { %2087 = vrot.lane.b32.xlu1 %v2078_v32, %s11570_s18 }
 0x612   :  { %v987_v43 = vpop.f32.mrb[10].mxu1 }
 0x613   :  { %v991_v45 = vadd.f32 %v987_v43, %v911_v41  ;;  %v10125_v46 = vpop.f32.mrb[11].mxu1  ;;  %v1822_v43 = vpop.permute.xlu0 %1821 }
 0x615   :  { %v995_v49 = vadd.f32 %v993_v44, %v991_v45 }
 0x617   :  { %vm996_vm11 = vcmp.ge.f32.partialorder %v995_v49, 0.0  ;;  %v997_v50 = vmul.f32 0.01, %v995_v49  ;;  %v1906_v45 = vpop.permute.xlu0 %1905 }
 0x619   :  { %v998_v51 = vsel %vm996_vm11, %v995_v49, %v997_v50  ;;  %v42_v49 = vld [vmem:[%s12981_s1] sm:$0x3] }
 0x61a   :  { %10131 = vmatmul.mubr.msk.f32.vlgmr.msra.gmra.mrb[10].mxu0 %vm46_vm1, %v998_v51  ;;  %v1992_v51 = vld [vmem:[#allocation2 + $0x30] sm:$0xff] }
 0x61b   :  { %10140 = vmatprep.mubr.msk.f32.mxu0 %vm126_vm3, %v11736_v13 }
 0x6ed   :  { %v1081_v55 = vpop.f32.mrb[10].mxu0 }
 0x6ee   :  { %v1082_v56 = vadd.f32 %v1081_v55, %v1010_v54  ;;  %v10132_v57 = vpop.f32.mrb[11].mxu0  ;;  %v11910_v54 = vpack.i.bf16 %v1993_v52, %v1992_v51  ;;  %v11916_v55 = vpack.i.bf16 %v11720_v8, %v11710_v5 }
 0x6f0   :  { %vm1085_vm12 = vcmp.ge.f32.partialorder %v1082_v56, 0.0  ;;  %v1086_v58 = vmul.f32 0.01, %v1082_v56  ;;  %11089 = vrot.lane.b32.xlu1 %v11910_v54, %s12992_s13  ;;  %11094 = vrot.lane.b32.xlu0 %v11916_v55, %s11569_s17  ;;  %s11596_s13 = smov 19  }
 0x6f2   :  { %v1087_v59 = vsel %vm1085_vm12, %v1082_v56, %v1086_v58 }
 0x6f3   :  { %10136 = vmatmul.mubr.msk.f32.vlgmr.msra.gmra.mrb[12].mxu1 %vm284_vm2, %v1087_v59 }
 0x6f4   :  { %10795 = vmatpush3.bf16.msra.mxu1 %v10792_v10  ;;  %11099 = vrot.lane.b32.xlu1 %v11916_v55, %s11572_s21 }
 0x6f5   :  { %10796 = vmatprep.subr.bf16.mxu1 %v11556_v0 }
 0x7c6   :  { %v1161_v60 = vpop.f32.mrb[12].mxu1 }
 0x7c7   :  { %v10137_v62 = vpop.f32.mrb[13].mxu1  ;;  %10138 = vmatprep.subr.msk.mxu0 %vm131_vm5, %v1161_v60 }
 0x7c8   :  { %10139 = vmatpush3.msk.msra.mxu0 %vm131_vm5, %v1161_v60 }
 0x7c9   :  { %10141 = vmatmul.mubr.msk.f32.vlgmr.msra.gmra.mrb[12].mxu0 %vm126_vm3, %v11749_v16  ;;  %10143 = vmatprep.subr.msk.mxu0 %vm333_vm4, %v1244_v61 }
 0x7ca   :  { %10145 = vmatprep.mubr.msk.f32.mxu0 %vm284_vm2, %v11774_v48  ;;  %10144 = vmatpush3.msk.msra.mxu0 %vm333_vm4, %v1244_v61  ;;  %v1329_v48 = vpop.permute.xlu1 %1328 }
 0x7ce   :  { %v1346_v21 = vpop.permute.xlu1 %1345 }
 0x7d1   :  { %10146 = vmatmul.mubr.msk.f32.vlgmr.msra.gmra.mrb[12].mxu0 %vm284_vm2, %v11772_v47 }
 0x7d2   :  { %10164 = vmatprep.mubr.msk.f32.mxu0 %vm126_vm3, %v11736_v13  ;;  %v1746_v53 = vpop.permute.xlu1 %1745 }
 0x7d6   :  { %v1904_v44 = vpop.permute.xlu1 %1903 }
 0x7d7   :  { %v1908_v46 = vsel %vm1907_vm15, %v1904_v44, %v1906_v45  ;;  %vm2856_vm15 = vcmask 48128  }
 0x7da   :  { %v2088_v50 = vpop.permute.xlu1 %2087 }
 0x8a4   :  { %v10147_v11 = vpop.f32.mrb[12].mxu0 }
 0x8a5   :  { %v1332_v12 = vadd.f32 %v10147_v11, %v1329_v48  ;;  %v1319_v14 = vpop.f32.mrb[13].mxu0 }
 0x8a6   :  { %v1331_v47 = vadd.f32 %v1329_v48, %v1319_v14 }
 0x8a7   :  { %v1336_v17 = vmul.f32 0.01, %v1332_v12  ;;  %vm1334_vm13 = vcmp.ge.f32.partialorder %v1332_v12, 0.0 }
 0x8a8   :  { %vm1333_vm14 = vcmp.ge.f32.partialorder %v1331_v47, 0.0  ;;  %v1335_v18 = vmul.f32 0.01, %v1331_v47 }
 0x8a9   :  { %v1338_v20 = vsel %vm1334_vm13, %v1332_v12, %v1336_v17  ;;  %v11090_v17 = vpop.permute.xlu1 %11089 }
 0x8aa   :  { %v1337_v19 = vsel %vm1333_vm14, %v1331_v47, %v1335_v18  ;;  %v1986_v47 = vpop.permute.xlu0 %1985  ;;  %vm310_vm14 = vcmask 64512  }
 0x8ab   :  { %10152 = vmatprep.mubr.msk.f32.mxu1 %vm46_vm1, %v1337_v19  ;;  %v11092_v19 = vunpack.i.h.bf16 %v11090_v17 }
 0x8ac   :  { %10153 = vmatmul.mubr.msk.f32.vlgmr.msra.gmra.mrb[14].mxu1 %vm46_vm1, %v1338_v20  ;;  %v11091_v20 = vunpack.i.l.bf16 %v11090_v17 }
 0x8ad   :  { %10159 = vmatprep.mubr.msk.f32.mxu1 %vm11557_vm0, %v11558_v1 }
 0x97f   :  { %v10154_v22 = vpop.f32.mrb[14].mxu1 }
 0x980   :  { %v1426_v23 = vadd.f32 %v10154_v22, %v1346_v21  ;;  %v1420_v24 = vpop.f32.mrb[15].mxu1  ;;  %v10803_v22 = vpack.c.bf16 %v11092_v19, %v11091_v20 }
 0x981   :  { %v1421_v25 = vadd.f32 %v1420_v24, %v1346_v21  ;;  %v11942_v24 = vld [vmem:[%s12983_s3] ss:$0 sm:$0xff] }
 0x982   :  { %v11863_v26 = vadd.f32 %v1426_v23, %v11706_v3  ;;  %2182 = vrot.lane.b32.xlu0 %v11942_v24, %s11559_s2  ;;  %2272 = vrot.lane.b32.xlu1 %v11942_v24, %s11562_s10 }
 0x983   :  { %v11866_v27 = vadd.f32 %v1421_v25, %v11701_v2  ;;  %v11095_v25 = vpop.permute.xlu0 %11094 }
 0x985   :  { %v10797_v28 = vpack.c.bf16 %v11863_v26, %v11866_v27  ;;  %v1653_v8 = vsel %vm284_vm2, %v11866_v27, -inf }
 0x986   :  { %v1654_v56 = vrot.slane %v1653_v8, 4  ;;  %2368 = vrot.lane.b32.xlu1 %v11942_v24, %s11555_s20  ;;  %11104 = vrot.lane.b32.xlu0 %v11916_v55, %s11580_s16 }
 0x987   :  { %10798 = vmatpush3.bf16.msra.mxu1 %v10797_v28  ;;  %v11096_v28 = vunpack.i.l.bf16 %v11095_v25 }
 0x988   :  { %10799 = vmatprep.subr.bf16.mxu1 %v11556_v0  ;;  %v1655_v58 = vmax.f32 %v1653_v8, %v1654_v56 }
 0x98a   :  { %10160 = vmatmul.mubr.msk.f32.vlgmr.msra.gmra.mrb[16].mxu1 %vm46_vm1, %v11718_v7  ;;  %v1656_v60 = vrot.slane %v1655_v58, 2  ;;  %2773 = vrot.lane.b32.xlu1 %v11710_v5, %s11560_s27 }
 0x98b   :  { %10171 = vmatprep.mubr.msk.f32.mxu1 %vm11557_vm0, %v11558_v1  ;;  %2697 = vrot.lane.b32.xlu0 %v11710_v5, %s11561_s30 }
 0x98f   :  { %2852 = vrot.lane.b32.xlu0 %v11710_v5, %s11581_s24 }
 0x993   :  { %2933 = vrot.lane.b32.xlu0 %v11942_v24, %s11571_s19  ;;  %s11582_s19 = smov 118  }
 0x997   :  { %2950 = vrot.lane.b32.xlu0 %v11942_v24, %s11573_s22  ;;  %s11583_s22 = smov 110  }
 0x9f4   :  { %v2183_v8 = vpop.permute.xlu0 %2182 }
 0x9f8   :  { %v11105_v55 = vpop.permute.xlu0 %11104 }
 0xa5d   :  { %v1497_v29 = vpop.f32.mrb[16].mxu1 }
 0xa5e   :  { %v10161_v30 = vpop.f32.mrb[17].mxu1  ;;  %10162 = vmatprep.subr.msk.mxu0 %vm131_vm5, %v1497_v29 }
 0xa5f   :  { %10163 = vmatpush3.msk.msra.mxu0 %vm131_vm5, %v1497_v29 }
 0xa60   :  { %10165 = vmatmul.mubr.msk.f32.vlgmr.msra.gmra.mrb[14].mxu0 %vm126_vm3, %v11749_v16  ;;  %10174 = vmatprep.subr.mxu0 %v11558_v1 }
 0xa61   :  { %10176 = vmatprep.mubr.msk.f32.mxu0 %vm11557_vm0, %v11558_v1  ;;  %10175 = vmatpush3.msk.msra.mxu0 %vm333_vm4, %v1669_v39 }
 0xa62   :  { %10184 = vmatprep.subr.mxu0 %v11558_v1 }
 0xb33   :  { %v10166_v34 = vpop.f32.mrb[14].mxu0 }
 0xb34   :  { %v1580_v35 = vsub.f32 %v11863_v26, %v10166_v34  ;;  %v1570_v36 = vpop.f32.mrb[15].mxu0 }
 0xb35   :  { %v1579_v37 = vsub.f32 %v11866_v27, %v1570_v36  ;;  %v11097_v27 = vunpack.i.h.bf16 %v11095_v25 }
 0xb36   :  { %v1582_v40 = vand.u32 2147483647, %v1580_v35 }
 0xb37   :  { %v1581_v41 = vand.u32 2147483647, %v1579_v37 }
 0xb39   :  { %v10800_v42 = vpack.c.bf16 %v1582_v40, %v1581_v41 }
 0xb3b   :  { %10801 = vmatpush3.bf16.msra.mxu1 %v10800_v42 }
 0xb3c   :  { %10179 = vmatprep.subr.mxu1 %v11558_v1 }
 0xb3e   :  { %10172 = vmatmul.mubr.msk.f32.vlgmr.msra.gmra.mrb[18].mxu1 %vm46_vm1, %v11718_v7 }
 0xb3f   :  { %10180 = vmatpush3.msk.msra.mxu1 %vm333_vm4, %v1746_v53  ;;  %10181 = vmatprep.mubr.msk.f32.mxu1 %vm11557_vm0, %v11558_v1 }
 0xb40   :  { %10189 = vmatprep.subr.mxu1 %v11558_v1 }
 0xb42   :  { %10182 = vmatmul.mubr.msk.f32.vlgmr.msra.gmra.mrb[20].mxu1 %vm284_vm2, %v1497_v29  ;;  %v10805_v29 = vpack.c.bf16 %v11097_v27, %v11096_v28  ;;  %v11996_v28 = vld [vmem:[#allocation2 + $0x8] sm:$0xff] }
 0xb43   :  { %10191 = vmatprep.mubr.msk.f32.mxu1 %vm11557_vm0, %v11558_v1  ;;  %10190 = vmatpush3.msk.msra.mxu1 %vm131_vm5, %v1908_v46  ;;  %v11100_v46 = vpop.permute.xlu1 %11099 }
 0xb44   :  { %10201 = vmatprep.subr.msk.mxu1 %vm333_vm4, %v2088_v50  ;;  %2854 = vrot.lane.b32.xlu1 %v11996_v28, %s11581_s24 }
 0xb45   :  { %3183 = vrot.lane.b32.xlu0 %v11996_v28, %s11583_s22 }
 0xb46   :  { %10192 = vmatmul.mubr.msk.f32.vlgmr.msra.gmra.mrb[22].mxu1 %vm126_vm3, %v42_v49  ;;  %v11102_v49 = vunpack.i.h.bf16 %v11100_v46 }
 0xb47   :  { %10202 = vmatpush3.msk.msra.mxu1 %vm333_vm4, %v2088_v50  ;;  %10203 = vmatprep.mubr.msk.f32.mxu1 %vm284_vm2, %v11701_v2  ;;  %v1660_v2 = vsel %vm284_vm2, %v11863_v26, -inf  ;;  %v11101_v50 = vunpack.i.l.bf16 %v11100_v46 }
 0xb48   :  { %v1661_v9 = vrot.slane %v1660_v2, 4 }
 0xb49   :  { %v10809_v51 = vpack.c.bf16 %v11102_v49, %v11101_v50 }
 0xb4a   :  { %10204 = vmatmul.mubr.msk.f32.vlgmr.msra.gmra.mrb[24].mxu1 %vm284_vm2, %v11706_v3  ;;  %v1662_v57 = vmax.f32 %v1660_v2, %v1661_v9  ;;  %v1657_v3 = vmax.f32 %v1655_v58, %v1656_v60  ;;  %v11106_v60 = vunpack.i.l.bf16 %v11105_v55 }
 0xb4b   :  { %10810 = vmatprep.subr.bf16.mxu1 %v10809_v51 }
 0xb4c   :  { %v1663_v59 = vrot.slane %v1662_v57, 2  ;;  %v1658_v63 = vrot.slane %v1657_v3, 1  ;;  %10812 = vmatpush3.bf16.msra.mxu1 %v10809_v51 }
 0xb4d   :  { %10817 = vmatprep.subr.bf16.mxu1 %v11556_v0 }
 0xb4e   :  { %v1664_v61 = vmax.f32 %v1662_v57, %v1663_v59  ;;  %v1659_v6 = vmax.f32 %v1657_v3, %v1658_v63  ;;  %v11107_v59 = vunpack.i.h.bf16 %v11105_v55  ;;  %v2273_v3 = vpop.permute.xlu1 %2272 }
 0xb50   :  { %v1665_v62 = vrot.slane %v1664_v61, 1 }
 0xb52   :  { %v1666_v10 = vmax.f32 %v1664_v61, %v1665_v62  ;;  %v10813_v61 = vpack.c.bf16 %v11107_v59, %v11106_v60 }
 0xb54   :  { %v1667_v12 = vsel %vm299_vm10, %v1659_v6, %v1666_v10 }
 0xc11   :  { %v1649_v4 = vpop.f32.mrb[18].mxu1 }
 0xc12   :  { %v10173_v48 = vpop.f32.mrb[19].mxu1  ;;  %10177 = vmatmul.mubr.msk.f32.vlgmr.msra.gmra.mrb[16].mxu0 %vm284_vm2, %v1649_v4 }
 0xc13   :  { %10185 = vmatpush3.msk.msra.mxu0 %vm333_vm4, %v1822_v43  ;;  %10186 = vmatprep.mubr.msk.f32.mxu0 %vm11557_vm0, %v11558_v1 }
 0xc14   :  { %10802 = vmatprep.subr.bf16.mxu0 %v11556_v0 }
 0xc15   :  { %v1817_v11 = vpop.f32.mrb[20].mxu1 }
 0xc16   :  { %v10183_v14 = vpop.f32.mrb[21].mxu1  ;;  %10187 = vmatmul.mubr.msk.f32.vlgmr.msra.gmra.mrb[18].mxu0 %vm284_vm2, %v1667_v12 }
 0xc17   :  { %10198 = vmatprep.mubr.msk.f32.mxu0 %vm11557_vm0, %v11558_v1  ;;  %10804 = vmatpush3.bf16.msra.mxu0 %v10803_v22  ;;  %v2369_v14 = vpop.permute.xlu1 %2368 }
 0xc18   :  { %10806 = vmatprep.subr.bf16.mxu0 %v10805_v29 }
 0xc19   :  { %v1980_v18 = vpop.f32.mrb[22].mxu1 }
 0xc1a   :  { %v10193_v21 = vpop.f32.mrb[23].mxu1 }
 0xc1b   :  { %v2774_v5 = vpop.permute.xlu1 %2773 }
 0xc1d   :  { %v10205_v23 = vpop.f32.mrb[24].mxu1 }
 0xc1e   :  { %v2157_v26 = vpop.f32.mrb[25].mxu1  ;;  %v2163_v41 = vadd.f32 %v10205_v23, %v11942_v24 }
 0xc1f   :  { %v2158_v34 = vadd.f32 %v11942_v24, %v2157_v26  ;;  %v2855_v50 = vpop.permute.xlu1 %2854 }
 0xc20   :  { %v2169_v43 = vmul.f32 0.01, %v2163_v41  ;;  %vm2167_vm8 = vcmp.ge.f32.partialorder %v2163_v41, 0.0 }
 0xc21   :  { %v2168_v39 = vmul.f32 0.01, %v2158_v34  ;;  %vm2166_vm6 = vcmp.ge.f32.partialorder %v2158_v34, 0.0 }
 0xc22   :  { %v2171_v45 = vsel %vm2167_vm8, %v2163_v41, %v2169_v43 }
 0xc23   :  { %v2170_v53 = vsel %vm2166_vm6, %v2158_v34, %v2168_v39 }
 0xce5   :  { %v1741_v30 = vpop.f32.mrb[16].mxu0 }
 0xce6   :  { %v1818_v31 = vadd.f32 %v1817_v11, %v1741_v30  ;;  %v10178_v32 = vpop.f32.mrb[17].mxu0 }
 0xce9   :  { %v1894_v33 = vpop.f32.mrb[18].mxu0 }
 0xcea   :  { %v1898_v35 = vadd.f32 %v1894_v33, %v1818_v31  ;;  %v10188_v36 = vpop.f32.mrb[19].mxu0 }
 0xcec   :  { %v1984_v37 = vadd.f32 %v1980_v18, %v1898_v35 }
 0xcee   :  { %v1988_v40 = vadd.f32 %v1986_v47, %v1984_v37  ;;  %v12018_v37 = vld [vmem:[#allocation2 + $0x58] sm:$0xff] }
 0xcef   :  { %v12022_v39 = vpack.i.bf16 %v12018_v37, %v11996_v28 }
 0xcf0   :  { %vm1989_vm7 = vcmp.ge.f32.partialorder %v1988_v40, 0.0  ;;  %v1990_v42 = vmul.f32 0.01, %v1988_v40 }
 0xcf1   :  { %11109 = vrot.lane.b32.xlu1 %v12022_v39, %s11582_s19  ;;  %11114 = vrot.lane.b32.xlu0 %v12022_v39, %s11569_s17 }
 0xcf2   :  { %v1991_v44 = vsel %vm1989_vm7, %v1988_v40, %v1990_v42 }
 0xcf3   :  { %10199 = vmatmul.mubr.msk.f32.vlgmr.msra.gmra.mrb[20].mxu0 %vm46_vm1, %v1991_v44 }
 0xcf4   :  { %10808 = vmatpush3.bf16.msra.mxu0 %v10805_v29  ;;  %10210 = vmatprep.mubr.msk.f32.mxu0 %vm46_vm1, %v2170_v53  ;;  %v2698_v29 = vpop.permute.xlu0 %2697 }
 0xcf5   :  { %10814 = vmatprep.subr.bf16.mxu0 %v10813_v61  ;;  %3029 = vrot.lane.b32.xlu1 %v11996_v28, %s11570_s18 }
 0xcf6   :  { %3284 = vrot.lane.b32.xlu0 %v11942_v24, %s11586_s28 }
 0xcf7   :  { %10211 = vmatmul.mubr.msk.f32.vlgmr.msra.gmra.mrb[22].mxu0 %vm46_vm1, %v2171_v45 }
 0xcf8   :  { %10816 = vmatpush3.bf16.msra.mxu0 %v10813_v61  ;;  %v2853_v51 = vpop.permute.xlu0 %2852 }
 0xcf9   :  { %3267 = vrot.lane.b32.xlu1 %v11942_v24, %s11584_s25 }
 0xcfa   :  { %3563 = vrot.lane.b32.xlu0 %v11996_v28, %s11572_s21 }
 0xcfd   :  { %11119 = vrot.lane.b32.xlu1 %v12022_v39, %s11580_s16 }
 0xd01   :  { %3388 = vrot.lane.b32.xlu1 %v11942_v24, %s12994_s26  ;;  %s11595_s26 = smov 35  }
 0xd05   :  { %11124 = vrot.lane.b32.xlu1 %v12022_v39, %s11587_s29 }
 0xdc6   :  { %v11962_v52 = vpop.f32.mrb[20].mxu0 }
 0xdc7   :  { %v10200_v2 = vpop.f32.mrb[21].mxu0 }
 0xdca   :  { %v10212_v9 = vpop.f32.mrb[22].mxu0 }
 0xdcb   :  { %v2257_v56 = vpop.f32.mrb[23].mxu0  ;;  %v11966_v58 = vadd.f32 %v10212_v9, %v2183_v8  ;;  %v2857_v9 = vsel %vm2856_vm15, %v2853_v51, %v2855_v50 }
 0xdcc   :  { %v11964_v57 = vadd.f32 %v2257_v56, %v2183_v8 }
 0xdce   :  { %10217 = vmatprep.mubr.msk.f32.mxu1 %vm46_vm1, %v11964_v57 }
 0xdcf   :  { %10218 = vmatmul.mubr.msk.f32.vlgmr.msra.gmra.mrb[26].mxu1 %vm46_vm1, %v11966_v58 }
 0xdd0   :  { %10231 = vmatprep.mubr.msk.f32.mxu1 %vm11557_vm0, %v11558_v1 }
 0xea2   :  { %v10219_v62 = vpop.f32.mrb[26].mxu1 }
 0xea3   :  { %v2353_v63 = vadd.f32 %v10219_v62, %v2273_v3  ;;  %v2347_v4 = vpop.f32.mrb[27].mxu1 }
 0xea4   :  { %v2348_v6 = vadd.f32 %v2347_v4, %v2273_v3 }
 0xea5   :  { %v2359_v10 = vmul.f32 0.01, %v2353_v63  ;;  %vm2357_vm9 = vcmp.ge.f32.partialorder %v2353_v63, 0.0 }
 0xea6   :  { %vm2356_vm11 = vcmp.ge.f32.partialorder %v2348_v6, 0.0  ;;  %v2358_v48 = vmul.f32 0.01, %v2348_v6 }
 0xea7   :  { %v2361_v12 = vsel %vm2357_vm9, %v2353_v63, %v2359_v10  ;;  %v11110_v63 = vpop.permute.xlu1 %11109 }
 0xea8   :  { %v2360_v11 = vsel %vm2356_vm11, %v2348_v6, %v2358_v48  ;;  %v11112_v4 = vunpack.i.h.bf16 %v11110_v63  ;;  %v11111_v6 = vunpack.i.l.bf16 %v11110_v63  ;;  %vm12100_vm11 = vmpackc.low %vm310_vm14, %vm310_vm14 }
 0xea9   :  { %10224 = vmatprep.mubr.msk.f32.mxu0 %vm46_vm1, %v2360_v11 }
 0xeaa   :  { %10225 = vmatmul.mubr.msk.f32.vlgmr.msra.gmra.mrb[24].mxu0 %vm46_vm1, %v2361_v12  ;;  %v10824_v10 = vpack.c.bf16 %v11112_v4, %v11111_v6 }
 0xeab   :  { %10236 = vmatprep.mubr.msk.f32.mxu0 %vm126_vm3, %v11736_v13 }
 0xf7d   :  { %v10226_v47 = vpop.f32.mrb[24].mxu0 }
 0xf7e   :  { %v2449_v17 = vadd.f32 %v10226_v47, %v2369_v14  ;;  %v2443_v18 = vpop.f32.mrb[25].mxu0  ;;  %v2934_v47 = vpop.permute.xlu0 %2933 }
 0xf7f   :  { %v2444_v19 = vadd.f32 %v2443_v18, %v2369_v14 }
 0xf80   :  { %vm2453_vm12 = vcmp.ge.f32.partialorder %v2449_v17, 0.0  ;;  %v2455_v20 = vmul.f32 0.01, %v2449_v17 }
 0xf81   :  { %vm2452_vm13 = vcmp.ge.f32.partialorder %v2444_v19, 0.0  ;;  %v2454_v21 = vmul.f32 0.01, %v2444_v19 }
 0xf82   :  { %v11978_v22 = vsel %vm2453_vm12, %v2449_v17, %v2455_v20  ;;  %vm3930_vm12 = vcmask 113664  }
 0xf83   :  { %v11980_v23 = vsel %vm2452_vm13, %v2444_v19, %v2454_v21 }
 0xf84   :  { %v10818_v25 = vpack.c.bf16 %v11978_v22, %v11980_v23  ;;  %v2680_v40 = vsel %vm310_vm14, %v11980_v23, -inf }
 0xf85   :  { %v2681_v42 = vrot.slane %v2680_v40, 4 }
 0xf86   :  { %10819 = vmatpush3.bf16.msra.mxu1 %v10818_v25  ;;  %v3030_v25 = vpop.permute.xlu1 %3029 }
 0xf87   :  { %10820 = vmatprep.subr.bf16.mxu1 %v11556_v0  ;;  %v2682_v43 = vmax.f32 %v2680_v40, %v2681_v42 }
 0xf89   :  { %10232 = vmatmul.mubr.msk.f32.vlgmr.msra.gmra.mrb[28].mxu1 %vm46_vm1, %v11718_v7  ;;  %v2683_v45 = vrot.slane %v2682_v43, 2 }
 0xf8a   :  { %10243 = vmatprep.mubr.msk.f32.mxu1 %vm11557_vm0, %v11558_v1 }
 0xf8b   :  { %v2684_v49 = vmax.f32 %v2682_v43, %v2683_v45 }
 0xf8d   :  { %v2685_v2 = vrot.slane %v2684_v49, 1 }
 0xf8f   :  { %v2686_v55 = vmax.f32 %v2684_v49, %v2685_v2 }
0x105c   :  { %v2524_v26 = vpop.f32.mrb[28].mxu1 }
0x105d   :  { %v10233_v27 = vpop.f32.mrb[29].mxu1  ;;  %10234 = vmatprep.subr.msk.mxu0 %vm131_vm5, %v2524_v26 }
0x105e   :  { %10235 = vmatpush3.msk.msra.mxu0 %vm131_vm5, %v2524_v26 }
0x105f   :  { %10237 = vmatmul.mubr.msk.f32.vlgmr.msra.gmra.mrb[26].mxu0 %vm126_vm3, %v11749_v16  ;;  %10246 = vmatprep.subr.mxu0 %v11558_v1 }
0x1060   :  { %10248 = vmatprep.mubr.msk.f32.mxu0 %vm11557_vm0, %v11558_v1  ;;  %10247 = vmatpush3.msra.mxu0 %v2698_v29 }
0x1061   :  { %10256 = vmatprep.subr.mxu0 %v11558_v1 }
0x1132   :  { %v10238_v30 = vpop.f32.mrb[26].mxu0 }
0x1133   :  { %v2607_v31 = vsub.f32 %v11978_v22, %v10238_v30  ;;  %v2597_v32 = vpop.f32.mrb[27].mxu0 }
0x1134   :  { %v2606_v33 = vsub.f32 %v11980_v23, %v2597_v32 }
0x1135   :  { %v2609_v34 = vand.u32 2147483647, %v2607_v31 }
0x1136   :  { %v2608_v35 = vand.u32 2147483647, %v2606_v33 }
0x1138   :  { %v10821_v36 = vpack.c.bf16 %v2609_v34, %v2608_v35 }
0x113a   :  { %10822 = vmatpush3.bf16.msra.mxu1 %v10821_v36 }
0x113b   :  { %10251 = vmatprep.subr.mxu1 %v11558_v1 }
0x113d   :  { %10244 = vmatmul.mubr.msk.f32.vlgmr.msra.gmra.mrb[30].mxu1 %vm46_vm1, %v11718_v7  ;;  %v2687_v7 = vsel %vm310_vm14, %v11978_v22, -inf }
0x113e   :  { %10252 = vmatpush3.msra.mxu1 %v2774_v5  ;;  %10253 = vmatprep.mubr.msk.f32.mxu1 %vm11557_vm0, %v11558_v1  ;;  %v2688_v41 = vrot.slane %v2687_v7, 4 }
0x113f   :  { %10823 = vmatprep.subr.bf16.mxu1 %v11556_v0 }
0x1140   :  { %v2689_v53 = vmax.f32 %v2687_v7, %v2688_v41 }
0x1141   :  { %10254 = vmatmul.mubr.msk.f32.vlgmr.msra.gmra.mrb[32].mxu1 %vm310_vm14, %v2524_v26  ;;  %v2951_v26 = vpop.permute.xlu0 %2950 }
0x1142   :  { %10265 = vmatprep.mubr.msk.f32.mxu1 %vm11557_vm0, %v11558_v1  ;;  %v2690_v44 = vrot.slane %v2689_v53, 2  ;;  %10825 = vmatpush3.bf16.msra.mxu1 %v10824_v10 }
0x1144   :  { %v2691_v46 = vmax.f32 %v2689_v53, %v2690_v44 }
0x1145   :  { %v3184_v33 = vpop.permute.xlu0 %3183 }
0x1146   :  { %v2692_v8 = vrot.slane %v2691_v46, 1 }
0x1148   :  { %v2693_v59 = vmax.f32 %v2691_v46, %v2692_v8 }
0x1149   :  { %v11115_v35 = vpop.permute.xlu0 %11114 }
0x114a   :  { %v2694_v3 = vsel %vm299_vm10, %v2686_v55, %v2693_v59  ;;  %v11117_v36 = vunpack.i.h.bf16 %v11115_v35  ;;  %v11116_v5 = vunpack.i.l.bf16 %v11115_v35 }
0x114c   :  { %v10826_v7 = vpack.c.bf16 %v11117_v36, %v11116_v5 }
0x1210   :  { %v2676_v56 = vpop.f32.mrb[30].mxu1 }
0x1211   :  { %v10245_v60 = vpop.f32.mrb[31].mxu1  ;;  %10249 = vmatmul.mubr.msk.f32.vlgmr.msra.gmra.mrb[28].mxu0 %vm310_vm14, %v2676_v56 }
0x1212   :  { %10257 = vmatpush3.msra.mxu0 %v2857_v9  ;;  %10258 = vmatprep.mubr.msk.f32.mxu0 %vm11557_vm0, %v11558_v1  ;;  %v3285_v9 = vpop.permute.xlu0 %3284 }
0x1213   :  { %10268 = vmatprep.subr.mxu0 %v11558_v1 }
0x1214   :  { %v2844_v61 = vpop.f32.mrb[32].mxu1 }
0x1215   :  { %v10255_v62 = vpop.f32.mrb[33].mxu1  ;;  %10259 = vmatmul.mubr.msk.f32.vlgmr.msra.gmra.mrb[30].mxu0 %vm310_vm14, %v2694_v3 }
0x1216   :  { %10270 = vmatprep.mubr.msk.f32.mxu0 %vm11557_vm0, %v11558_v1  ;;  %10269 = vmatpush3.msra.mxu0 %v3030_v25 }
0x1217   :  { %10827 = vmatprep.subr.bf16.mxu0 %v10826_v7 }
0x12e4   :  { %v2769_v48 = vpop.f32.mrb[28].mxu0 }
0x12e5   :  { %v2845_v11 = vadd.f32 %v2844_v61, %v2769_v48  ;;  %v10250_v12 = vpop.f32.mrb[29].mxu0 }
0x12e8   :  { %v2928_v14 = vpop.f32.mrb[30].mxu0 }
0x12e9   :  { %v2932_v17 = vadd.f32 %v2928_v14, %v2845_v11  ;;  %v10260_v18 = vpop.f32.mrb[31].mxu0 }
0x12eb   :  { %v2936_v19 = vadd.f32 %v2934_v47, %v2932_v17 }
0x12ed   :  { %vm2937_vm6 = vcmp.ge.f32.partialorder %v2936_v19, 0.0  ;;  %v2938_v20 = vmul.f32 0.01, %v2936_v19 }
0x12ef   :  { %v2939_v21 = vsel %vm2937_vm6, %v2936_v19, %v2938_v20  ;;  %v3564_v20 = vpop.permute.xlu0 %3563 }
0x12f0   :  { %10266 = vmatmul.mubr.msk.f32.vlgmr.msra.gmra.mrb[34].mxu1 %vm46_vm1, %v2939_v21 }
0x12f1   :  { %10275 = vmatprep.mubr.msk.f32.mxu1 %vm126_vm3, %v11736_v13 }
0x13c3   :  { %v3022_v27 = vpop.f32.mrb[34].mxu1 }
0x13c4   :  { %v3023_v29 = vadd.f32 %v3022_v27, %v2951_v26  ;;  %v10267_v30 = vpop.f32.mrb[35].mxu1 }
0x13c6   :  { %vm3026_vm7 = vcmp.ge.f32.partialorder %v3023_v29, 0.0  ;;  %v3027_v31 = vmul.f32 0.01, %v3023_v29 }
0x13c8   :  { %v3028_v32 = vsel %vm3026_vm7, %v3023_v29, %v3027_v31  ;;  %vm4419_vm7 = vcmask 125952  }
0x13c9   :  { %10271 = vmatmul.mubr.msk.f32.vlgmr.msra.gmra.mrb[32].mxu0 %vm310_vm14, %v3028_v32 }
0x13ca   :  { %10829 = vmatpush3.bf16.msra.mxu0 %v10826_v7 }
0x149c   :  { %v3101_v13 = vpop.f32.mrb[32].mxu0 }
0x149d   :  { %v10272_v34 = vpop.f32.mrb[33].mxu0  ;;  %10273 = vmatprep.subr.msk.mxu1 %vm131_vm5, %v3101_v13 }
0x149e   :  { %10274 = vmatpush3.msk.msra.mxu1 %vm131_vm5, %v3101_v13 }
0x149f   :  { %10276 = vmatmul.mubr.msk.f32.vlgmr.msra.gmra.mrb[36].mxu1 %vm126_vm3, %v11749_v16  ;;  %10278 = vmatprep.subr.mxu1 %v3184_v33  ;;  %v3268_v16 = vpop.permute.xlu1 %3267 }
0x14a0   :  { %10280 = vmatprep.mubr.msk.f32.mxu1 %vm310_vm14, %v11980_v23  ;;  %10279 = vmatpush3.msra.mxu1 %v3184_v33 }
0x14a3   :  { %v11120_v24 = vpop.permute.xlu1 %11119 }
0x14a4   :  { %v11122_v46 = vunpack.i.h.bf16 %v11120_v24  ;;  %v11121_v49 = vunpack.i.l.bf16 %v11120_v24 }
0x14a6   :  { %v10830_v2 = vpack.c.bf16 %v11122_v46, %v11121_v49 }
0x14a7   :  { %10281 = vmatmul.mubr.msk.f32.vlgmr.msra.gmra.mrb[36].mxu1 %vm310_vm14, %v11978_v22  ;;  %v3389_v39 = vpop.permute.xlu1 %3388 }
0x14a8   :  { %10831 = vmatprep.subr.bf16.mxu0 %v10830_v2 }
0x14ab   :  { %v11125_v45 = vpop.permute.xlu1 %11124 }
0x14ac   :  { %v11127_v50 = vunpack.i.h.bf16 %v11125_v45  ;;  %v11126_v51 = vunpack.i.l.bf16 %v11125_v45 }
0x14ae   :  { %v10834_v8 = vpack.c.bf16 %v11127_v50, %v11126_v51 }
0x14b0   :  { %10835 = vmatprep.subr.bf16.mxu1 %v10834_v8 }
0x14b1   :  { %10837 = vmatpush3.bf16.msra.mxu1 %v10834_v8  ;;  %v12131_v8 = vld [vmem:[#allocation2 + $0x60] sm:$0xff] }
0x14b2   :  { %10842 = vmatprep.subr.bf16.mxu1 %v11556_v0 }
0x157a   :  { %v10282_v22 = vpop.f32.mrb[36].mxu1 }
0x157b   :  { %v3271_v23 = vadd.f32 %v10282_v22, %v3268_v16  ;;  %v3258_v40 = vpop.f32.mrb[37].mxu1 }
0x157c   :  { %v3270_v41 = vadd.f32 %v3268_v16, %v3258_v40 }
0x157d   :  { %v3275_v42 = vmul.f32 0.01, %v3271_v23  ;;  %vm3273_vm8 = vcmp.ge.f32.partialorder %v3271_v23, 0.0 }
0x157e   :  { %vm3272_vm9 = vcmp.ge.f32.partialorder %v3270_v41, 0.0  ;;  %v3274_v53 = vmul.f32 0.01, %v3270_v41 }
0x157f   :  { %v3277_v44 = vsel %vm3273_vm8, %v3271_v23, %v3275_v42  ;;  %vm4427_vm8 = vcmask 130052  }
0x1580   :  { %v3276_v43 = vsel %vm3272_vm9, %v3270_v41, %v3274_v53  ;;  %vm4687_vm9 = vcmask 23552  }
0x1581   :  { %10287 = vmatprep.mubr.msk.f32.mxu0 %vm46_vm1, %v3276_v43 }
0x1582   :  { %10288 = vmatmul.mubr.msk.f32.vlgmr.msra.gmra.mrb[34].mxu0 %vm46_vm1, %v3277_v44 }
0x1583   :  { %10833 = vmatpush3.bf16.msra.mxu0 %v10830_v2 }
0x1584   :  { %10838 = vmatprep.subr.bf16.mxu0 %v11556_v0 }
0x1655   :  { %v10289_v56 = vpop.f32.mrb[34].mxu0 }
0x1656   :  { %v3365_v55 = vadd.f32 %v10289_v56, %v3285_v9  ;;  %v3359_v59 = vpop.f32.mrb[35].mxu0 }
0x1657   :  { %v3360_v60 = vadd.f32 %v3359_v59, %v3285_v9  ;;  %v11143_v9 = vpack.i.bf16 %v12131_v8, %v12018_v37 }
0x1658   :  { %v3369_v61 = vadd.f32 %v3365_v55, %v11966_v58  ;;  %v12085_v58 = vld [vmem:[#allocation2 + $0x10] sm:$0xff] }
0x1659   :  { %v3368_v3 = vadd.f32 %v3360_v60, %v11964_v57  ;;  %3645 = vrot.lane.b32.xlu0 %v12085_v58, %s12993_s14  ;;  %v12092_v57 = vld [vmem:[%s12983_s3 + $0x1] ss:$0 sm:$0xff]  ;;  %v11138_v2 = vpack.i.bf16 %v12085_v58, %v11996_v28  ;;  %s11594_s14 = smov 105  }
0x165a   :  { %3371 = vst.msk [vmem:[#allocation6 + $0x8] sm:$0xff] %vm46_vm1, %v3369_v61 }
0x165b   :  { %3370 = vst.msk [vmem:[#allocation6] sm:$0xff] %vm46_vm1, %v3368_v3  ;;  %10294 = vmatprep.mubr.msk.f32.mxu0 %vm46_vm1, %v3368_v3  ;;  %10301 = vmatprep.mubr.msk.f32.mxu1 %vm46_vm1, %v3368_v3 }
0x165c   :  { %10295 = vmatmul.mubr.msk.f32.vlgmr.msra.gmra.mrb[36].mxu0 %vm46_vm1, %v3369_v61  ;;  %10302 = vmatmul.mubr.msk.f32.vlgmr.msra.gmra.mrb[38].mxu1 %vm46_vm1, %v3369_v61 }
0x165d   :  { %10308 = vmatprep.mubr.msk.f32.mxu0 %vm11557_vm0, %v11558_v1  ;;  %10315 = vmatprep.mubr.msk.f32.mxu1 %vm11557_vm0, %v11558_v1 }
0x16cb   :  { %v3646_v25 = vpop.permute.xlu0 %3645 }
0x172f   :  { %v10296_v62 = vpop.f32.mrb[36].mxu0  ;;  %v10303_v63 = vpop.f32.mrb[38].mxu1 }
0x1730   :  { %v3469_v4 = vadd.f32 %v10296_v62, %v3389_v39  ;;  %v12095_v6 = vadd.f32 %v10303_v63, %v12092_v57  ;;  %v3463_v10 = vpop.f32.mrb[37].mxu0  ;;  %v3551_v48 = vpop.f32.mrb[39].mxu1 }
0x1731   :  { %v3464_v11 = vadd.f32 %v3463_v10, %v3389_v39  ;;  %v3552_v12 = vadd.f32 %v12092_v57, %v3551_v48 }
0x1733   :  { %v11128_v47 = vpack.i.bf16 %v3469_v4, %v3464_v11  ;;  %v10839_v17 = vpack.c.bf16 %v3469_v4, %v3464_v11  ;;  %v11133_v18 = vpack.i.bf16 %v12095_v6, %v3552_v12  ;;  %v10843_v19 = vpack.c.bf16 %v12095_v6, %v3552_v12 }
0x1735   :  { %10841 = vmatpush3.bf16.xpose.msk.msra.mxu0 %vm12100_vm11, %v10839_v17  ;;  %10844 = vmatpush3.bf16.msra.mxu1 %v10843_v19 }
0x1736   :  { %10845 = vmatprep.subr.bf16.mxu1 %v11556_v0  ;;  %10849 = vmatprep.subr.bf16.mxu0 %v11556_v0 }
0x173c   :  { %10309 = vmatmul.mubr.msk.f32.vlgmr.msra.gmra.mrb[38].mxu0 %vm310_vm14, %v3564_v20 }
0x173d   :  { %10329 = vmatprep.mubr.msk.f32.mxu0 %vm11557_vm0, %v11558_v1 }
0x180f   :  { %v3639_v21 = vpop.f32.mrb[38].mxu0 }
0x1810   :  { %v3643_v26 = vmul.f32 0.35355338, %v3639_v21  ;;  %v10310_v27 = vpop.f32.mrb[39].mxu0 }
0x1812   :  { %v3648_v29 = vadd.f32 %v3646_v25, %v3643_v26  ;;  %v9653_v26 = vld [vmem:[%s12983_s3 + $0x3] ss:$0 sm:$0xff] }
0x1814   :  { %v3649_v30 = vsel %vm46_vm1, %v3648_v29, -inf }
0x1815   :  { %3650 = vmax.xlane.f32.xlu1 %v3649_v30 }
0x1826   :  { %3733 = vrot.lane.b32.xlu1 %v11996_v28, %s11589_s11  ;;  %s11591_s11 = smov 14  }
0x18a2   :  { %v3651_v31 = vpop.xlane.xlu1 %3650 }
0x18a3   :  { %v3652_v32 = vsub.f32 %v3648_v29, %v3651_v31 }
0x18a5   :  { %v3653_v13 = vmul.f32 1.442695, %v3652_v32 }
0x18a6   :  { %v3734_v40 = vpop.permute.xlu1 %3733 }
0x18a7   :  { %11388 = vpow2.f32 %v3653_v13 }
0x18b1   :  { %v11389_v33 = vpop.eup %11388 }
0x18b2   :  { %v3655_v34 = vsel %vm46_vm1, %v11389_v33, 0.0 }
0x18b3   :  { %3656 = vadd.xlane.f32.xlu0 %v3655_v34 }
0x18c9   :  { %11129 = vrot.lane.b32.xlu0 %v11128_v47, %s11590_s15 }
0x1940   :  { %v3657_v35 = vpop.xlane.xlu0 %3656 }
0x1941   :  { %11390 = vrcp.f32 %v3657_v35  ;;  %v4012_v35 = vld [vmem:[#allocation2] sm:$0x3] }
0x1944   :  { %v11130_v36 = vpop.permute.xlu0 %11129 }
0x1945   :  { %v11132_v5 = vunpack.i.h.bf16 %v11130_v36  ;;  %v11131_v7 = vunpack.i.l.bf16 %v11130_v36 }
0x1947   :  { %v10846_v23 = vpack.c.bf16 %v11132_v5, %v11131_v7 }
0x194b   :  { %v11391_v16 = vpop.eup %11390 }
0x194c   :  { %v3659_v22 = vmul.f32 %v11391_v16, %v11389_v33 }
0x194e   :  { %10316 = vmatmul.mubr.msk.f32.vlgmr.msra.gmra.mrb[40].mxu1 %vm46_vm1, %v3659_v22 }
0x194f   :  { %10848 = vmatpush3.bf16.xpose.msk.msra.mxu1 %vm12100_vm11, %v10846_v23  ;;  %10322 = vmatprep.mubr.msk.f32.mxu1 %vm11557_vm0, %v11558_v1 }
0x1950   :  { %10855 = vmatprep.subr.bf16.mxu1 %v11556_v0 }
0x1956   :  { %10323 = vmatmul.mubr.msk.f32.vlgmr.msra.gmra.mrb[42].mxu1 %vm310_vm14, %v3734_v40  ;;  %v4013_v40 = vld [vmem:[#allocation2] sm:$0xff] }
0x1957   :  { %10343 = vmatprep.mubr.msk.f32.mxu1 %vm11557_vm0, %v11558_v1 }
0x1a21   :  { %v3729_v41 = vpop.f32.mrb[40].mxu1 }
0x1a22   :  { %v10317_v42 = vpop.f32.mrb[41].mxu1 }
0x1a29   :  { %v3811_v53 = vpop.f32.mrb[42].mxu1 }
0x1a2a   :  { %v3815_v43 = vmul.f32 0.35355338, %v3811_v53  ;;  %v10324_v44 = vpop.f32.mrb[43].mxu1 }
0x1a2c   :  { %v3816_v24 = vadd.f32 %v3815_v43, %v3646_v25 }
0x1a2e   :  { %v3817_v39 = vsel %vm46_vm1, %v3816_v24, -inf }
0x1a2f   :  { %3818 = vmax.xlane.f32.xlu1 %v3817_v39 }
0x1a40   :  { %11139 = vrot.lane.b32.xlu1 %v11138_v2, %s11591_s11 }
0x1a44   :  { %11144 = vrot.lane.b32.xlu1 %v11143_v9, %s11591_s11 }
0x1abc   :  { %v3819_v45 = vpop.xlane.xlu1 %3818 }
0x1abd   :  { %v3820_v46 = vsub.f32 %v3816_v24, %v3819_v45 }
0x1abf   :  { %v3821_v49 = vmul.f32 1.442695, %v3820_v46 }
0x1ac0   :  { %v11140_v62 = vpop.permute.xlu1 %11139 }
0x1ac1   :  { %11392 = vpow2.f32 %v3821_v49  ;;  %v11142_v37 = vunpack.i.h.bf16 %v11140_v62  ;;  %v11141_v63 = vunpack.i.l.bf16 %v11140_v62 }
0x1ac3   :  { %v3931_v6 = vsel %vm3930_vm12, %v11141_v63, %v11142_v37  ;;  %v4673_v63 = vld [vmem:[%s12983_s3 + $0x3] sm:$0x3] }
0x1ac4   :  { %v11145_v4 = vpop.permute.xlu1 %11144 }
0x1ac5   :  { %v11147_v10 = vunpack.i.h.bf16 %v11145_v4  ;;  %v11146_v48 = vunpack.i.l.bf16 %v11145_v4 }
0x1ac7   :  { %v3932_v11 = vsel %vm3930_vm12, %v11146_v48, %v11147_v10 }
0x1ac8   :  { %v10853_v12 = vpack.c.bf16 %v3932_v11, %v3931_v6  ;;  %v11404_v11 = vld [vmem:[#allocation2 + $0x30] sm:$0xff] }
0x1acb   :  { %v11393_v50 = vpop.eup %11392 }
0x1acc   :  { %v3823_v51 = vsel %vm46_vm1, %v11393_v50, 0.0 }
0x1acd   :  { %3824 = vadd.xlane.f32.xlu0 %v3823_v51 }
0x1ae3   :  { %11134 = vrot.lane.b32.xlu0 %v11133_v18, %s11590_s15  ;;  %s11592_s15 = smov 121  }
0x1ae4   :  { %11149 = vrot.lane.b32.xlu1 %v11910_v54, %s11592_s15  ;;  %s11599_s15 = smov 73  }
0x1ae8   :  { %4030 = vrot.lane.b32.xlu1 %v9653_v26, %s11595_s26  ;;  %s11597_s26 = smov 102  }
0x1aec   :  { %4115 = vrot.lane.b32.xlu1 %v9653_v26, %s11596_s13  ;;  %s11600_s13 = smov 57  }
0x1af0   :  { %4270 = vrot.lane.b32.xlu1 %v4013_v40, %s11597_s26  ;;  %s11607_s26 = smov 111  }
0x1b56   :  { %v11150_v17 = vpop.permute.xlu1 %11149 }
0x1b57   :  { %v11152_v18 = vunpack.i.h.bf16 %v11150_v17  ;;  %v11151_v19 = vunpack.i.l.bf16 %v11150_v17 }
0x1b59   :  { %v10856_v20 = vpack.c.bf16 %v11152_v18, %v11151_v19 }
0x1b5a   :  { %v3825_v56 = vpop.xlane.xlu0 %3824  ;;  %v4031_v36 = vpop.permute.xlu1 %4030 }
0x1b5b   :  { %11394 = vrcp.f32 %v3825_v56  ;;  %10857 = vmatpush3.bf16.msra.mxu1 %v10856_v20 }
0x1b5c   :  { %10353 = vmatprep.subr.mxu1 %v11558_v1 }
0x1b5e   :  { %v11135_v55 = vpop.permute.xlu0 %11134 }
0x1b5f   :  { %v11137_v59 = vunpack.i.h.bf16 %v11135_v55  ;;  %v11136_v60 = vunpack.i.l.bf16 %v11135_v55 }
0x1b61   :  { %v10850_v61 = vpack.c.bf16 %v11137_v59, %v11136_v60 }
0x1b63   :  { %10851 = vmatpush3.bf16.msra.mxu0 %v10850_v61 }
0x1b64   :  { %10852 = vmatprep.subr.bf16.mxu0 %v11556_v0 }
0x1b65   :  { %v11395_v28 = vpop.eup %11394 }
0x1b66   :  { %v3827_v3 = vmul.f32 %v11395_v28, %v11393_v50 }
0x1b68   :  { %10330 = vmatmul.mubr.msk.f32.vlgmr.msra.gmra.mrb[40].mxu0 %vm46_vm1, %v3827_v3 }
0x1b69   :  { %10336 = vmatprep.mubr.msk.f32.mxu0 %vm11557_vm0, %v11558_v1  ;;  %10854 = vmatpush3.bf16.msra.mxu0 %v10853_v12  ;;  %v11405_v12 = vld [vmem:[#allocation2 + $0x80] sm:$0xff] }
0x1b6a   :  { %10858 = vmatprep.subr.bf16.mxu0 %v11556_v0 }
0x1c3b   :  { %v3905_v14 = vpop.f32.mrb[40].mxu0 }
0x1c3c   :  { %3910 = vrot.lane.b32.xlu0 %v3905_v14, %s11593_s23  ;;  %v10331_v47 = vpop.f32.mrb[41].mxu0  ;;  %v11173_v14 = vpack.i.bf16 %v11405_v12, %v11404_v11 }
0x1c40   :  { %3935 = vrot.lane.b32.xlu0 %v12092_v57, %s11559_s2 }
0x1c44   :  { %11154 = vrot.lane.b32.xlu0 %v11910_v54, %s11594_s14  ;;  %s11598_s14 = smov 89  }
0x1c45   :  { %11164 = vrot.lane.b32.xlu1 %v11910_v54, %s11598_s14  ;;  %s11608_s14 = smov 95  }
0x1c48   :  { %4195 = vrot.lane.b32.xlu0 %v4012_v35, %s11583_s22 }
0x1c4c   :  { %11159 = vrot.lane.b32.xlu0 %v11910_v54, %s11599_s15  ;;  %s11601_s15 = smov 3  }
0x1c50   :  { %11169 = vrot.lane.b32.xlu0 %v11910_v54, %s11600_s13  ;;  %v4675_v54 = vlaneseq  ;;  %s11602_s13 = smov 41  }
0x1c52   :  { %v4676_v37 = vshrl.u32 %v4675_v54, 7 }
0x1c54   :  { %v12205_v4 = vsub.s32 0, %v4676_v37  ;;  %v12207_v6 = vsub.s32 1, %v4676_v37 }
0x1c56   :  { %v4678_v10 = vrot.slane %v4673_v63, %v12205_v4  ;;  %v4682_v48 = vrot.slane %v4673_v63, %v12207_v6 }
0x1c58   :  { %4683 = vrot.lane.b32.xlu1 %v4678_v10, %s11601_s15  ;;  %4685 = vrot.lane.b32.xlu0 %v4682_v48, %s11601_s15  ;;  %s11603_s15 = smov 115  }
0x1c5c   :  { %11174 = vrot.lane.b32.xlu1 %v11173_v14, %s11602_s13  ;;  %s11604_s13 = smov 21  }
0x1cae   :  { %v3911_v21 = vpop.permute.xlu0 %3910 }
0x1caf   :  { %v3913_v25 = vsel %vm310_vm14, %v3729_v41, %v3911_v21  ;;  %v4116_v41 = vpop.permute.xlu1 %4115 }
0x1cb0   :  { %10337 = vmatmul.mubr.msk.f32.vlgmr.msra.gmra.mrb[42].mxu0 %vm46_vm1, %v3913_v25 }
0x1cb1   :  { %10350 = vmatprep.mubr.msk.f32.mxu0 %vm11557_vm0, %v11558_v1 }
0x1cb2   :  { %v3936_v27 = vpop.permute.xlu0 %3935 }
0x1cb3   :  { %v12181_v45 = vpop.permute.xlu1 %4270 }
0x1cb6   :  { %v11155_v29 = vpop.permute.xlu0 %11154 }
0x1cb7   :  { %v11157_v30 = vunpack.i.h.bf16 %v11155_v29  ;;  %v11156_v31 = vunpack.i.l.bf16 %v11155_v29  ;;  %v11165_v50 = vpop.permute.xlu1 %11164 }
0x1cb8   :  { %v11167_v56 = vunpack.i.h.bf16 %v11165_v50  ;;  %v11166_v55 = vunpack.i.l.bf16 %v11165_v50 }
0x1cb9   :  { %v10859_v32 = vpack.c.bf16 %v11157_v30, %v11156_v31 }
0x1cba   :  { %v12170_v24 = vpop.permute.xlu0 %4195  ;;  %v10865_v62 = vpack.c.bf16 %v11167_v56, %v11166_v55 }
0x1cbb   :  { %10860 = vmatpush3.bf16.msra.mxu0 %v10859_v32 }
0x1cbc   :  { %10358 = vmatprep.subr.mxu0 %v11558_v1 }
0x1cbe   :  { %v11160_v51 = vpop.permute.xlu0 %11159 }
0x1cbf   :  { %v11162_v2 = vunpack.i.h.bf16 %v11160_v51  ;;  %v11161_v9 = vunpack.i.l.bf16 %v11160_v51 }
0x1cc1   :  { %v10862_v60 = vpack.c.bf16 %v11162_v2, %v11161_v9 }
0x1d83   :  { %v4007_v13 = vpop.f32.mrb[42].mxu0 }
0x1d84   :  { %v12158_v33 = vadd.f32 %v4007_v13, %v3936_v27  ;;  %v10338_v34 = vpop.f32.mrb[43].mxu0  ;;  %v11170_v27 = vpop.permute.xlu0 %11169 }
0x1d85   :  { %v11172_v31 = vunpack.i.h.bf16 %v11170_v27  ;;  %v11171_v32 = vunpack.i.l.bf16 %v11170_v27 }
0x1d86   :  { %4011 = vst.msk [vmem:[#allocation8] sm:$0xff] %vm46_vm1, %v12158_v33  ;;  %10344 = vmatmul.mubr.msk.f32.vlgmr.msra.gmra.mrb[44].mxu1 %vm46_vm1, %v12158_v33 }
0x1d87   :  { %10355 = vmatprep.mubr.msk.f32.mxu1 %vm11557_vm0, %v11558_v1  ;;  %v10868_v35 = vpack.c.bf16 %v11172_v31, %v11171_v32 }
0x1d88   :  { %v4686_v9 = vpop.permute.xlu0 %4685 }
0x1e59   :  { %v4102_v5 = vpop.f32.mrb[44].mxu1 }
0x1e5a   :  { %v4103_v7 = vadd.f32 %v4102_v5, %v4031_v36  ;;  %v10345_v16 = vpop.f32.mrb[45].mxu1 }
0x1e5c   :  { %vm4106_vm13 = vcmp.ge.f32.partialorder %v4103_v7, 0.0  ;;  %v4107_v22 = vmul.f32 0.01, %v4103_v7 }
0x1e5e   :  { %v4108_v23 = vsel %vm4106_vm13, %v4103_v7, %v4107_v22 }
0x1e5f   :  { %10351 = vmatmul.mubr.msk.f32.vlgmr.msra.gmra.mrb[44].mxu0 %vm46_vm1, %v4108_v23 }
0x1e60   :  { %10360 = vmatprep.mubr.msk.f32.mxu0 %vm11557_vm0, %v11558_v1 }
0x1f32   :  { %v4187_v42 = vpop.f32.mrb[44].mxu0 }
0x1f33   :  { %v4188_v53 = vadd.f32 %v4187_v42, %v4116_v41  ;;  %v10352_v43 = vpop.f32.mrb[45].mxu0  ;;  %v4684_v41 = vpop.permute.xlu1 %4683 }
0x1f35   :  { %vm4191_vm6 = vcmp.ge.f32.partialorder %v4188_v53, 0.0  ;;  %v4192_v44 = vmul.f32 0.01, %v4188_v53 }
0x1f37   :  { %v12172_v39 = vsel %vm4191_vm6, %v4188_v53, %v4192_v44  ;;  %v11175_v42 = vpop.permute.xlu1 %11174  ;;  %vm5039_vm6 = vcmask 39936  }
0x1f38   :  { %10354 = vmatpush3.msra.mxu1 %v12172_v39  ;;  %v4420_v47 = vsel %vm4419_vm7, %v12172_v39, -inf  ;;  %v4428_v17 = vsel %vm4427_vm8, %v12172_v39, -inf  ;;  %v11177_v53 = vunpack.i.h.bf16 %v11175_v42  ;;  %v11176_v43 = vunpack.i.l.bf16 %v11175_v42 }
0x1f39   :  { %10356 = vmatmul.mubr.msk.f32.vlgmr.msra.gmra.mrb[46].mxu1 %vm310_vm14, %v12170_v24  ;;  %10363 = vmatprep.subr.mxu1 %v11558_v1  ;;  %v4421_v18 = vrot.slane %v4420_v47, 4  ;;  %v4429_v19 = vrot.slane %v4428_v17, 4 }
0x1f3a   :  { %10365 = vmatprep.mubr.msk.f32.mxu1 %vm11557_vm0, %v11558_v1  ;;  %v10871_v44 = vpack.c.bf16 %v11177_v53, %v11176_v43 }
0x1f3b   :  { %v4422_v20 = vmax.f32 %v4420_v47, %v4421_v18  ;;  %v4430_v21 = vmax.f32 %v4428_v17, %v4429_v19  ;;  %v5023_v18 = vld [vmem:[#allocation2 + $0x30] sm:$0xff]  ;;  %v5024_v19 = vld [vmem:[#allocation2 + $0x38] sm:$0xff] }
0x1f3d   :  { %v4423_v25 = vrot.slane %v4422_v20, 2  ;;  %v4431_v26 = vrot.slane %v4430_v21, 2 }
0x1f3f   :  { %v4424_v29 = vmax.f32 %v4422_v20, %v4423_v25  ;;  %v4432_v30 = vmax.f32 %v4430_v21, %v4431_v26  ;;  %v5025_v20 = vld [vmem:[#allocation2 + $0x80] sm:$0xff]  ;;  %v11183_v21 = vpack.i.bf16 %v5024_v19, %v5023_v18  ;;  %v12243_v25 = vld [vmem:[#allocation2 + $0x88] sm:$0xff] }
0x1f40   :  { %v11188_v26 = vpack.i.bf16 %v12243_v25, %v5025_v20 }
0x1f41   :  { %v4425_v13 = vrot.slane %v4424_v29, 1  ;;  %v4433_v34 = vrot.slane %v4432_v30, 1 }
0x1f43   :  { %v4426_v5 = vmax.f32 %v4424_v29, %v4425_v13  ;;  %v4434_v7 = vmax.f32 %v4432_v30, %v4433_v34 }
0x1f45   :  { %v4435_v23 = vsel %vm299_vm10, %v4426_v5, %v4434_v7 }
0x200c   :  { %v4265_v46 = vpop.f32.mrb[46].mxu1 }
0x200d   :  { %v10357_v49 = vpop.f32.mrb[47].mxu1  ;;  %10359 = vmatpush3.msk.msra.mxu0 %vm131_vm5, %v4265_v46 }
0x200e   :  { %10361 = vmatmul.mubr.msk.f32.vlgmr.msra.gmra.mrb[46].mxu0 %vm126_vm3, %v12181_v45  ;;  %10861 = vmatprep.subr.bf16.mxu0 %v11556_v0  ;;  %v4785_v49 = vld [vmem:[#allocation2 + $0x30] sm:$0xf] }
0x200f   :  { %10372 = vmatprep.mubr.msk.f32.mxu0 %vm11557_vm0, %v11558_v1  ;;  %10863 = vmatpush3.bf16.msra.mxu0 %v10862_v60  ;;  %v4688_v60 = vsel %vm4687_vm9, %v4684_v41, %v4686_v9  ;;  %v12268_v9 = vpack.i.bf16 %v12243_v25, %v5024_v19  ;;  %v11406_v19 = vld [vmem:[%s12981_s1] sm:$0x3] }
0x2010   :  { %10867 = vmatprep.subr.bf16.mxu0 %v11556_v0  ;;  %4787 = vrot.lane.b32.xlu1 %v4785_v49, %s11604_s13  ;;  %s11610_s13 = smov 117  }
0x20e1   :  { %v4343_v59 = vpop.f32.mrb[46].mxu0 }
0x20e2   :  { %v4347_v61 = vsub.f32 %v12172_v39, %v4343_v59  ;;  %v10362_v28 = vpop.f32.mrb[47].mxu0 }
0x20e4   :  { %v4348_v3 = vand.u32 2147483647, %v4347_v61 }
0x20e6   :  { %10364 = vmatpush3.msra.mxu1 %v4348_v3 }
0x20e7   :  { %10366 = vmatmul.mubr.msk.f32.vlgmr.msra.gmra.mrb[48].mxu1 %vm310_vm14, %v12170_v24  ;;  %10864 = vmatprep.subr.bf16.mxu1 %v11556_v0 }
0x20e8   :  { %10866 = vmatpush3.bf16.msra.mxu1 %v10865_v62  ;;  %10379 = vmatprep.mubr.msk.f32.mxu1 %vm11557_vm0, %v11558_v1  ;;  %v4788_v62 = vpop.permute.xlu1 %4787 }
0x20e9   :  { %10870 = vmatprep.subr.bf16.mxu1 %v11556_v0 }
0x20eb   :  { %10380 = vmatmul.mubr.msk.f32.vlgmr.msra.gmra.mrb[50].mxu1 %vm46_vm1, %v4265_v46  ;;  %v12227_v46 = vld [vmem:[%s12983_s3 + $0x4] ss:$0 sm:$0xff] }
0x20ec   :  { %10393 = vmatprep.mubr.msk.f32.mxu1 %vm11557_vm0, %v11558_v1  ;;  %10872 = vmatpush3.bf16.msra.mxu1 %v10871_v44 }
0x20ed   :  { %10401 = vmatprep.subr.mxu1 %v11558_v1  ;;  %4706 = vrot.lane.b32.xlu0 %v12227_v46, %s11603_s15  ;;  %s11609_s15 = smov 101  }
0x20f1   :  { %11179 = vrot.lane.b32.xlu0 %v11173_v14, %s11605_s12  ;;  %s11606_s12 = smov 5  }
0x20f2   :  { %11184 = vrot.lane.b32.xlu1 %v11183_v21, %s11606_s12 }
0x20f5   :  { %11189 = vrot.lane.b32.xlu0 %v11188_v26, %s11606_s12  ;;  %s11611_s12 = smov 85  }
0x20f6   :  { %5016 = vrot.lane.b32.xlu1 %v12227_v46, %s11607_s26  ;;  %s11612_s26 = smov 69  }
0x20f9   :  { %5044 = vrot.lane.b32.xlu0 %v12227_v46, %s11608_s14  ;;  %s11613_s14 = smov 79  }
0x20fa   :  { %11194 = vrot.lane.b32.xlu1 %v12268_v9, %s11609_s15 }
0x20fd   :  { %11199 = vrot.lane.b32.xlu0 %v12268_v9, %s11610_s13  ;;  %s11616_s13 = smov 116  }
0x20fe   :  { %11204 = vrot.lane.b32.xlu1 %v12268_v9, %s11611_s12  ;;  %s11614_s12 = smov 53  }
0x215f   :  { %v4707_v54 = vpop.permute.xlu0 %4706 }
0x2163   :  { %v11180_v37 = vpop.permute.xlu0 %11179 }
0x2164   :  { %v11182_v63 = vunpack.i.h.bf16 %v11180_v37  ;;  %v11181_v10 = vunpack.i.l.bf16 %v11180_v37  ;;  %v11185_v27 = vpop.permute.xlu1 %11184 }
0x2165   :  { %v11186_v29 = vunpack.i.l.bf16 %v11185_v27 }
0x2166   :  { %v10874_v47 = vpack.c.bf16 %v11182_v63, %v11181_v10 }
0x2167   :  { %v11190_v30 = vpop.permute.xlu0 %11189 }
0x2168   :  { %v11192_v31 = vunpack.i.h.bf16 %v11190_v30  ;;  %v11191_v32 = vunpack.i.l.bf16 %v11190_v30 }
0x216a   :  { %v5041_v34 = vsel %vm5039_vm6, %v11191_v32, %v11192_v31 }
0x216b   :  { %v5045_v44 = vpop.permute.xlu0 %5044 }
0x21ba   :  { %v4415_v36 = vpop.f32.mrb[48].mxu1 }
0x21bb   :  { %v10367_v16 = vpop.f32.mrb[49].mxu1  ;;  %10373 = vmatmul.mubr.msk.f32.vlgmr.msra.gmra.mrb[48].mxu0 %vm46_vm1, %v4415_v36 }
0x21bc   :  { %10869 = vmatpush3.bf16.msra.mxu0 %v10868_v35  ;;  %10386 = vmatprep.mubr.msk.f32.mxu0 %vm11557_vm0, %v11558_v1 }
0x21bd   :  { %10396 = vmatprep.subr.mxu0 %v11558_v1 }
0x21be   :  { %v4589_v22 = vpop.f32.mrb[50].mxu1 }
0x21bf   :  { %v10381_v40 = vpop.f32.mrb[51].mxu1  ;;  %10387 = vmatmul.mubr.msk.f32.vlgmr.msra.gmra.mrb[50].mxu0 %vm46_vm1, %v4435_v23  ;;  %v5017_v23 = vpop.permute.xlu1 %5016 }
0x21c0   :  { %10398 = vmatprep.mubr.msk.f32.mxu0 %vm11557_vm0, %v11558_v1  ;;  %10397 = vmatpush3.msk.msra.mxu0 %vm333_vm4, %v4788_v62 }
0x21c1   :  { %10873 = vmatprep.subr.bf16.mxu0 %v11556_v0 }
0x228e   :  { %v4511_v50 = vpop.f32.mrb[48].mxu0 }
0x228f   :  { %v4590_v51 = vadd.f32 %v4589_v22, %v4511_v50  ;;  %v10374_v2 = vpop.f32.mrb[49].mxu0 }
0x2292   :  { %v4668_v56 = vpop.f32.mrb[50].mxu0 }
0x2293   :  { %v4672_v55 = vadd.f32 %v4668_v56, %v4590_v51  ;;  %v10388_v59 = vpop.f32.mrb[51].mxu0  ;;  %v5588_v56 = vld [vmem:[#allocation2 + $0x38] sm:$0x3] }
0x2294   :  { %5590 = vrot.lane.b32.xlu0 %v5588_v56, %s11612_s26  ;;  %s13001_s26 = smov 16  }
0x2295   :  { %v4690_v61 = vadd.f32 %v4688_v60, %v4672_v55  ;;  %v11208_v55 = vpack.i.bf16 %v12131_v8, %v12085_v58  ;;  %v11200_v8 = vpop.permute.xlu0 %11199 }
0x2296   :  { %v11201_v37 = vunpack.i.l.bf16 %v11200_v8 }
0x2297   :  { %vm4691_vm11 = vcmp.ge.f32.partialorder %v4690_v61, 0.0  ;;  %v4692_v28 = vmul.f32 0.01, %v4690_v61  ;;  %11209 = vrot.lane.b32.xlu1 %v11208_v55, %s11583_s22 }
0x2298   :  { %5665 = vrot.lane.b32.xlu0 %v12227_v46, %s11613_s14 }
0x2299   :  { %v4693_v3 = vsel %vm4691_vm11, %v4690_v61, %v4692_v28  ;;  %v11195_v61 = vpop.permute.xlu1 %11194  ;;  %vm5951_vm11 = vcmask 261120  }
0x229a   :  { %10394 = vmatmul.mubr.msk.f32.vlgmr.msra.gmra.mrb[52].mxu1 %vm46_vm1, %v4693_v3  ;;  %v11197_v28 = vunpack.i.h.bf16 %v11195_v61  ;;  %v11196_v3 = vunpack.i.l.bf16 %v11195_v61  ;;  %v5931_v61 = vld [vmem:[#allocation2 + $0x100] sm:$0xff] }
0x229b   :  { %10403 = vmatprep.mubr.msk.f32.mxu1 %vm11557_vm0, %v11558_v1  ;;  %11214 = vrot.lane.b32.xlu1 %v12268_v9, %s11614_s12 }
0x229c   :  { %v10880_v58 = vpack.c.bf16 %v11197_v28, %v11196_v3  ;;  %5770 = vrot.lane.b32.xlu0 %v12092_v57, %s11562_s10 }
0x229d   :  { %v11205_v62 = vpop.permute.xlu1 %11204 }
0x229f   :  { %11219 = vrot.lane.b32.xlu1 %v11208_v55, %s11570_s18 }
0x22a0   :  { %11224 = vrot.lane.b32.xlu0 %v11208_v55, %s11572_s21 }
0x22a4   :  { %5852 = vrot.lane.b32.xlu0 %v12092_v57, %s11555_s20 }
0x22a8   :  { %11234 = vrot.lane.b32.xlu0 %v11208_v55, %s11580_s16 }
0x236d   :  { %v4778_v48 = vpop.f32.mrb[52].mxu1 }
0x236e   :  { %v4779_v11 = vadd.f32 %v4778_v48, %v4707_v54  ;;  %v10395_v12 = vpop.f32.mrb[53].mxu1  ;;  %v11202_v54 = vunpack.i.h.bf16 %v11200_v8 }
0x236f   :  { %v11210_v12 = vpop.permute.xlu1 %11209 }
0x2370   :  { %vm4782_vm13 = vcmp.ge.f32.partialorder %v4779_v11, 0.0  ;;  %v4783_v14 = vmul.f32 0.01, %v4779_v11  ;;  %v10883_v46 = vpack.c.bf16 %v11202_v54, %v11201_v37 }
0x2372   :  { %v4784_v17 = vsel %vm4782_vm13, %v4779_v11, %v4783_v14  ;;  %v11212_v14 = vunpack.i.h.bf16 %v11210_v12 }
0x2373   :  { %10399 = vmatmul.mubr.msk.f32.vlgmr.msra.gmra.mrb[52].mxu0 %vm284_vm2, %v4784_v17  ;;  %v5591_v17 = vpop.permute.xlu0 %5590 }
0x2374   :  { %10875 = vmatpush3.bf16.msra.mxu0 %v10874_v47  ;;  %10410 = vmatprep.mubr.msk.f32.mxu0 %vm11557_vm0, %v11558_v1  ;;  %v11211_v47 = vunpack.i.l.bf16 %v11210_v12 }
0x2375   :  { %10420 = vmatprep.subr.mxu0 %v11558_v1 }
0x2376   :  { %v10892_v18 = vpack.c.bf16 %v11212_v14, %v11211_v47 }
0x2377   :  { %10411 = vmatmul.mubr.msk.f32.vlgmr.msra.gmra.mrb[54].mxu0 %vm46_vm1, %v12172_v39  ;;  %v11187_v39 = vunpack.i.h.bf16 %v11185_v27  ;;  %v5666_v56 = vpop.permute.xlu0 %5665 }
0x2378   :  { %10422 = vmatprep.mubr.msk.f32.mxu0 %vm11557_vm0, %v11558_v1 }
0x2379   :  { %v5040_v13 = vsel %vm5039_vm6, %v11186_v29, %v11187_v39 }
0x237a   :  { %v10877_v35 = vpack.c.bf16 %v5041_v34, %v5040_v13  ;;  %v11207_v13 = vunpack.i.h.bf16 %v11205_v62  ;;  %v11206_v34 = vunpack.i.l.bf16 %v11205_v62 }
0x2446   :  { %v4860_v36 = vpop.f32.mrb[52].mxu0 }
0x2447   :  { %v10400_v5 = vpop.f32.mrb[53].mxu0  ;;  %10402 = vmatpush3.msk.msra.mxu1 %vm131_vm5, %v4860_v36 }
0x2448   :  { %10404 = vmatmul.mubr.msk.f32.vlgmr.msra.gmra.mrb[54].mxu1 %vm126_vm3, %v12181_v45  ;;  %10876 = vmatprep.subr.bf16.mxu1 %v11556_v0  ;;  %v10886_v5 = vpack.c.bf16 %v11207_v13, %v11206_v34 }
0x2449   :  { %10878 = vmatpush3.bf16.msra.mxu1 %v10877_v35  ;;  %10417 = vmatprep.mubr.msk.f32.mxu1 %vm11557_vm0, %v11558_v1 }
0x244a   :  { %v5012_v7 = vpop.f32.mrb[54].mxu0  ;;  %10425 = vmatprep.subr.mxu1 %v11558_v1 }
0x244b   :  { %v10412_v16 = vpop.f32.mrb[55].mxu0 }
0x251b   :  { %v4933_v22 = vpop.f32.mrb[54].mxu1 }
0x251c   :  { %v5013_v40 = vadd.f32 %v5012_v7, %v4933_v22  ;;  %v10405_v41 = vpop.f32.mrb[55].mxu1 }
0x251e   :  { %v5019_v42 = vadd.f32 %v5017_v23, %v5013_v40 }
0x2520   :  { %vm5020_vm9 = vcmp.ge.f32.partialorder %v5019_v42, 0.0  ;;  %v5021_v53 = vmul.f32 0.01, %v5019_v42 }
0x2522   :  { %v5022_v43 = vsel %vm5020_vm9, %v5019_v42, %v5021_v53  ;;  %vm6328_vm9 = vcmask 60416  }
0x2523   :  { %10418 = vmatmul.mubr.msk.f32.vlgmr.msra.gmra.mrb[56].mxu1 %vm46_vm1, %v5022_v43 }
0x2524   :  { %10427 = vmatprep.mubr.msk.f32.mxu1 %vm11557_vm0, %v11558_v1 }
0x25f6   :  { %v5116_v49 = vpop.f32.mrb[56].mxu1 }
0x25f7   :  { %v5117_v50 = vadd.f32 %v5116_v49, %v5045_v44  ;;  %v10419_v51 = vpop.f32.mrb[57].mxu1 }
0x25f9   :  { %v12259_v2 = vadd.f32 %v5117_v50, %v12158_v33  ;;  %v11215_v50 = vpop.permute.xlu1 %11214 }
0x25fa   :  { %v11217_v51 = vunpack.i.h.bf16 %v11215_v50 }
0x25fb   :  { %10421 = vmatpush3.msra.mxu0 %v12259_v2  ;;  %v5336_v20 = vsel %vm4419_vm7, %v12259_v2, -inf  ;;  %v5343_v21 = vsel %vm4427_vm8, %v12259_v2, -inf }
0x25fc   :  { %10423 = vmatmul.mubr.msk.f32.vlgmr.msra.gmra.mrb[56].mxu0 %vm310_vm14, %v12170_v24  ;;  %10430 = vmatprep.subr.mxu0 %v11558_v1  ;;  %v5337_v26 = vrot.slane %v5336_v20, 4  ;;  %v5344_v27 = vrot.slane %v5343_v21, 4 }
0x25fd   :  { %10432 = vmatprep.mubr.msk.f32.mxu0 %vm11557_vm0, %v11558_v1 }
0x25fe   :  { %v5338_v39 = vmax.f32 %v5336_v20, %v5337_v26  ;;  %v5345_v29 = vmax.f32 %v5343_v21, %v5344_v27 }
0x2600   :  { %v5339_v30 = vrot.slane %v5338_v39, 2 }
0x2602   :  { %v5340_v31 = vmax.f32 %v5338_v39, %v5339_v30 }
0x2604   :  { %v5341_v35 = vrot.slane %v5340_v31, 1 }
0x2606   :  { %v5342_v16 = vmax.f32 %v5340_v31, %v5341_v35 }
0x26cf   :  { %v5187_v59 = vpop.f32.mrb[56].mxu0 }
0x26d0   :  { %v10424_v60 = vpop.f32.mrb[57].mxu0  ;;  %10426 = vmatpush3.msk.msra.mxu1 %vm131_vm5, %v5187_v59 }
0x26d1   :  { %10428 = vmatmul.mubr.msk.f32.vlgmr.msra.gmra.mrb[58].mxu1 %vm126_vm3, %v12181_v45  ;;  %10879 = vmatprep.subr.bf16.mxu1 %v11556_v0  ;;  %v5930_v60 = vld [vmem:[#allocation2 + $0xb0] sm:$0xff] }
0x26d2   :  { %10439 = vmatprep.mubr.msk.f32.mxu1 %vm11557_vm0, %v11558_v1  ;;  %10881 = vmatpush3.bf16.msra.mxu1 %v10880_v58  ;;  %v11228_v3 = vpack.i.bf16 %v5931_v61, %v5930_v60  ;;  %v12371_v60 = vld [vmem:[#allocation2 + $0x18] sm:$0xff] }
0x26d3   :  { %10885 = vmatprep.subr.bf16.mxu1 %v11556_v0 }
0x26d4   :  { %11229 = vrot.lane.b32.xlu1 %v11228_v3, %s11572_s21 }
0x26d8   :  { %5948 = vrot.lane.b32.xlu1 %v12092_v57, %s11584_s25 }
0x26dc   :  { %6034 = vrot.lane.b32.xlu1 %v12092_v57, %s11586_s28  ;;  %s11620_s28 = smov 74  }
0x27a4   :  { %v5260_v63 = vpop.f32.mrb[58].mxu1 }
0x27a5   :  { %v5264_v10 = vsub.f32 %v12259_v2, %v5260_v63  ;;  %v10429_v48 = vpop.f32.mrb[59].mxu1  ;;  %v11216_v2 = vunpack.i.l.bf16 %v11215_v50 }
0x27a7   :  { %v5265_v11 = vand.u32 2147483647, %v5264_v10  ;;  %v10889_v55 = vpack.c.bf16 %v11217_v51, %v11216_v2  ;;  %v11220_v10 = vpop.permute.xlu1 %11219 }
0x27a8   :  { %v11222_v14 = vunpack.i.h.bf16 %v11220_v10  ;;  %v11221_v47 = vunpack.i.l.bf16 %v11220_v10 }
0x27a9   :  { %10431 = vmatpush3.msra.mxu0 %v5265_v11 }
0x27aa   :  { %10433 = vmatmul.mubr.msk.f32.vlgmr.msra.gmra.mrb[58].mxu0 %vm310_vm14, %v12170_v24  ;;  %10882 = vmatprep.subr.bf16.mxu0 %v11556_v0  ;;  %v10895_v39 = vpack.c.bf16 %v11222_v14, %v11221_v47 }
0x27ab   :  { %10884 = vmatpush3.bf16.msra.mxu0 %v10883_v46  ;;  %10446 = vmatprep.mubr.msk.f32.mxu0 %vm11557_vm0, %v11558_v1 }
0x27ac   :  { %10456 = vmatprep.subr.mxu0 %v11558_v1 }
0x27ae   :  { %10447 = vmatmul.mubr.msk.f32.vlgmr.msra.gmra.mrb[60].mxu0 %vm46_vm1, %v5187_v59  ;;  %v5771_v59 = vpop.permute.xlu0 %5770 }
0x27af   :  { %10457 = vmatpush3.msk.msra.mxu0 %vm131_vm5, %v5591_v17  ;;  %10458 = vmatprep.mubr.msk.f32.mxu0 %vm11557_vm0, %v11558_v1  ;;  %v11230_v17 = vpop.permute.xlu1 %11229 }
0x27b0   :  { %10891 = vmatprep.subr.bf16.mxu0 %v11556_v0 }
0x27b2   :  { %10459 = vmatmul.mubr.msk.f32.vlgmr.msra.gmra.mrb[62].mxu0 %vm126_vm3, %v11406_v19  ;;  %v11225_v28 = vpop.permute.xlu0 %11224  ;;  %v11231_v19 = vunpack.i.l.bf16 %v11230_v17 }
0x27b3   :  { %10893 = vmatpush3.bf16.msra.mxu0 %v10892_v18  ;;  %10472 = vmatprep.mubr.msk.f32.mxu0 %vm11557_vm0, %v11558_v1  ;;  %v11227_v58 = vunpack.i.h.bf16 %v11225_v28  ;;  %v11226_v8 = vunpack.i.l.bf16 %v11225_v28  ;;  %v11232_v18 = vunpack.i.h.bf16 %v11230_v17 }
0x27b4   :  { %10897 = vmatprep.subr.bf16.mxu0 %v11556_v0 }
0x27b5   :  { %v10898_v62 = vpack.c.bf16 %v11227_v58, %v11226_v8  ;;  %v10901_v26 = vpack.c.bf16 %v11232_v18, %v11231_v19 }
0x27b6   :  { %10473 = vmatmul.mubr.msk.f32.vlgmr.msra.gmra.mrb[64].mxu0 %vm46_vm1, %v12158_v33  ;;  %v5346_v33 = vrot.slane %v5345_v29, 2 }
0x27b7   :  { %10490 = vmatprep.mubr.msk.f32.mxu0 %vm11557_vm0, %v11558_v1  ;;  %10899 = vmatpush3.bf16.msra.mxu0 %v10898_v62 }
0x27b8   :  { %v5347_v32 = vmax.f32 %v5345_v29, %v5346_v33  ;;  %10900 = vmatprep.subr.bf16.mxu0 %v11556_v0  ;;  %v5853_v33 = vpop.permute.xlu0 %5852 }
0x27ba   :  { %v5348_v36 = vrot.slane %v5347_v32, 1 }
0x27bb   :  { %10902 = vmatpush3.bf16.msra.mxu0 %v10901_v26 }
0x27bc   :  { %v5349_v22 = vmax.f32 %v5347_v32, %v5348_v36  ;;  %10505 = vmatprep.subr.mxu0 %v11558_v1  ;;  %v11235_v31 = vpop.permute.xlu0 %11234 }
0x27bd   :  { %v11237_v32 = vunpack.i.h.bf16 %v11235_v31  ;;  %v11236_v13 = vunpack.i.l.bf16 %v11235_v31 }
0x27be   :  { %v5350_v41 = vsel %vm299_vm10, %v5342_v16, %v5349_v22  ;;  %v5949_v22 = vpop.permute.xlu1 %5948 }
0x27bf   :  { %v10904_v34 = vpack.c.bf16 %v11237_v32, %v11236_v13 }
0x287d   :  { %v5332_v7 = vpop.f32.mrb[58].mxu0 }
0x287e   :  { %v10434_v23 = vpop.f32.mrb[59].mxu0  ;;  %10440 = vmatmul.mubr.msk.f32.vlgmr.msra.gmra.mrb[60].mxu1 %vm46_vm1, %v5332_v7 }
0x287f   :  { %10887 = vmatpush3.bf16.msra.mxu1 %v10886_v5  ;;  %10453 = vmatprep.mubr.msk.f32.mxu1 %vm11557_vm0, %v11558_v1 }
0x2880   :  { %10888 = vmatprep.subr.bf16.mxu1 %v11556_v0 }
0x2881   :  { %v5504_v40 = vpop.f32.mrb[60].mxu0 }
0x2882   :  { %v10448_v42 = vpop.f32.mrb[61].mxu0  ;;  %10454 = vmatmul.mubr.msk.f32.vlgmr.msra.gmra.mrb[62].mxu1 %vm46_vm1, %v5350_v41 }
0x2883   :  { %10465 = vmatprep.mubr.msk.f32.mxu1 %vm11557_vm0, %v11558_v1  ;;  %10890 = vmatpush3.bf16.msra.mxu1 %v10889_v55 }
0x2884   :  { %10894 = vmatprep.subr.bf16.mxu1 %v11556_v0 }
0x2885   :  { %v5660_v53 = vpop.f32.mrb[62].mxu0 }
0x2886   :  { %v10460_v43 = vpop.f32.mrb[63].mxu0 }
0x2887   :  { %v6035_v43 = vpop.permute.xlu1 %6034 }
0x2889   :  { %v5839_v44 = vpop.f32.mrb[64].mxu0 }
0x288a   :  { %v10474_v49 = vpop.f32.mrb[65].mxu0  ;;  %v5840_v20 = vadd.f32 %v5839_v44, %v5771_v59 }
0x288c   :  { %v5844_v57 = vmul.f32 0.01, %v5840_v20  ;;  %vm5843_vm8 = vcmp.ge.f32.partialorder %v5840_v20, 0.0 }
0x288e   :  { %v5845_v30 = vsel %vm5843_vm8, %v5840_v20, %v5844_v57 }
0x2951   :  { %v5426_v54 = vpop.f32.mrb[60].mxu1 }
0x2952   :  { %v5505_v37 = vadd.f32 %v5504_v40, %v5426_v54  ;;  %v10441_v63 = vpop.f32.mrb[61].mxu1  ;;  %v12386_v54 = vld [vmem:[#allocation2 + $0x68] sm:$0xff] }
0x2955   :  { %v5583_v48 = vpop.f32.mrb[62].mxu1 }
0x2956   :  { %v5587_v11 = vadd.f32 %v5583_v48, %v5505_v37  ;;  %v10455_v46 = vpop.f32.mrb[63].mxu1  ;;  %v11238_v37 = vpack.i.bf16 %v12386_v54, %v12371_v60 }
0x2958   :  { %v5664_v12 = vadd.f32 %v5660_v53, %v5587_v11 }
0x295a   :  { %v5668_v21 = vadd.f32 %v5666_v56, %v5664_v12  ;;  %v6345_v56 = vld [vmem:[#allocation2 + $0x10] sm:$0xff] }
0x295b   :  { %6423 = vrot.lane.b32.xlu1 %v6345_v56, %s11560_s27  ;;  %6347 = vrot.lane.b32.xlu0 %v6345_v56, %s11561_s30  ;;  %s11618_s27 = smov 100  }
0x295c   :  { %v5670_v27 = vmul.f32 0.01, %v5668_v21  ;;  %vm5669_vm7 = vcmp.ge.f32.partialorder %v5668_v21, 0.0 }
0x295e   :  { %v5671_v29 = vsel %vm5669_vm7, %v5668_v21, %v5670_v27  ;;  %vm6336_vm7 = vcmask 64516  }
0x295f   :  { %10466 = vmatmul.mubr.msk.f32.vlgmr.msra.gmra.mrb[64].mxu1 %vm46_vm1, %v5671_v29  ;;  %6502 = vrot.lane.b32.xlu0 %v6345_v56, %s11581_s24 }
0x2960   :  { %10896 = vmatpush3.bf16.msra.mxu1 %v10895_v39  ;;  %10479 = vmatprep.mubr.msk.f32.mxu1 %vm11557_vm0, %v11558_v1 }
0x2961   :  { %10903 = vmatprep.subr.bf16.mxu1 %v11556_v0  ;;  %6504 = vrot.lane.b32.xlu1 %v12371_v60, %s11581_s24  ;;  %s11615_s24 = smov 24  }
0x2963   :  { %10480 = vmatmul.mubr.msk.f32.vlgmr.msra.gmra.mrb[66].mxu1 %vm46_vm1, %v5845_v30 }
0x2964   :  { %10497 = vmatprep.mubr.msk.f32.mxu1 %vm11557_vm0, %v11558_v1  ;;  %10905 = vmatpush3.bf16.msra.mxu1 %v10904_v34 }
0x2965   :  { %10500 = vmatprep.subr.mxu1 %v11558_v1  ;;  %11239 = vrot.lane.b32.xlu1 %v11238_v37, %s11582_s19  ;;  %s13003_s19 = smov 122  }
0x2969   :  { %6678 = vrot.lane.b32.xlu1 %v12371_v60, %s11570_s18  ;;  %s13002_s18 = smov 126  }
0x296d   :  { %11244 = vrot.lane.b32.xlu1 %v11238_v37, %s11569_s17 }
0x29cd   :  { %v6348_v61 = vpop.permute.xlu0 %6347  ;;  %v6424_v62 = vpop.permute.xlu1 %6423 }
0x29d1   :  { %v6503_v20 = vpop.permute.xlu0 %6502 }
0x29d3   :  { %v6505_v19 = vpop.permute.xlu1 %6504 }
0x29d4   :  { %v6506_v27 = vsel %vm2856_vm15, %v6503_v20, %v6505_v19 }
0x29d7   :  { %v11240_v13 = vpop.permute.xlu1 %11239 }
0x29d8   :  { %v11242_v34 = vunpack.i.h.bf16 %v11240_v13 }
0x2a32   :  { %v12343_v35 = vpop.f32.mrb[64].mxu1 }
0x2a33   :  { %v10467_v36 = vpop.f32.mrb[65].mxu1 }
0x2a34   :  { %v11241_v36 = vunpack.i.l.bf16 %v11240_v13 }
0x2a36   :  { %v5924_v5 = vpop.f32.mrb[66].mxu1 }
0x2a37   :  { %v12345_v7 = vadd.f32 %v5924_v5, %v5853_v33  ;;  %v10481_v16 = vpop.f32.mrb[67].mxu1  ;;  %v10907_v5 = vpack.c.bf16 %v11242_v34, %v11241_v36 }
0x2a39   :  { %10491 = vmatmul.mubr.msk.f32.vlgmr.msra.gmra.mrb[66].mxu0 %vm5951_vm11, %v12345_v7 }
0x2a3a   :  { %10507 = vmatprep.mubr.msk.f32.mxu0 %vm11557_vm0, %v11558_v1 }
0x2b0c   :  { %v6021_v23 = vpop.f32.mrb[66].mxu0 }
0x2b0d   :  { %v6022_v40 = vadd.f32 %v6021_v23, %v5949_v22  ;;  %v10492_v41 = vpop.f32.mrb[67].mxu0 }
0x2b0f   :  { %vm6025_vm13 = vcmp.ge.f32.partialorder %v6022_v40, 0.0  ;;  %v6026_v42 = vmul.f32 0.01, %v6022_v40 }
0x2b11   :  { %v6027_v53 = vsel %vm6025_vm13, %v6022_v40, %v6026_v42 }
0x2b12   :  { %10498 = vmatmul.mubr.msk.f32.vlgmr.msra.gmra.mrb[68].mxu1 %vm46_vm1, %v6027_v53 }
0x2b13   :  { %10502 = vmatprep.mubr.msk.f32.mxu1 %vm11557_vm0, %v11558_v1 }
0x2be5   :  { %v6106_v44 = vpop.f32.mrb[68].mxu1 }
0x2be6   :  { %v6107_v49 = vadd.f32 %v6106_v44, %v6035_v43  ;;  %v10499_v50 = vpop.f32.mrb[69].mxu1 }
0x2be7   :  { %v6679_v50 = vpop.permute.xlu1 %6678 }
0x2be8   :  { %vm6110_vm6 = vcmp.ge.f32.partialorder %v6107_v49, 0.0  ;;  %v6111_v51 = vmul.f32 0.01, %v6107_v49 }
0x2bea   :  { %v12354_v2 = vsel %vm6110_vm6, %v6107_v49, %v6111_v51  ;;  %vm312_vm6 = vcmask 91136  }
0x2beb   :  { %10501 = vmatpush3.msra.mxu1 %v12354_v2  ;;  %v6329_v63 = vsel %vm6328_vm9, %v12354_v2, -inf  ;;  %v6337_v10 = vsel %vm6336_vm7, %v12354_v2, -inf }
0x2bec   :  { %10503 = vmatmul.mubr.msk.f32.vlgmr.msra.gmra.mrb[70].mxu1 %vm310_vm14, %v12170_v24  ;;  %10510 = vmatprep.subr.mxu1 %v11558_v1  ;;  %v6330_v48 = vrot.slane %v6329_v63, 4  ;;  %v6338_v11 = vrot.slane %v6337_v10, 4 }
0x2bed   :  { %10512 = vmatprep.mubr.msk.f32.mxu1 %vm11557_vm0, %v11558_v1 }
0x2bee   :  { %v6331_v46 = vmax.f32 %v6329_v63, %v6330_v48  ;;  %v6339_v12 = vmax.f32 %v6337_v10, %v6338_v11  ;;  %v12432_v48 = vld [vmem:[#allocation2 + $0x70] sm:$0xff]  ;;  %v12434_v11 = vld [vmem:[#allocation2 + $0x20] sm:$0xff] }
0x2bf0   :  { %v6332_v14 = vrot.slane %v6331_v46, 2  ;;  %v6340_v47 = vrot.slane %v6339_v12, 2 }
0x2bf2   :  { %v6333_v17 = vmax.f32 %v6331_v46, %v6332_v14  ;;  %v6341_v18 = vmax.f32 %v6339_v12, %v6340_v47  ;;  %v7004_v46 = vld [vmem:[#allocation2 + $0x108] sm:$0xff]  ;;  %v11253_v12 = vpack.i.bf16 %v12432_v48, %v12386_v54  ;;  %v7005_v14 = vld [vmem:[#allocation2 + $0x110] sm:$0xff]  ;;  %v7002_v47 = vld [vmem:[#allocation2 + $0xb8] sm:$0xff] }
0x2bf3   :  { %v12447_v54 = vld [vmem:[%s12983_s3 + $0x2] ss:$0 sm:$0xff] }
0x2bf4   :  { %v6334_v21 = vrot.slane %v6333_v17, 1  ;;  %v6342_v26 = vrot.slane %v6341_v18, 1  ;;  %11254 = vrot.lane.b32.xlu1 %v11253_v12, %s11591_s11 }
0x2bf6   :  { %v6335_v57 = vmax.f32 %v6333_v17, %v6334_v21  ;;  %v6343_v29 = vmax.f32 %v6341_v18, %v6342_v26  ;;  %v7003_v17 = vld [vmem:[#allocation2 + $0xc0] sm:$0xff]  ;;  %v11263_v18 = vpack.i.bf16 %v7005_v14, %v7004_v46 }
0x2bf7   :  { %v11258_v19 = vpack.i.bf16 %v7003_v17, %v7002_v47 }
0x2bf8   :  { %v6344_v31 = vsel %vm299_vm10, %v6335_v57, %v6343_v29  ;;  %11264 = vrot.lane.b32.xlu1 %v11263_v18, %s11591_s11 }
0x2bfc   :  { %7044 = vrot.lane.b32.xlu1 %v12447_v54, %s11555_s20 }
0x2cbf   :  { %v6179_v55 = vpop.f32.mrb[70].mxu1 }
0x2cc0   :  { %v10504_v59 = vpop.f32.mrb[71].mxu1  ;;  %10506 = vmatpush3.msk.msra.mxu0 %vm131_vm5, %v6179_v55 }
0x2cc1   :  { %10508 = vmatmul.mubr.msk.f32.vlgmr.msra.gmra.mrb[68].mxu0 %vm126_vm3, %v12181_v45  ;;  %10515 = vmatprep.subr.mxu0 %v11558_v1 }
0x2cc2   :  { %10517 = vmatprep.mubr.msk.f32.mxu0 %vm11557_vm0, %v11558_v1  ;;  %10516 = vmatpush3.msra.mxu0 %v6348_v61 }
0x2cc3   :  { %10525 = vmatprep.subr.mxu0 %v11558_v1 }
0x2d94   :  { %v6252_v28 = vpop.f32.mrb[68].mxu0 }
0x2d95   :  { %v6256_v3 = vsub.f32 %v12354_v2, %v6252_v28  ;;  %v10509_v58 = vpop.f32.mrb[69].mxu0 }
0x2d96   :  { %v11245_v58 = vpop.permute.xlu1 %11244 }
0x2d97   :  { %v6257_v8 = vand.u32 2147483647, %v6256_v3 }
0x2d99   :  { %10511 = vmatpush3.msra.mxu1 %v6257_v8  ;;  %v11247_v8 = vunpack.i.h.bf16 %v11245_v58 }
0x2d9a   :  { %10513 = vmatmul.mubr.msk.f32.vlgmr.msra.gmra.mrb[72].mxu1 %vm310_vm14, %v12170_v24  ;;  %10520 = vmatprep.subr.mxu1 %v11558_v1  ;;  %v11407_v24 = vld [vmem:[%s12983_s3 + $0x1] ss:$0 sm:$0xff] }
0x2d9b   :  { %10521 = vmatpush3.msra.mxu1 %v6424_v62  ;;  %10522 = vmatprep.mubr.msk.f32.mxu1 %vm11557_vm0, %v11558_v1  ;;  %v11246_v62 = vunpack.i.l.bf16 %v11245_v58 }
0x2d9c   :  { %10906 = vmatprep.subr.bf16.mxu1 %v11556_v0  ;;  %6582 = vrot.lane.b32.xlu0 %v11407_v24, %s11615_s24  ;;  %s11622_s24 = smov 36  }
0x2d9d   :  { %v10910_v37 = vpack.c.bf16 %v11247_v8, %v11246_v62  ;;  %v12478_v8 = vpack.i.bf16 %v12432_v48, %v12434_v11  ;;  %v7206_v62 = vld [vmem:[#allocation2 + $0x20] sm:$0xf] }
0x2d9e   :  { %10523 = vmatmul.mubr.msk.f32.vlgmr.msra.gmra.mrb[74].mxu1 %vm310_vm14, %v6179_v55 }
0x2d9f   :  { %10534 = vmatprep.mubr.msk.f32.mxu1 %vm11557_vm0, %v11558_v1  ;;  %10908 = vmatpush3.bf16.msra.mxu1 %v10907_v5 }
0x2da0   :  { %6599 = vrot.lane.b32.xlu0 %v11407_v24, %s11593_s23  ;;  %10542 = vmatprep.subr.mxu1 %v11558_v1 }
0x2da4   :  { %6827 = vrot.lane.b32.xlu0 %v12371_v60, %s11583_s22 }
0x2e0e   :  { %v6583_v41 = vpop.permute.xlu0 %6582 }
0x2e12   :  { %v6600_v51 = vpop.permute.xlu0 %6599 }
0x2e16   :  { %v6828_v28 = vpop.permute.xlu0 %6827 }
0x2e6d   :  { %v6324_v39 = vpop.f32.mrb[72].mxu1 }
0x2e6e   :  { %v10514_v30 = vpop.f32.mrb[73].mxu1  ;;  %10518 = vmatmul.mubr.msk.f32.vlgmr.msra.gmra.mrb[70].mxu0 %vm310_vm14, %v6324_v39 }
0x2e6f   :  { %10526 = vmatpush3.msra.mxu0 %v6506_v27  ;;  %10527 = vmatprep.mubr.msk.f32.mxu0 %vm11557_vm0, %v11558_v1 }
0x2e70   :  { %10537 = vmatprep.subr.mxu0 %v11558_v1 }
0x2e71   :  { %v6494_v33 = vpop.f32.mrb[74].mxu1 }
0x2e72   :  { %v10524_v32 = vpop.f32.mrb[75].mxu1  ;;  %10528 = vmatmul.mubr.msk.f32.vlgmr.msra.gmra.mrb[72].mxu0 %vm310_vm14, %v6344_v31 }
0x2e73   :  { %10539 = vmatprep.mubr.msk.f32.mxu0 %vm11557_vm0, %v11558_v1  ;;  %10538 = vmatpush3.msra.mxu0 %v6679_v50 }
0x2e74   :  { %10547 = vmatprep.subr.mxu0 %v11558_v1 }
0x2f41   :  { %v6419_v16 = vpop.f32.mrb[70].mxu0 }
0x2f42   :  { %v6495_v22 = vadd.f32 %v6494_v33, %v6419_v16  ;;  %v10519_v23 = vpop.f32.mrb[71].mxu0 }
0x2f45   :  { %v6577_v40 = vpop.f32.mrb[72].mxu0 }
0x2f46   :  { %v6581_v42 = vadd.f32 %v6577_v40, %v6495_v22  ;;  %v10529_v53 = vpop.f32.mrb[73].mxu0 }
0x2f48   :  { %v6585_v43 = vadd.f32 %v6583_v41, %v6581_v42 }
0x2f4a   :  { %vm6586_vm15 = vcmp.ge.f32.partialorder %v6585_v43, 0.0  ;;  %v6587_v44 = vmul.f32 0.01, %v6585_v43 }
0x2f4c   :  { %v6588_v49 = vsel %vm6586_vm15, %v6585_v43, %v6587_v44  ;;  %v7205_v44 = vld [vmem:[#allocation2 + $0x18] sm:$0xf]  ;;  %vm8078_vm15 = vcmask 254976  }
0x2f4d   :  { %10535 = vmatmul.mubr.msk.f32.vlgmr.msra.gmra.mrb[76].mxu1 %vm46_vm1, %v6588_v49 }
0x2f4e   :  { %10544 = vmatprep.mubr.msk.f32.mxu1 %vm11557_vm0, %v11558_v1 }
0x3020   :  { %v6671_v56 = vpop.f32.mrb[76].mxu1 }
0x3021   :  { %v6672_v55 = vadd.f32 %v6671_v56, %v6600_v51  ;;  %v10536_v59 = vpop.f32.mrb[77].mxu1 }
0x3022   :  { %v12470_v59 = vpack.i.bf16 %v7005_v14, %v7003_v17 }
0x3023   :  { %vm6675_vm8 = vcmp.ge.f32.partialorder %v6672_v55, 0.0  ;;  %v6676_v61 = vmul.f32 0.01, %v6672_v55 }
0x3025   :  { %v6677_v3 = vsel %vm6675_vm8, %v6672_v55, %v6676_v61  ;;  %vm8086_vm8 = vcmask 257026  }
0x3026   :  { %10540 = vmatmul.mubr.msk.f32.vlgmr.msra.gmra.mrb[74].mxu0 %vm310_vm14, %v6677_v3 }
0x3027   :  { %10548 = vmatpush3.msra.mxu0 %v6828_v28  ;;  %10549 = vmatprep.mubr.msk.f32.mxu0 %vm11557_vm0, %v11558_v1 }
0x3028   :  { %10912 = vmatprep.subr.bf16.mxu0 %v11556_v0 }
0x302a   :  { %10550 = vmatmul.mubr.msk.f32.vlgmr.msra.gmra.mrb[76].mxu0 %vm310_vm14, %v12354_v2 }
0x302b   :  { %10567 = vmatprep.mubr.msk.f32.mxu0 %vm11557_vm0, %v11558_v1 }
0x30f9   :  { %v6750_v24 = vpop.f32.mrb[74].mxu0 }
0x30fa   :  { %v10541_v63 = vpop.f32.mrb[75].mxu0  ;;  %10543 = vmatpush3.msk.msra.mxu1 %vm131_vm5, %v6750_v24 }
0x30fb   :  { %10545 = vmatmul.mubr.msk.f32.vlgmr.msra.gmra.mrb[78].mxu1 %vm126_vm3, %v12181_v45  ;;  %10909 = vmatprep.subr.bf16.mxu1 %v11556_v0  ;;  %v11248_v45 = vpack.i.bf16 %v12434_v11, %v12371_v60  ;;  %v11255_v60 = vpop.permute.xlu1 %11254 }
0x30fc   :  { %10911 = vmatpush3.bf16.msra.mxu1 %v10910_v37  ;;  %10556 = vmatprep.mubr.msk.f32.mxu1 %vm11557_vm0, %v11558_v1  ;;  %v11257_v21 = vunpack.i.h.bf16 %v11255_v60  ;;  %v11256_v26 = vunpack.i.l.bf16 %v11255_v60 }
0x30fd   :  { %v6899_v2 = vpop.f32.mrb[76].mxu0  ;;  %10918 = vmatprep.subr.bf16.mxu1 %v11556_v0  ;;  %11249 = vrot.lane.b32.xlu0 %v11248_v45, %s11591_s11 }
0x30fe   :  { %v10551_v10 = vpop.f32.mrb[77].mxu0  ;;  %v7037_v29 = vsel %vm3930_vm12, %v11256_v26, %v11257_v21 }
0x30ff   :  { %v11265_v13 = vpop.permute.xlu1 %11264 }
0x3100   :  { %v11267_v34 = vunpack.i.h.bf16 %v11265_v13  ;;  %v11266_v36 = vunpack.i.l.bf16 %v11265_v13 }
0x3101   :  { %11259 = vrot.lane.b32.xlu0 %v11258_v19, %s11591_s11 }
0x3102   :  { %v7039_v40 = vsel %vm3930_vm12, %v11266_v36, %v11267_v34 }
0x3103   :  { %v7045_v61 = vpop.permute.xlu1 %7044 }
0x3105   :  { %6920 = vrot.lane.b32.xlu0 %v12447_v54, %s11559_s2 }
0x3109   :  { %7208 = vrot.lane.b32.xlu0 %v7205_v44, %s11580_s16 }
0x310d   :  { %7375 = vrot.lane.b32.xlu0 %v7205_v44, %s11587_s29  ;;  %s13000_s29 = smov 52   ;;  %v8100_v44 = vld [vmem:[#allocation2 + $0xe0] sm:$0xff] }
0x3111   :  { %11274 = vrot.lane.b32.xlu0 %v12470_v59, %s11583_s22 }
0x316f   :  { %v11250_v20 = vpop.permute.xlu0 %11249 }
0x3170   :  { %v11252_v27 = vunpack.i.h.bf16 %v11250_v20  ;;  %v11251_v39 = vunpack.i.l.bf16 %v11250_v20 }
0x3172   :  { %v7036_v30 = vsel %vm3930_vm12, %v11251_v39, %v11252_v27 }
0x3173   :  { %v10913_v32 = vpack.c.bf16 %v7037_v29, %v7036_v30  ;;  %v11260_v5 = vpop.permute.xlu0 %11259 }
0x3174   :  { %v11262_v22 = vunpack.i.h.bf16 %v11260_v5  ;;  %v11261_v23 = vunpack.i.l.bf16 %v11260_v5 }
0x3175   :  { %10914 = vmatpush3.bf16.msra.mxu0 %v10913_v32 }
0x3176   :  { %10915 = vmatprep.subr.bf16.mxu0 %v11556_v0  ;;  %v7038_v42 = vsel %vm3930_vm12, %v11261_v23, %v11262_v22 }
0x3177   :  { %v10916_v53 = vpack.c.bf16 %v7039_v40, %v7038_v42  ;;  %v6921_v49 = vpop.permute.xlu0 %6920  ;;  %v12511_v40 = vld [vmem:[%s12983_s3 + $0x2] sm:$0x3] }
0x3179   :  { %10917 = vmatpush3.bf16.msra.mxu0 %v10916_v53  ;;  %v9710_v53 = vld [vmem:[%s12983_s3 + $0x4] ss:$0 sm:$0xff] }
0x317a   :  { %10581 = vmatprep.subr.mxu0 %v11558_v1 }
0x31ce   :  { %v6823_v57 = vpop.f32.mrb[78].mxu1 }
0x31cf   :  { %v6900_v33 = vadd.f32 %v6899_v2, %v6823_v57  ;;  %v10546_v31 = vpop.f32.mrb[79].mxu1 }
0x31d1   :  { %v6910_v16 = vadd.f32 %v12447_v54, %v6900_v33 }
0x31d3   :  { %vm6911_vm13 = vcmp.ge.f32.partialorder %v6910_v16, 0.0  ;;  %v6912_v41 = vmul.f32 0.01, %v6910_v16 }
0x31d5   :  { %v6913_v43 = vsel %vm6911_vm13, %v6910_v16, %v6912_v41  ;;  %v7553_v41 = vrot.slane %v12511_v40, %v12205_v4 }
0x31d6   :  { %10557 = vmatmul.mubr.msk.f32.vlgmr.msra.gmra.mrb[80].mxu1 %vm46_vm1, %v6913_v43  ;;  %v7652_v43 = vld [vmem:[#allocation2] sm:$0xf] }
0x31d7   :  { %10578 = vmatprep.mubr.msk.f32.mxu1 %vm11557_vm0, %v11558_v1 }
0x32a9   :  { %v6992_v50 = vpop.f32.mrb[80].mxu1 }
0x32aa   :  { %v6993_v51 = vadd.f32 %v6992_v50, %v6921_v49  ;;  %v10558_v56 = vpop.f32.mrb[81].mxu1  ;;  %v12523_v49 = vld [vmem:[#allocation2 + $0x130] sm:$0xff] }
0x32ab   :  { %v12527_v50 = vpack.i.bf16 %v12523_v49, %v8100_v44  ;;  %v8098_v56 = vld [vmem:[#allocation2 + $0x90] sm:$0xff] }
0x32ac   :  { %v6996_v55 = vadd.f32 %v6993_v51, %v12345_v7  ;;  %v7209_v7 = vpop.permute.xlu0 %7208 }
0x32ae   :  { %6997 = vst.msk [vmem:[#allocation9] sm:$0xff] %vm5951_vm11, %v6996_v55  ;;  %10568 = vmatmul.mubr.msk.f32.vlgmr.msra.gmra.mrb[78].mxu0 %vm5951_vm11, %v6996_v55 }
0x32af   :  { %10583 = vmatprep.mubr.msk.f32.mxu0 %vm11557_vm0, %v11558_v1 }
0x32b0   :  { %v7376_v37 = vpop.permute.xlu0 %7375 }
0x32b4   :  { %v11275_v63 = vpop.permute.xlu0 %11274 }
0x32b5   :  { %v11277_v11 = vunpack.i.h.bf16 %v11275_v63  ;;  %v11276_v46 = vunpack.i.l.bf16 %v11275_v63 }
0x32b7   :  { %v10922_v45 = vpack.c.bf16 %v11277_v11, %v11276_v46  ;;  %v11408_v11 = vld [vmem:[%s12983_s3 + $0x4] ss:$0 sm:$0xff]  ;;  %v11409_v46 = vld [vmem:[%s12983_s3 + $0x3] ss:$0 sm:$0xff] }
0x3381   :  { %v7116_v28 = vpop.f32.mrb[78].mxu0 }
0x3382   :  { %v7117_v3 = vadd.f32 %v7116_v28, %v7045_v61  ;;  %v10569_v58 = vpop.f32.mrb[79].mxu0  ;;  %v12535_v61 = vld [vmem:[#allocation2 + $0xd8] sm:$0xff] }
0x3383   :  { %v11328_v28 = vpack.i.bf16 %v8100_v44, %v12535_v61  ;;  %v12553_v58 = vld [vmem:[%s12983_s3 + $0x5] ss:$0 sm:$0xff] }
0x3384   :  { %7377 = vrot.lane.b32.xlu1 %v7117_v3, %s11559_s2  ;;  %10582 = vmatpush3.xpose.msk.msra.mxu0 %vm46_vm1, %v7117_v3  ;;  %v12543_v3 = vld [vmem:[%s12983_s3 + $0x4] sm:$0x3] }
0x3385   :  { %10591 = vmatprep.subr.mxu0 %v11558_v1 }
0x3387   :  { %10584 = vmatmul.mubr.msk.f32.vlgmr.msra.gmra.mrb[80].mxu0 %vm46_vm1, %v7209_v7  ;;  %v12555_v7 = vld [vmem:[#allocation2 + $0x40] sm:$0xff] }
0x3388   :  { %11269 = vrot.lane.b32.xlu1 %v12478_v8, %s11583_s22  ;;  %10593 = vmatprep.mubr.msk.f32.mxu0 %vm11557_vm0, %v11558_v1  ;;  %s11619_s22 = smov 106  }
0x338c   :  { %7287 = vrot.lane.b32.xlu1 %v7206_v62, %s11580_s16  ;;  %v12560_v62 = vpack.i.bf16 %v8098_v56, %v12555_v7 }
0x33f6   :  { %v7378_v24 = vpop.permute.xlu1 %7377 }
0x33f7   :  { %10592 = vmatpush3.xpose.msk.msra.mxu0 %vm46_vm1, %v7378_v24  ;;  %v12568_v24 = vld [vmem:[#allocation2 + $0x98] sm:$0xff] }
0x33f8   :  { %10924 = vmatprep.subr.bf16.mxu0 %v11556_v0 }
0x33fa   :  { %v11270_v2 = vpop.permute.xlu1 %11269  ;;  %10594 = vmatmul.mubr.msk.f32.vlgmr.msra.gmra.mrb[82].mxu0 %vm46_vm1, %v7376_v37  ;;  %v12566_v37 = vld [vmem:[#allocation2 + $0x48] sm:$0xff] }
0x33fb   :  { %v11272_v10 = vunpack.i.h.bf16 %v11270_v2  ;;  %v11271_v48 = vunpack.i.l.bf16 %v11270_v2  ;;  %10609 = vmatprep.mubr.msk.f32.mxu0 %vm11557_vm0, %v11558_v1  ;;  %v12573_v63 = vpack.i.bf16 %v12568_v24, %v12566_v37  ;;  %v12575_v2 = vld [vmem:[#allocation2 + $0xe8] sm:$0xff] }
0x33fd   :  { %v10919_v12 = vpack.c.bf16 %v11272_v10, %v11271_v48  ;;  %v12577_v10 = vld [vmem:[#allocation2 + $0x138] sm:$0xff] }
0x33fe   :  { %v7288_v47 = vpop.permute.xlu1 %7287  ;;  %v11378_v48 = vpack.i.bf16 %v12577_v10, %v12575_v2 }
0x33ff   :  { %10920 = vmatpush3.bf16.msra.mxu1 %v10919_v12 }
0x3400   :  { %10921 = vmatprep.subr.bf16.mxu1 %v11556_v0 }
0x3403   :  { %10923 = vmatpush3.bf16.msra.mxu1 %v10922_v45 }
0x3404   :  { %10586 = vmatprep.subr.mxu1 %v11558_v1 }
0x3406   :  { %10579 = vmatmul.mubr.msk.f32.vlgmr.msra.gmra.mrb[82].mxu1 %vm5951_vm11, %v6996_v55  ;;  %v11318_v55 = vpack.i.bf16 %v8098_v56, %v12243_v25  ;;  %v8387_v25 = vrot.slane %v12543_v3, %v12207_v6 }
0x3407   :  { %10588 = vmatprep.mubr.msk.f32.mxu1 %vm11557_vm0, %v11558_v1 }
0x345a   :  { %v7281_v14 = vpop.f32.mrb[80].mxu0 }
0x345b   :  { %v7285_v17 = vmul.f32 0.25, %v7281_v14  ;;  %v10585_v18 = vpop.f32.mrb[81].mxu0 }
0x345d   :  { %v7290_v19 = vadd.f32 %v7288_v47, %v7285_v17 }
0x345f   :  { %v7291_v60 = vsel %vm6328_vm9, %v7290_v19, -inf }
0x3460   :  { %7292 = vmax.xlane.f32.xlu0 %v7291_v60 }
0x3476   :  { %7132 = vrot.lane.b32.xlu0 %v12447_v54, %s11584_s25 }
0x347a   :  { %11279 = vrot.lane.b32.xlu0 %v12478_v8, %s11569_s17 }
0x347e   :  { %11284 = vrot.lane.b32.xlu0 %v12470_v59, %s11569_s17 }
0x34cd   :  { %v7449_v20 = vpop.f32.mrb[82].mxu0 }
0x34ce   :  { %v7453_v21 = vmul.f32 0.25, %v7449_v20  ;;  %v10595_v26 = vpop.f32.mrb[83].mxu0  ;;  %v11410_v20 = vld [vmem:[%s12980_s0] sm:$0xff] }
0x34cf   :  { %v11411_v26 = vld [vmem:[%s12980_s0 + $0x8] sm:$0xff]  ;;  %s11623_s0 = smov 84  }
0x34d0   :  { %v7454_v27 = vadd.f32 %v7453_v21, %v7288_v47  ;;  %v285_v21 = vsel %vm284_vm2, %v11410_v20, -inf  ;;  %v8383_v20 = vrot.slane %v12543_v3, %v12205_v4  ;;  %v9306_v3 = vld [vmem:[#allocation2 + $0x48] sm:$0x3] }
0x34d2   :  { %v7455_v39 = vsel %vm6328_vm9, %v7454_v27, -inf }
0x34d3   :  { %7456 = vmax.xlane.f32.xlu1 %v7455_v39  ;;  %v286_v39 = vrot.slane %v285_v21, 4 }
0x34d9   :  { %v7201_v57 = vpop.f32.mrb[82].mxu1 }
0x34da   :  { %v10580_v29 = vpop.f32.mrb[83].mxu1 }
0x34db   :  { %v287_v29 = vmax.f32 %v285_v21, %v286_v39 }
0x34ed   :  { %v7293_v30 = vpop.xlane.xlu0 %7292 }
0x34ee   :  { %v7294_v33 = vsub.f32 %v7290_v19, %v7293_v30 }
0x34f0   :  { %v7295_v31 = vmul.f32 1.442695, %v7294_v33  ;;  %v288_v33 = vrot.slane %v287_v29, 2 }
0x34f1   :  { %v7133_v32 = vpop.permute.xlu0 %7132 }
0x34f2   :  { %11396 = vpow2.f32 %v7295_v31  ;;  %v7202_v13 = vadd.f32 %v7201_v57, %v7133_v32  ;;  %v289_v32 = vmax.f32 %v287_v29, %v288_v33 }
0x34f4   :  { %10587 = vmatpush3.msra.mxu1 %v7202_v13 }
0x34f5   :  { %10596 = vmatprep.subr.mxu1 %v11558_v1 }
0x34fc   :  { %v11397_v34 = vpop.eup %11396 }
0x34fd   :  { %v7297_v54 = vsel %vm6328_vm9, %v11397_v34, 0.0 }
0x34fe   :  { %7298 = vadd.xlane.f32.xlu1 %v7297_v54 }
0x3560   :  { %v7457_v36 = vpop.xlane.xlu1 %7456 }
0x3561   :  { %v7458_v5 = vsub.f32 %v7454_v27, %v7457_v36  ;;  %v292_v27 = vsel %vm284_vm2, %v11411_v26, -inf  ;;  %v8493_v26 = vld [vmem:[#allocation2 + $0x40] sm:$0xf] }
0x3562   :  { %v293_v57 = vrot.slane %v292_v27, 4 }
0x3563   :  { %v7459_v16 = vmul.f32 1.442695, %v7458_v5 }
0x3564   :  { %v294_v30 = vmax.f32 %v292_v27, %v293_v57 }
0x3565   :  { %11398 = vpow2.f32 %v7459_v16 }
0x3566   :  { %v295_v31 = vrot.slane %v294_v30, 2 }
0x356f   :  { %v12503_v22 = vpop.eup %11398 }
0x3570   :  { %v7461_v23 = vsel %vm6328_vm9, %v12503_v22, 0.0  ;;  %vm7649_vm9 = vcmask 257024  }
0x3571   :  { %7462 = vadd.xlane.f32.xlu1 %v7461_v23 }
0x3582   :  { %7467 = vrot.lane.b32.xlu1 %v7202_v13, %s11559_s2  ;;  %v296_v13 = vmax.f32 %v294_v30, %v295_v31 }
0x3584   :  { %v297_v54 = vrot.slane %v296_v13, 1 }
0x3586   :  { %11289 = vrot.lane.b32.xlu1 %v12268_v9, %s13000_s29  ;;  %v298_v5 = vmax.f32 %v296_v13, %v297_v54 }
0x358a   :  { %7570 = vrot.lane.b32.xlu1 %v7553_v41, %s13001_s26 }
0x358b   :  { %v7299_v42 = vpop.xlane.xlu1 %7298 }
0x358c   :  { %11400 = vrcp.f32 %v7299_v42 }
0x358e   :  { %7679 = vrot.lane.b32.xlu1 %v9710_v53, %s11572_s21  ;;  %s11617_s21 = smov 4  }
0x3592   :  { %7768 = vrot.lane.b32.xlu1 %v9710_v53, %s11580_s16  ;;  %s11621_s16 = smov 63  }
0x3596   :  { %v11401_v9 = vpop.eup %11400  ;;  %7926 = vrot.lane.b32.xlu1 %v7652_v43, %s11562_s10 }
0x3597   :  { %v7301_v51 = vmul.f32 %v11401_v9, %v11397_v34  ;;  %v290_v34 = vrot.slane %v289_v32, 1 }
0x3599   :  { %10589 = vmatmul.mubr.msk.f32.vlgmr.msra.gmra.mrb[84].mxu1 %vm310_vm14, %v7301_v51  ;;  %v291_v36 = vmax.f32 %v289_v32, %v290_v34 }
0x359a   :  { %11309 = vrot.lane.b32.xlu1 %v12527_v50, %s11616_s13  ;;  %10598 = vmatprep.mubr.msk.f32.mxu1 %vm11557_vm0, %v11558_v1 }
0x359b   :  { %v300_v16 = vsel %vm299_vm10, %v291_v36, %v298_v5 }
0x359e   :  { %11319 = vrot.lane.b32.xlu1 %v11318_v55, %s11617_s21 }
0x35a2   :  { %11329 = vrot.lane.b32.xlu1 %v11328_v28, %s11617_s21 }
0x35a6   :  { %11339 = vrot.lane.b32.xlu1 %v12527_v50, %s11618_s27 }
0x35aa   :  { %8390 = vrot.lane.b32.xlu1 %v8387_v25, %s11591_s11  ;;  %v7656_v25 = vld [vmem:[#allocation2 + $0x128] sm:$0xff] }
0x35ae   :  { %8414 = vrot.lane.b32.xlu1 %v12553_v58, %s13002_s18 }
0x35b2   :  { %11349 = vrot.lane.b32.xlu1 %v12560_v62, %s11555_s20 }
0x35b6   :  { %8729 = vrot.lane.b32.xlu1 %v12553_v58, %s13003_s19 }
0x35ba   :  { %8742 = vrot.lane.b32.xlu1 %v12553_v58, %s11619_s22 }
0x35be   :  { %11369 = vrot.lane.b32.xlu1 %v12573_v63, %s11559_s2 }
0x35c2   :  { %11379 = vrot.lane.b32.xlu1 %v11378_v48, %s11559_s2 }
0x35c6   :  { %9383 = vrot.lane.b32.xlu1 %v12553_v58, %s11620_s28 }
0x35ca   :  { %5678 = vrot.lane.b32.xlu1 %v11408_v11, %s11621_s16 }
0x35ce   :  { %2002 = vrot.lane.b32.xlu1 %v11409_v46, %s11622_s24  ;;  %v11293_v46 = vpack.i.bf16 %v7656_v25, %v12535_v61 }
0x35d2   :  { %306 = vrot.lane.b32.xlu1 %v300_v16, %s11593_s23 }
0x35fe   :  { %v7463_v12 = vpop.xlane.xlu1 %7462 }
0x35ff   :  { %11402 = vrcp.f32 %v7463_v12 }
0x3602   :  { %v7468_v45 = vpop.permute.xlu1 %7467 }
0x3603   :  { %10597 = vmatpush3.msra.mxu1 %v7468_v45  ;;  %v7557_v45 = vrot.slane %v12511_v40, %v12207_v6 }
0x3604   :  { %10930 = vmatprep.subr.bf16.mxu1 %v11556_v0 }
0x3606   :  { %v11290_v14 = vpop.permute.xlu1 %11289 }
0x3607   :  { %v11292_v47 = vunpack.i.h.bf16 %v11290_v14  ;;  %v11291_v17 = vunpack.i.l.bf16 %v11290_v14  ;;  %v7758_v14 = vld [vmem:[#allocation2 + $0x38] sm:$0xff] }
0x3608   :  { %v11313_v61 = vpack.i.bf16 %v12555_v7, %v7758_v14 }
0x3609   :  { %v11403_v18 = vpop.eup %11402  ;;  %v10931_v19 = vpack.c.bf16 %v11292_v47, %v11291_v17  ;;  %v7759_v47 = vld [vmem:[#allocation2 + $0x88] sm:$0xff] }
0x360a   :  { %v7465_v60 = vmul.f32 %v11403_v18, %v12503_v22  ;;  %v11280_v22 = vpop.permute.xlu0 %11279  ;;  %v12616_v51 = vpop.permute.xlu1 %7570  ;;  %v11298_v17 = vpack.i.bf16 %v7759_v47, %v7758_v14 }
0x360b   :  { %v11282_v23 = vunpack.i.h.bf16 %v11280_v22  ;;  %v11281_v41 = vunpack.i.l.bf16 %v11280_v22 }
0x360c   :  { %10599 = vmatmul.mubr.msk.f32.vlgmr.msra.gmra.mrb[86].mxu1 %vm310_vm14, %v7465_v60 }
0x360d   :  { %10932 = vmatpush3.bf16.msra.mxu1 %v10931_v19  ;;  %10620 = vmatprep.mubr.msk.f32.mxu1 %vm11557_vm0, %v11558_v1  ;;  %v10925_v42 = vpack.c.bf16 %v11282_v23, %v11281_v41  ;;  %v7651_v19 = vld [vmem:[#allocation2] sm:$0x3] }
0x360e   :  { %10933 = vmatprep.subr.bf16.mxu1 %v11556_v0  ;;  %v11285_v53 = vpop.permute.xlu0 %11284  ;;  %v12618_v56 = vpop.permute.xlu1 %7679 }
0x360f   :  { %v11287_v43 = vunpack.i.h.bf16 %v11285_v53  ;;  %v11286_v44 = vunpack.i.l.bf16 %v11285_v53  ;;  %10926 = vmatpush3.bf16.msra.mxu0 %v10925_v42 }
0x3610   :  { %10927 = vmatprep.subr.bf16.mxu0 %v11556_v0 }
0x3611   :  { %v10928_v9 = vpack.c.bf16 %v11287_v43, %v11286_v44 }
0x3612   :  { %v12620_v55 = vpop.permute.xlu1 %7768 }
0x3613   :  { %10929 = vmatpush3.bf16.msra.mxu0 %v10928_v9 }
0x3614   :  { %10936 = vmatprep.subr.bf16.mxu0 %v11556_v0 }
0x3616   :  { %v12622_v28 = vpop.permute.xlu1 %7926 }
0x361a   :  { %v12626_v12 = vpop.permute.xlu1 %11309 }
0x361e   :  { %v12632_v18 = vpop.permute.xlu1 %11319 }
0x361f   :  { %v11322_v36 = vunpack.i.h.bf16 %v12632_v18  ;;  %v11321_v5 = vunpack.i.l.bf16 %v12632_v18 }
0x3621   :  { %v12698_v22 = vsel %vm284_vm2, %v11321_v5, %v11322_v36 }
0x3622   :  { %v12635_v60 = vpop.permute.xlu1 %11329 }
0x3623   :  { %v11332_v44 = vunpack.i.h.bf16 %v12635_v60  ;;  %v11331_v9 = vunpack.i.l.bf16 %v12635_v60 }
0x3626   :  { %v12641_v6 = vpop.permute.xlu1 %11339 }
0x362a   :  { %v12644_v40 = vpop.permute.xlu1 %8390 }
0x362e   :  { %v12652_v21 = vpop.permute.xlu1 %8414 }
0x3632   :  { %v12655_v7 = vpop.permute.xlu1 %11349 }
0x3636   :  { %v12658_v27 = vpop.permute.xlu1 %8729 }
0x366c   :  { %v12602_v59 = vpop.f32.mrb[84].mxu1 }
0x366d   :  { %v10590_v8 = vpop.f32.mrb[85].mxu1 }
0x366e   :  { %v11333_v8 = vpack.i.bf16 %v12523_v49, %v7656_v25  ;;  %v12662_v49 = vpop.permute.xlu1 %8742 }
0x3672   :  { %v12668_v4 = vpop.permute.xlu1 %11369 }
0x3676   :  { %v12672_v39 = vpop.permute.xlu1 %11379 }
0x367a   :  { %v12677_v57 = vpop.permute.xlu1 %9383 }
0x367e   :  { %v5679_v29 = vpop.permute.xlu1 %5678 }
0x36df   :  { %v7539_v48 = vpop.f32.mrb[86].mxu1 }
0x36e0   :  { %7544 = vrot.lane.b32.xlu0 %v7539_v48, %s13001_s26  ;;  %v10600_v11 = vpop.f32.mrb[87].mxu1  ;;  %v12710_v48 = vsel %vm284_vm2, %v11331_v9, %v11332_v44  ;;  %v11311_v44 = vunpack.i.l.bf16 %v12626_v12 }
0x36e4   :  { %11294 = vrot.lane.b32.xlu0 %v11293_v46, %s13000_s29  ;;  %s11624_s29 = smov 64  }
0x36e8   :  { %7572 = vrot.lane.b32.xlu0 %v7557_v45, %s13001_s26 }
0x36ec   :  { %11299 = vrot.lane.b32.xlu0 %v11298_v17, %s11622_s24 }
0x36f0   :  { %7848 = vrot.lane.b32.xlu0 %v7651_v19, %s11618_s27 }
0x36f4   :  { %11304 = vrot.lane.b32.xlu0 %v12560_v62, %s11616_s13  ;;  %s11627_s13 = smov [#allocation9]  }
0x36f8   :  { %11314 = vrot.lane.b32.xlu0 %v11313_v61, %s11617_s21 }
0x36fc   :  { %11324 = vrot.lane.b32.xlu0 %v12560_v62, %s11618_s27 }
0x3700   :  { %11334 = vrot.lane.b32.xlu0 %v11333_v8, %s11617_s21 }
0x3704   :  { %8388 = vrot.lane.b32.xlu0 %v8383_v20, %s11591_s11  ;;  %s13004_s11 = smov 58  }
0x3708   :  { %11344 = vrot.lane.b32.xlu0 %v12560_v62, %s11623_s0 }
0x370c   :  { %8495 = vrot.lane.b32.xlu0 %v8493_v26, %s11624_s29 }
0x3710   :  { %11354 = vrot.lane.b32.xlu0 %v12527_v50, %s11555_s20 }
0x3714   :  { %11359 = vrot.lane.b32.xlu0 %v12560_v62, %s11584_s25  ;;  %s11625_s25 = smov 1  }
0x3718   :  { %11364 = vrot.lane.b32.xlu0 %v12560_v62, %s13001_s26  ;;  %v5751_v62 = vadd.f32 %v12343_v35, %v5679_v29 }
0x371c   :  { %11374 = vrot.lane.b32.xlu0 %v12527_v50, %s13001_s26 }
0x3720   :  { %9308 = vrot.lane.b32.xlu0 %v9306_v3, %s11562_s10  ;;  %v12735_v3 = vpop.permute.xlu1 %2002 }
0x3724   :  { %11384 = vrot.lane.b32.xlu0 %v12573_v63, %s11555_s20 }
0x3728   :  { %9400 = vrot.lane.b32.xlu0 %v12553_v58, %s13004_s11 }
0x372c   :  { %302 = vrot.lane.b32.xlu0 %v11770_v38, %s11617_s21  ;;  %s9529_s21 = sshll.u32 %s11627_s13, 4  ;;  %s9530_s21 = int_to_ptr.vmem [resolvable:$true] %s9529_s21 }
0x3730   :  { %9477 = vrot.lane.b32.xlu0 %v5751_v62, %s11625_s25  ;;  %v307_v62 = vpop.permute.xlu1 %306 }
0x3752   :  { %v7545_v50 = vpop.permute.xlu0 %7544 }
0x3753   :  { %v7547_v30 = vsel %vm46_vm1, %v12602_v59, %v7545_v50 }
0x3754   :  { %10610 = vmatmul.mubr.msk.f32.vlgmr.msra.gmra.mrb[84].mxu0 %vm5951_vm11, %v7547_v30 }
0x3755   :  { %10627 = vmatprep.mubr.msk.f32.mxu0 %vm11557_vm0, %v11558_v1 }
0x3756   :  { %v11295_v63 = vpop.permute.xlu0 %11294 }
0x3757   :  { %v11297_v33 = vunpack.i.h.bf16 %v11295_v63  ;;  %v11296_v58 = vunpack.i.l.bf16 %v11295_v63 }
0x3759   :  { %v10934_v31 = vpack.c.bf16 %v11297_v33, %v11296_v58 }
0x375a   :  { %v7573_v32 = vpop.permute.xlu0 %7572 }
0x375b   :  { %10935 = vmatpush3.bf16.msra.mxu1 %v10934_v31  ;;  %v7574_v33 = vsel %vm46_vm1, %v12616_v51, %v7573_v32 }
0x375c   :  { %10630 = vmatprep.subr.mxu1 %v11558_v1 }
0x375e   :  { %v11300_v38 = vpop.permute.xlu0 %11299 }
0x375f   :  { %v11302_v35 = vunpack.i.h.bf16 %v11300_v38  ;;  %v11301_v13 = vunpack.i.l.bf16 %v11300_v38 }
0x3761   :  { %v10937_v34 = vpack.c.bf16 %v11302_v35, %v11301_v13 }
0x3762   :  { %v12690_v54 = vpop.permute.xlu0 %7848 }
0x3763   :  { %10938 = vmatpush3.bf16.msra.mxu0 %v10937_v34 }
0x3764   :  { %10635 = vmatprep.subr.mxu0 %v11558_v1 }
0x3766   :  { %v12693_v59 = vpop.permute.xlu0 %11304 }
0x376a   :  { %v11315_v16 = vpop.permute.xlu0 %11314 }
0x376b   :  { %v11317_v23 = vunpack.i.h.bf16 %v11315_v16  ;;  %v11316_v41 = vunpack.i.l.bf16 %v11315_v16 }
0x376d   :  { %v12701_v42 = vsel %vm284_vm2, %v11316_v41, %v11317_v23  ;;  %v11312_v41 = vunpack.i.h.bf16 %v12626_v12 }
0x376e   :  { %v10946_v53 = vpack.c.bf16 %v12698_v22, %v12701_v42  ;;  %v12705_v43 = vpop.permute.xlu0 %11324 }
0x3772   :  { %v11335_v25 = vpop.permute.xlu0 %11334 }
0x3773   :  { %v11337_v11 = vunpack.i.h.bf16 %v11335_v25  ;;  %v11336_v46 = vunpack.i.l.bf16 %v11335_v25 }
0x3775   :  { %v12713_v45 = vsel %vm284_vm2, %v11336_v46, %v11337_v11  ;;  %v10943_v46 = vpack.c.bf16 %v11312_v41, %v11311_v44 }
0x3776   :  { %v10949_v14 = vpack.c.bf16 %v12713_v45, %v12710_v48  ;;  %v12717_v47 = vpop.permute.xlu0 %8388 }
0x377a   :  { %v12719_v17 = vpop.permute.xlu0 %11344 }
0x377e   :  { %v12721_v18 = vpop.permute.xlu0 %8495 }
0x3782   :  { %v12723_v19 = vpop.permute.xlu0 %11354 }
0x3786   :  { %v12725_v60 = vpop.permute.xlu0 %11359 }
0x378a   :  { %v12727_v61 = vpop.permute.xlu0 %11364 }
0x378e   :  { %v12729_v8 = vpop.permute.xlu0 %11374 }
0x3792   :  { %v12731_v20 = vpop.permute.xlu0 %9308 }
0x3796   :  { %v12733_v26 = vpop.permute.xlu0 %11384 }
0x379a   :  { %v12737_v29 = vpop.permute.xlu0 %9400 }
0x379e   :  { %v303_v50 = vpop.permute.xlu0 %302 }
0x379f   :  { %v309_v30 = vsel %vm284_vm2, %v11747_v15, %v303_v50 }
0x37a0   :  { %v311_v63 = vsel %vm310_vm14, %v309_v30, %v307_v62  ;;  %v11347_v30 = vunpack.i.h.bf16 %v12719_v17 }
0x37a1   :  { %313 = vst.msk [vmem:[#allocation5] sm:$0x3] %vm312_vm6, %v311_v63  ;;  %v11346_v63 = vunpack.i.l.bf16 %v12719_v17 }
0x3827   :  { %v7645_v58 = vpop.f32.mrb[84].mxu0 }
0x3828   :  { %v12744_v31 = vadd.f32 %v7645_v58, %v7574_v33  ;;  %v10611_v38 = vpop.f32.mrb[85].mxu0  ;;  %v10958_v33 = vpack.c.bf16 %v11347_v30, %v11346_v63 }
0x3829   :  { %v11327_v38 = vunpack.i.h.bf16 %v12705_v43 }
0x382a   :  { %10621 = vmatmul.mubr.msk.f32.vlgmr.msra.gmra.mrb[88].mxu1 %vm5951_vm11, %v12744_v31  ;;  %7650 = vst.msk [vmem:[#allocation11] sm:$0xf] %vm7649_vm9, %v12744_v31 }
0x382b   :  { %10632 = vmatprep.mubr.msk.f32.mxu1 %vm11557_vm0, %v11558_v1 }
0x38fd   :  { %v7751_v15 = vpop.f32.mrb[88].mxu1 }
0x38fe   :  { %v7752_v35 = vadd.f32 %v7751_v15, %v12618_v56  ;;  %v10622_v13 = vpop.f32.mrb[89].mxu1  ;;  %v11307_v56 = vunpack.i.h.bf16 %v12693_v59  ;;  %v11326_v15 = vunpack.i.l.bf16 %v12705_v43 }
0x3900   :  { %vm7755_vm14 = vcmp.ge.f32.partialorder %v7752_v35, 0.0  ;;  %v7756_v34 = vmul.f32 0.01, %v7752_v35 }
0x3902   :  { %v7757_v51 = vsel %vm7755_vm14, %v7752_v35, %v7756_v34  ;;  %v11342_v34 = vunpack.i.h.bf16 %v12641_v6 }
0x3903   :  { %10628 = vmatmul.mubr.msk.f32.vlgmr.msra.gmra.mrb[86].mxu0 %vm46_vm1, %v7757_v51  ;;  %v11341_v51 = vunpack.i.l.bf16 %v12641_v6 }
0x3904   :  { %10637 = vmatprep.mubr.msk.f32.mxu0 %vm11557_vm0, %v11558_v1 }
0x39d6   :  { %v7840_v32 = vpop.f32.mrb[86].mxu0 }
0x39d7   :  { %v7841_v36 = vadd.f32 %v7840_v32, %v12620_v55  ;;  %v10629_v5 = vpop.f32.mrb[87].mxu0  ;;  %v11306_v55 = vunpack.i.l.bf16 %v12693_v59  ;;  %v10952_v32 = vpack.c.bf16 %v11327_v38, %v11326_v15 }
0x39d9   :  { %vm7844_vm7 = vcmp.ge.f32.partialorder %v7841_v36, 0.0  ;;  %v7845_v16 = vmul.f32 0.01, %v7841_v36  ;;  %v10940_v9 = vpack.c.bf16 %v11307_v56, %v11306_v55  ;;  %v10955_v55 = vpack.c.bf16 %v11342_v34, %v11341_v51 }
0x39db   :  { %v12756_v23 = vsel %vm7844_vm7, %v7841_v36, %v7845_v16 }
0x39dc   :  { %10631 = vmatpush3.msk.msra.mxu1 %vm333_vm4, %v12756_v23  ;;  %v8079_v22 = vsel %vm8078_vm15, %v12756_v23, -inf  ;;  %v8087_v42 = vsel %vm8086_vm8, %v12756_v23, -inf }
0x39dd   :  { %10633 = vmatmul.mubr.msk.f32.vlgmr.msra.gmra.mrb[90].mxu1 %vm284_vm2, %v12690_v54  ;;  %10640 = vmatprep.subr.mxu1 %v11558_v1  ;;  %v8088_v48 = vrot.slane %v8087_v42, 4 }
0x39de   :  { %10642 = vmatprep.mubr.msk.f32.mxu1 %vm11557_vm0, %v11558_v1 }
0x3ab0   :  { %v7921_v25 = vpop.f32.mrb[90].mxu1 }
0x3ab1   :  { %v10634_v11 = vpop.f32.mrb[91].mxu1  ;;  %10636 = vmatpush3.msk.msra.mxu0 %vm131_vm5, %v7921_v25 }
0x3ab2   :  { %10638 = vmatmul.mubr.msk.f32.vlgmr.msra.gmra.mrb[88].mxu0 %vm126_vm3, %v12622_v28  ;;  %10939 = vmatprep.subr.bf16.mxu0 %v11556_v0 }
0x3ab3   :  { %10941 = vmatpush3.bf16.msra.mxu0 %v10940_v9  ;;  %10653 = vmatprep.mubr.msk.f32.mxu0 %vm11557_vm0, %v11558_v1 }
0x3ab4   :  { %10942 = vmatprep.subr.bf16.mxu0 %v11556_v0 }
0x3ab7   :  { %10944 = vmatpush3.bf16.msra.mxu0 %v10943_v46 }
0x3ab8   :  { %10951 = vmatprep.subr.bf16.mxu0 %v11556_v0 }
0x3b85   :  { %v7999_v12 = vpop.f32.mrb[88].mxu0 }
0x3b86   :  { %v8003_v59 = vsub.f32 %v12756_v23, %v7999_v12  ;;  %v10639_v62 = vpop.f32.mrb[89].mxu0 }
0x3b88   :  { %v8004_v50 = vand.u32 2147483647, %v8003_v59 }
0x3b8a   :  { %10641 = vmatpush3.msk.msra.mxu1 %vm333_vm4, %v8004_v50  ;;  %v8392_v50 = vsel %vm3930_vm12, %v12717_v47, %v12644_v40 }
0x3b8b   :  { %10643 = vmatmul.mubr.msk.f32.vlgmr.msra.gmra.mrb[92].mxu1 %vm284_vm2, %v12690_v54  ;;  %10945 = vmatprep.subr.bf16.mxu1 %v11556_v0 }
0x3b8c   :  { %10947 = vmatpush3.bf16.msra.mxu1 %v10946_v53  ;;  %10664 = vmatprep.mubr.msk.f32.mxu1 %vm11557_vm0, %v11558_v1  ;;  %v8080_v53 = vrot.slane %v8079_v22, 4 }
0x3b8d   :  { %10948 = vmatprep.subr.bf16.mxu1 %v11556_v0 }
0x3b8e   :  { %v8081_v45 = vmax.f32 %v8079_v22, %v8080_v53  ;;  %v11352_v22 = vunpack.i.h.bf16 %v12655_v7 }
0x3b90   :  { %10950 = vmatpush3.bf16.msra.mxu1 %v10949_v14  ;;  %v8089_v14 = vmax.f32 %v8087_v42, %v8088_v48  ;;  %v8082_v17 = vrot.slane %v8081_v45, 2  ;;  %v11351_v42 = vunpack.i.l.bf16 %v12655_v7  ;;  %v11361_v7 = vunpack.i.l.bf16 %v12725_v60 }
0x3b91   :  { %10957 = vmatprep.subr.bf16.mxu1 %v11556_v0 }
0x3b92   :  { %v8090_v58 = vrot.slane %v8089_v14, 2  ;;  %v8083_v35 = vmax.f32 %v8081_v45, %v8082_v17  ;;  %v10961_v48 = vpack.c.bf16 %v11352_v22, %v11351_v42  ;;  %v11357_v45 = vunpack.i.h.bf16 %v12723_v19 }
0x3b93   :  { %10665 = vmatmul.mubr.msk.f32.vlgmr.msra.gmra.mrb[94].mxu1 %vm5951_vm11, %v7921_v25 }
0x3b94   :  { %10959 = vmatpush3.bf16.msra.mxu1 %v10958_v33  ;;  %10682 = vmatprep.mubr.msk.f32.mxu1 %vm11557_vm0, %v11558_v1  ;;  %v8091_v13 = vmax.f32 %v8089_v14, %v8090_v58  ;;  %v8084_v5 = vrot.slane %v8083_v35, 1  ;;  %v11356_v14 = vunpack.i.l.bf16 %v12723_v19 }
0x3b95   :  { %10685 = vmatprep.subr.mxu1 %v11558_v1 }
0x3b96   :  { %v8092_v16 = vrot.slane %v8091_v13, 1  ;;  %v8085_v43 = vmax.f32 %v8083_v35, %v8084_v5  ;;  %v10964_v58 = vpack.c.bf16 %v11357_v45, %v11356_v14 }
0x3b98   :  { %v8093_v41 = vmax.f32 %v8091_v13, %v8092_v16 }
0x3b9a   :  { %v8094_v44 = vsel %vm299_vm10, %v8085_v43, %v8093_v41  ;;  %v11367_v41 = vunpack.i.h.bf16 %v12727_v61 }
0x3c5e   :  { %v8074_v36 = vpop.f32.mrb[92].mxu1 }
0x3c5f   :  { %v10644_v56 = vpop.f32.mrb[93].mxu1  ;;  %10654 = vmatmul.mubr.msk.f32.vlgmr.msra.gmra.mrb[90].mxu0 %vm5951_vm11, %v8074_v36 }
0x3c60   :  { %10953 = vmatpush3.bf16.msra.mxu0 %v10952_v32  ;;  %10675 = vmatprep.mubr.msk.f32.mxu0 %vm11557_vm0, %v11558_v1 }
0x3c61   :  { %10954 = vmatprep.subr.bf16.mxu0 %v11556_v0 }
0x3c64   :  { %10956 = vmatpush3.bf16.msra.mxu0 %v10955_v55 }
0x3c65   :  { %10690 = vmatprep.subr.mxu0 %v11558_v1 }
0x3c66   :  { %v8288_v6 = vpop.f32.mrb[94].mxu1 }
0x3c67   :  { %10676 = vmatmul.mubr.msk.f32.vlgmr.msra.gmra.mrb[92].mxu0 %vm5951_vm11, %v8094_v44  ;;  %v10666_v9 = vpop.f32.mrb[95].mxu1 }
0x3c68   :  { %10692 = vmatprep.mubr.msk.f32.mxu0 %vm11557_vm0, %v11558_v1 }
0x3d32   :  { %v8188_v25 = vpop.f32.mrb[90].mxu0 }
0x3d33   :  { %v8289_v11 = vadd.f32 %v8288_v6, %v8188_v25  ;;  %v10655_v46 = vpop.f32.mrb[91].mxu0 }
0x3d3a   :  { %v8373_v12 = vpop.f32.mrb[92].mxu0 }
0x3d3b   :  { %v8377_v59 = vadd.f32 %v8373_v12, %v8289_v11  ;;  %v10677_v62 = vpop.f32.mrb[93].mxu0  ;;  %v11377_v11 = vunpack.i.h.bf16 %v12729_v8 }
0x3d3d   :  { %v8394_v30 = vadd.f32 %v8392_v50, %v8377_v59 }
0x3d3f   :  { %vm8395_vm13 = vcmp.ge.f32.partialorder %v8394_v30, 0.0  ;;  %v8396_v63 = vmul.f32 0.01, %v8394_v30 }
0x3d41   :  { %v8397_v33 = vsel %vm8395_vm13, %v8394_v30, %v8396_v63  ;;  %v11372_v63 = vunpack.i.h.bf16 %v12668_v4 }
0x3d42   :  { %10683 = vmatmul.mubr.msk.f32.vlgmr.msra.gmra.mrb[96].mxu1 %vm46_vm1, %v8397_v33  ;;  %v11371_v33 = vunpack.i.l.bf16 %v12668_v4 }
0x3d43   :  { %10686 = vmatpush3.msk.msra.mxu1 %vm333_vm4, %v12721_v18  ;;  %10687 = vmatprep.mubr.msk.f32.mxu1 %vm11557_vm0, %v11558_v1 }
0x3d44   :  { %10960 = vmatprep.subr.bf16.mxu1 %v11556_v0 }
0x3e15   :  { %v8486_v53 = vpop.f32.mrb[96].mxu1 }
0x3e16   :  { %v8487_v40 = vadd.f32 %v8486_v53, %v12652_v21  ;;  %v10684_v47 = vpop.f32.mrb[97].mxu1  ;;  %v11362_v21 = vunpack.i.h.bf16 %v12725_v60  ;;  %v10982_v53 = vpack.c.bf16 %v11372_v63, %v11371_v33 }
0x3e17   :  { %v11381_v47 = vunpack.i.l.bf16 %v12672_v39 }
0x3e18   :  { %vm8490_vm12 = vcmp.ge.f32.partialorder %v8487_v40, 0.0  ;;  %v8491_v18 = vmul.f32 0.01, %v8487_v40  ;;  %v10967_v19 = vpack.c.bf16 %v11362_v21, %v11361_v7 }
0x3e1a   :  { %v8492_v17 = vsel %vm8490_vm12, %v8487_v40, %v8491_v18  ;;  %v11382_v40 = vunpack.i.h.bf16 %v12672_v39 }
0x3e1b   :  { %10688 = vmatmul.mubr.msk.f32.vlgmr.msra.gmra.mrb[98].mxu1 %vm284_vm2, %v8492_v17 }
0x3e1c   :  { %10962 = vmatpush3.bf16.msra.mxu1 %v10961_v48  ;;  %10703 = vmatprep.mubr.msk.f32.mxu1 %vm11557_vm0, %v11558_v1  ;;  %v10985_v17 = vpack.c.bf16 %v11382_v40, %v11381_v47 }
0x3e1d   :  { %10963 = vmatprep.subr.bf16.mxu1 %v11556_v0 }
0x3e20   :  { %10965 = vmatpush3.bf16.msra.mxu1 %v10964_v58 }
0x3e21   :  { %10718 = vmatprep.subr.mxu1 %v11558_v1 }
0x3e23   :  { %10704 = vmatmul.mubr.msk.f32.vlgmr.msra.gmra.mrb[100].mxu1 %vm5951_vm11, %v12756_v23 }
0x3e24   :  { %10720 = vmatprep.mubr.msk.f32.mxu1 %vm11557_vm0, %v11558_v1 }
0x3eee   :  { %v8568_v38 = vpop.f32.mrb[98].mxu1 }
0x3eef   :  { %v10689_v15 = vpop.f32.mrb[99].mxu1  ;;  %10691 = vmatpush3.msk.msra.mxu0 %vm131_vm5, %v8568_v38 }
0x3ef0   :  { %10693 = vmatmul.mubr.msk.f32.vlgmr.msra.gmra.mrb[94].mxu0 %vm126_vm3, %v12622_v28  ;;  %10966 = vmatprep.subr.bf16.mxu0 %v11556_v0 }
0x3ef1   :  { %10968 = vmatpush3.bf16.msra.mxu0 %v10967_v19  ;;  %10710 = vmatprep.mubr.msk.f32.mxu0 %vm11557_vm0, %v11558_v1 }
0x3ef2   :  { %10713 = vmatprep.subr.mxu0 %v11558_v1 }
0x3ef6   :  { %v8725_v23 = vpop.f32.mrb[100].mxu1 }
0x3ef7   :  { %v10705_v35 = vpop.f32.mrb[101].mxu1 }
0x3fc3   :  { %v8641_v13 = vpop.f32.mrb[94].mxu0 }
0x3fc4   :  { %v8726_v60 = vadd.f32 %v8725_v23, %v8641_v13  ;;  %v10694_v34 = vpop.f32.mrb[95].mxu0 }
0x3fc6   :  { %v8732_v51 = vadd.f32 %v12658_v27, %v8726_v60 }
0x3fc8   :  { %vm8733_vm6 = vcmp.ge.f32.partialorder %v8732_v51, 0.0  ;;  %v8734_v32 = vmul.f32 0.01, %v8732_v51 }
0x3fca   :  { %v8735_v36 = vsel %vm8733_vm6, %v8732_v51, %v8734_v32 }
0x3fcb   :  { %10711 = vmatmul.mubr.msk.f32.vlgmr.msra.gmra.mrb[96].mxu0 %vm46_vm1, %v8735_v36 }
0x3fcc   :  { %10715 = vmatprep.mubr.msk.f32.mxu0 %vm11557_vm0, %v11558_v1 }
0x409e   :  { %v8814_v5 = vpop.f32.mrb[96].mxu0 }
0x409f   :  { %v8815_v16 = vadd.f32 %v8814_v5, %v12662_v49  ;;  %v10712_v56 = vpop.f32.mrb[97].mxu0  ;;  %v10970_v49 = vpack.c.bf16 %v12568_v24, %v12566_v37  ;;  %v11376_v37 = vunpack.i.l.bf16 %v12729_v8 }
0x40a1   :  { %v8818_v55 = vadd.f32 %v8815_v16, %v12744_v31  ;;  %v10973_v31 = vpack.c.bf16 %v12577_v10, %v12575_v2  ;;  %v10979_v2 = vpack.c.bf16 %v11377_v11, %v11376_v37  ;;  %v11387_v10 = vunpack.i.h.bf16 %v12733_v26 }
0x40a3   :  { %10714 = vmatpush3.msk.msra.mxu0 %vm333_vm4, %v8818_v55  ;;  %v9047_v46 = vsel %vm8086_vm8, %v8818_v55, -inf }
0x40a4   :  { %10716 = vmatmul.mubr.msk.f32.vlgmr.msra.gmra.mrb[98].mxu0 %vm284_vm2, %v12690_v54  ;;  %10723 = vmatprep.subr.mxu0 %v11558_v1  ;;  %v9048_v12 = vrot.slane %v9047_v46, 4 }
0x40a5   :  { %10725 = vmatprep.mubr.msk.f32.mxu0 %vm11557_vm0, %v11558_v1 }
0x40a6   :  { %v9049_v62 = vmax.f32 %v9047_v46, %v9048_v12 }
0x40a8   :  { %v9050_v30 = vrot.slane %v9049_v62, 2 }
0x40aa   :  { %v9051_v42 = vmax.f32 %v9049_v62, %v9050_v30 }
0x40ac   :  { %v9052_v14 = vrot.slane %v9051_v42, 1 }
0x40ae   :  { %v9053_v58 = vmax.f32 %v9051_v42, %v9052_v14 }
0x4177   :  { %v8888_v27 = vpop.f32.mrb[98].mxu0 }
0x4178   :  { %v10717_v43 = vpop.f32.mrb[99].mxu0  ;;  %10719 = vmatpush3.msk.msra.mxu1 %vm131_vm5, %v8888_v27 }
0x4179   :  { %10721 = vmatmul.mubr.msk.f32.vlgmr.msra.gmra.mrb[102].mxu1 %vm126_vm3, %v12622_v28  ;;  %10969 = vmatprep.subr.bf16.mxu1 %v11556_v0  ;;  %v11366_v28 = vunpack.i.l.bf16 %v12727_v61  ;;  %v11386_v61 = vunpack.i.l.bf16 %v12733_v26  ;;  %v9040_v26 = vsel %vm8078_vm15, %v8818_v55, -inf }
0x417a   :  { %10736 = vmatprep.mubr.msk.f32.mxu1 %vm11557_vm0, %v11558_v1  ;;  %10971 = vmatpush3.bf16.msra.mxu1 %v10970_v49 }
0x417b   :  { %10972 = vmatprep.subr.bf16.mxu1 %v11556_v0  ;;  %v10976_v25 = vpack.c.bf16 %v11367_v41, %v11366_v28  ;;  %v10988_v8 = vpack.c.bf16 %v11387_v10, %v11386_v61 }
0x417e   :  { %10974 = vmatpush3.bf16.msra.mxu1 %v10973_v31 }
0x417f   :  { %10981 = vmatprep.subr.bf16.mxu1 %v11556_v0 }
0x424c   :  { %v8961_v6 = vpop.f32.mrb[102].mxu1 }
0x424d   :  { %v8965_v44 = vsub.f32 %v8818_v55, %v8961_v6  ;;  %v10722_v9 = vpop.f32.mrb[103].mxu1 }
0x424f   :  { %v8966_v24 = vand.u32 2147483647, %v8965_v44 }
0x4251   :  { %10724 = vmatpush3.msk.msra.mxu0 %vm333_vm4, %v8966_v24 }
0x4252   :  { %10726 = vmatmul.mubr.msk.f32.vlgmr.msra.gmra.mrb[100].mxu0 %vm284_vm2, %v12690_v54  ;;  %10975 = vmatprep.subr.bf16.mxu0 %v11556_v0  ;;  %v11412_v54 = vld [vmem:[%s12981_s1] sm:$0x3]  ;;  %s11626_s1 = smov [#allocation6]  }
0x4253   :  { %10977 = vmatpush3.bf16.msra.mxu0 %v10976_v25  ;;  %10747 = vmatprep.mubr.msk.f32.mxu0 %vm11557_vm0, %v11558_v1  ;;  %s9506_s26 = sshll.u32 %s11626_s1, 4  ;;  %s9507_s26 = int_to_ptr.vmem [resolvable:$true] %s9506_s26 }
0x4254   :  { %10978 = vmatprep.subr.bf16.mxu0 %v11556_v0  ;;  %s11435_s27 = scalar_lea.vmem %s9507_s26, 256  ;;  %p11440_p9 = scmp.lt.s32.totalorder %s9507_s26, %s9507_s26 }
0x4255   :  { %p11436_p8 = scmp.ne.s32.totalorder %s9507_s26, %s11435_s27  ;;  %p11441_p10 = scmp.lt.s32.totalorder %s11435_s27, %s11435_s27 }
0x4257   :  { %10980 = vmatpush3.bf16.msra.mxu0 %v10979_v2  ;;  %p11442_p11 = por %p11441_p10, %p11440_p9 }
0x4258   :  { %10761 = vmatprep.subr.mxu0 %v11558_v1 }
0x4259   :  { %p11443_p12 = pnand %p11442_p11, %p11436_p8 }
0x425a   :  { %10748 = vmatmul.mubr.msk.f32.vlgmr.msra.gmra.mrb[102].mxu0 %vm5951_vm11, %v8888_v27 }
0x425b   :  { %10762 = vmatpush3.msk.msra.mxu0 %vm131_vm5, %v12731_v20  ;;  %10763 = vmatprep.mubr.msk.f32.mxu0 %vm11557_vm0, %v11558_v1  ;;  %v9041_v20 = vrot.slane %v9040_v26, 4 }
0x425c   :  { %10987 = vmatprep.subr.bf16.mxu0 %v11556_v0 }
0x425d   :  { %v9042_v59 = vmax.f32 %v9040_v26, %v9041_v20 }
0x425e   :  { %10764 = vmatmul.mubr.msk.f32.vlgmr.msra.gmra.mrb[104].mxu0 %vm126_vm3, %v11412_v54 }
0x425f   :  { %10989 = vmatpush3.bf16.msra.mxu0 %v10988_v8  ;;  %10770 = vmatprep.mubr.msk.f32.mxu0 %vm11557_vm0, %v11558_v1  ;;  %v9043_v50 = vrot.slane %v9042_v59, 2 }
0x4261   :  { %v9044_v22 = vmax.f32 %v9042_v59, %v9043_v50 }
0x4263   :  { %v9045_v45 = vrot.slane %v9044_v22, 1 }
0x4265   :  { %v9046_v4 = vmax.f32 %v9044_v22, %v9045_v45 }
0x4267   :  { %v9054_v7 = vsel %vm299_vm10, %v9046_v4, %v9053_v58 }
0x4325   :  { %v9036_v48 = vpop.f32.mrb[100].mxu0 }
0x4326   :  { %v10727_v18 = vpop.f32.mrb[101].mxu0  ;;  %10737 = vmatmul.mubr.msk.f32.vlgmr.msra.gmra.mrb[104].mxu1 %vm5951_vm11, %v9036_v48 }
0x4327   :  { %10983 = vmatpush3.bf16.msra.mxu1 %v10982_v53  ;;  %10758 = vmatprep.mubr.msk.f32.mxu1 %vm11557_vm0, %v11558_v1 }
0x4328   :  { %10984 = vmatprep.subr.bf16.mxu1 %v11556_v0 }
0x432b   :  { %10986 = vmatpush3.bf16.msra.mxu1 %v10985_v17 }
0x432d   :  { %v9212_v21 = vpop.f32.mrb[102].mxu0 }
0x432e   :  { %10759 = vmatmul.mubr.msk.f32.vlgmr.msra.gmra.mrb[106].mxu1 %vm5951_vm11, %v9054_v7  ;;  %v10749_v39 = vpop.f32.mrb[103].mxu0 }
0x4331   :  { %v9378_v19 = vpop.f32.mrb[104].mxu0 }
0x4332   :  { %v10765_v38 = vpop.f32.mrb[105].mxu0 }
0x43f9   :  { %v9128_v15 = vpop.f32.mrb[104].mxu1 }
0x43fa   :  { %v9213_v23 = vadd.f32 %v9212_v21, %v9128_v15  ;;  %v10738_v35 = vpop.f32.mrb[105].mxu1 }
0x4401   :  { %v9301_v13 = vpop.f32.mrb[106].mxu1 }
0x4402   :  { %v9305_v60 = vadd.f32 %v9301_v13, %v9213_v23  ;;  %v10760_v34 = vpop.f32.mrb[107].mxu1 }
0x4404   :  { %v9382_v1 = vadd.f32 %v9378_v19, %v9305_v60 }
0x4406   :  { %v9386_v0 = vadd.f32 %v12677_v57, %v9382_v1 }
0x4408   :  { %vm9387_vm0 = vcmp.ge.f32.partialorder %v9386_v0, 0.0  ;;  %v9388_v51 = vmul.f32 0.01, %v9386_v0 }
0x440a   :  { %v9389_v32 = vsel %vm9387_vm0, %v9386_v0, %v9388_v51 }
0x440b   :  { %10771 = vmatmul.mubr.msk.f32.vlgmr.msra.gmra.mrb[106].mxu0 %vm46_vm1, %v9389_v32 }
0x440c   :  { %11446 = shalt.err (!%p11443_p12)
}
0x440d   :  { %s11447_s28 = scalar_lea.hbm %s12986_s6, 256 }
0x440e   :  { %p11448_p13 = scmp.ne.s32.totalorder %s12986_s6, %s11447_s28  ;;  %p11451_p0 = scmp.lt.u32.totalorder %s11447_s28, %s12986_s6 }
0x4410   :  { %p11453_p1 = pnand %p11451_p0, %p11448_p13 }
0x4412   :  { %11456 = shalt.err (!%p11453_p1)
}
0x4413   :  { %s11628_s30 = smov 128   ;;  %s11457_s2 = scalar_lea.vmem %s9530_s21, 128 }
0x4414   :  { %9512 = dma.vmem_to_hbm [thread:$0]  %s9507_s26, 256, %s12986_s6, [#allocation7], %s11628_s30, %s11628_s30, %s11593_s23  }
0x4415   :  { %p11458_p2 = scmp.ne.s32.totalorder %s9530_s21, %s11457_s2  ;;  %p11462_p3 = scmp.lt.s32.totalorder %s9530_s21, %s9530_s21 }
0x4416   :  { %p11463_p4 = scmp.lt.s32.totalorder %s11457_s2, %s11457_s2 }
0x4418   :  { %p11464_p5 = por %p11463_p4, %p11462_p3 }
0x441a   :  { %p11465_p6 = pnand %p11464_p5, %p11458_p2 }
0x441c   :  { %11468 = shalt.err (!%p11465_p6)
}
0x441d   :  { %s11469_s0 = scalar_lea.hbm %s12988_s8, 128 }
0x441e   :  { %p11470_p7 = scmp.ne.s32.totalorder %s12988_s8, %s11469_s0  ;;  %p11473_p8 = scmp.lt.u32.totalorder %s11469_s0, %s12988_s8 }
0x4420   :  { %p11475_p9 = pnand %p11473_p8, %p11470_p7 }
0x4422   :  { %11478 = shalt.err (!%p11475_p9)
}
0x4423   :  { %9532 = dma.vmem_to_hbm [thread:$0]  %s9530_s21, 128, %s12988_s8, [#allocation10]  }
0x4424   :  { %s11629_s10 = smov [#allocation5]   ;;  %s11630_s26 = smov [#allocation8]  }
0x4425   :  { %s9497_s1 = sshll.u32 %s11629_s10, 4  ;;  %s9519_s13 = sshll.u32 %s11630_s26, 4  ;;  %s9498_s1 = int_to_ptr.vmem [resolvable:$true] %s9497_s1  ;;  %s9520_s13 = int_to_ptr.vmem [resolvable:$true] %s9519_s13 }
0x4426   :  { %s11479_s27 = scalar_lea.vmem %s9498_s1, 32  ;;  %p11484_p11 = scmp.lt.s32.totalorder %s9498_s1, %s9498_s1 }
0x4427   :  { %p11480_p10 = scmp.ne.s32.totalorder %s9498_s1, %s11479_s27  ;;  %p11485_p12 = scmp.lt.s32.totalorder %s11479_s27, %s11479_s27 }
0x4429   :  { %p11486_p13 = por %p11485_p12, %p11484_p11 }
0x442b   :  { %p11487_p0 = pnand %p11486_p13, %p11480_p10 }
0x442d   :  { %11490 = shalt.err (!%p11487_p0)
}
0x442e   :  { %s11491_s28 = scalar_lea.hbm %s12985_s5, 32 }
0x442f   :  { %p11492_p1 = scmp.ne.s32.totalorder %s12985_s5, %s11491_s28  ;;  %p11495_p2 = scmp.lt.u32.totalorder %s11491_s28, %s12985_s5 }
0x4431   :  { %p11497_p3 = pnand %p11495_p2, %p11492_p1 }
0x4433   :  { %11500 = shalt.err (!%p11497_p3)
}
0x4434   :  { %9500 = dma.vmem_to_hbm [thread:$0]  %s9498_s1, 32, %s12985_s5, [#allocation4]  }
0x4435   :  { %s11501_s30 = scalar_lea.vmem %s9520_s13, 128  ;;  %p11506_p5 = scmp.lt.s32.totalorder %s9520_s13, %s9520_s13 }
0x4436   :  { %p11502_p4 = scmp.ne.s32.totalorder %s9520_s13, %s11501_s30  ;;  %p11507_p6 = scmp.lt.s32.totalorder %s11501_s30, %s11501_s30 }
0x4438   :  { %p11508_p7 = por %p11507_p6, %p11506_p5 }
0x443a   :  { %p11509_p8 = pnand %p11508_p7, %p11502_p4 }
0x443c   :  { %11512 = shalt.err (!%p11509_p8)
}
0x443d   :  { %s11513_s2 = scalar_lea.hbm %s12987_s7, 128 }
0x443e   :  { %p11514_p9 = scmp.ne.s32.totalorder %s12987_s7, %s11513_s2  ;;  %p11517_p10 = scmp.lt.u32.totalorder %s11513_s2, %s12987_s7 }
0x4440   :  { %p11519_p11 = pnand %p11517_p10, %p11514_p9 }
0x4442   :  { %11522 = shalt.err (!%p11519_p11)
}
0x4443   :  { %9522 = dma.vmem_to_hbm [thread:$0]  %s9520_s13, 128, %s12987_s7, [#allocation7]  }
0x4444   :  { %s11631_s25 = smov [#allocation11]  }
0x4445   :  { %s9539_s20 = sshll.u32 %s11631_s25, 4  ;;  %s9540_s20 = int_to_ptr.vmem [resolvable:$true] %s9539_s20 }
0x4446   :  { %s11523_s6 = scalar_lea.vmem %s9540_s20, 64  ;;  %p11528_p13 = scmp.lt.s32.totalorder %s9540_s20, %s9540_s20 }
0x4447   :  { %p11524_p12 = scmp.ne.s32.totalorder %s9540_s20, %s11523_s6  ;;  %p11529_p0 = scmp.lt.s32.totalorder %s11523_s6, %s11523_s6 }
0x4449   :  { %p11530_p1 = por %p11529_p0, %p11528_p13 }
0x444b   :  { %p11531_p2 = pnand %p11530_p1, %p11524_p12 }
0x44de   :  { %v9472_v57 = vpop.f32.mrb[106].mxu0 }
0x44df   :  { %11534 = shalt.err (!%p11531_p2)
}
0x44e0   :  { %s11535_s1 = scalar_lea.hbm %s12989_s9, 64 }
0x44e1   :  { %p11536_p3 = scmp.ne.s32.totalorder %s12989_s9, %s11535_s1  ;;  %p11539_p4 = scmp.lt.u32.totalorder %s11535_s1, %s12989_s9 }
0x44e3   :  { %p11541_p5 = pnand %p11539_p4, %p11536_p3 }
0x44e5   :  { %11544 = shalt.err (!%p11541_p5)
}
0x44e6   :  { %9542 = dma.vmem_to_hbm [thread:$0]  %s9540_s20, 64, %s12989_s9, [#allocation10]   ;;  %v9473_v36 = vadd.f32 %v9472_v57, %v12737_v29  ;;  %v10772_v5 = vpop.f32.mrb[107].mxu0  ;;  %vm9484_vm1 = vcmask 7168   ;;  %v9478_v16 = vpop.permute.xlu0 %9477  ;;  %v2075_v56 = vadd.f32 %v11962_v52, %v12735_v3  ;;  %vm9487_vm2 = vcmask 17408  }
0x44e7   :  { %s13005_s28 = smov 2  }
0x44e8   :  { %9481 = vrot.lane.b32.xlu1 %v9473_v36, %s13005_s28  ;;  %v9485_v55 = vsel %vm9484_vm1, %v2075_v56, %v9478_v16 }
0x455a   :  { %v9482_v27 = vpop.permute.xlu1 %9481 }
0x455b   :  { %v9486_v43 = vsel %vm126_vm3, %v9485_v55, %v9482_v27 }
0x455c   :  { %9488 = vst.msk [vmem:[%s12984_s4] sm:$0x3] %vm9487_vm2, %v9486_v43 }
0x455d   :  { %11547 = dma.done.wait [#allocation4], 32  }
0x455e   :  { %11548 = vsyncadd [#allocation4], 4294967264 }
0x455f   :  { %11549 = dma.done.wait [#allocation7], 384  }
0x4560   :  { %11550 = vsyncadd [#allocation7], 4294966912 }
0x4561   :  { %11551 = dma.done.wait [#allocation10], 192  }
0x4562   :  { %11552 = vsyncadd [#allocation10], 4294967104 }
0x4563   :  { %9560 = vsyncpa [#allocation3], 1 }
0x4564   :  { %9561 = vsyncpa [#allocation4], 1 }
0x4565   :  { %9562 = vsyncpa [#allocation7], 1 }
0x4566   :  { %9563 = vsyncpa [#allocation10], 1 }

</bundles_post_ra>
